<compile_context>
chip_gen: v7x
topology: tpu7x:2x2x1
jax: 0.10.0
libtpu: 0.0.40
codegen_flags: <defaults>
</compile_context>

<pallas_src>
import functools

import jax
import jax.numpy as jnp
from jax import lax
from jax.experimental import pallas as pl
from jax.experimental.pallas import tpu as pltpu


def lstm_kernel(x_ref,       # (T, B, Ip)  compute dtype : inputs (zero-padded on I)
                wih0_ref,    # (Ip, 4Hp)   compute dtype : W_ih_l0^T, gate order [i,f,o,g]
                b0_ref,      # (1, 4Hp)    f32 : b_ih_l0 + b_hh_l0
                wbig_ref,    # (2Hp, 8Hp)  compute dtype : [[W_ih1^T, W_hh0^T],[W_hh1^T, 0]]
                b1_ref,      # (1, 4Hp)    f32 : b_ih_l1 + b_hh_l1
                wfc_ref,     # (1, Hp)     f32
                bfc_ref,     # (1, 1)      f32
                out_ref,     # (B, 1)      f32
                gx_ref):     # (T, B, 4Hp) compute dtype VMEM scratch
    T, B, _ = x_ref.shape
    H8 = wbig_ref.shape[1]
    H4 = H8 // 2
    H = H4 // 4
    cdt = wbig_ref.dtype

    # ---- prologue: layer-0 input projection + fused bias (state independent) ----
    wih0 = wih0_ref[...]
    b0 = b0_ref[...]
    for t in range(T):                       # static T; off the recurrent chain
        gx_ref[t] = (jnp.dot(x_ref[t], wih0, preferred_element_type=jnp.float32)
                     + b0).astype(gx_ref.dtype)

    # ---- loop-invariant hoists ----
    w_big = wbig_ref[...]
    b1 = jnp.broadcast_to(b1_ref[...], (B, H4))

    def gates_to_hc(gates, c_prev):
        # packed gate order [i, f, o, g]: one contiguous sigmoid slab + one tanh slab
        sig = jax.nn.sigmoid(gates[:, :3 * H])
        g = jnp.tanh(gates[:, 3 * H:])
        i = sig[:, 0 * H:1 * H]
        f = sig[:, 1 * H:2 * H]
        o = sig[:, 2 * H:3 * H]
        c_new = f * c_prev + i * g
        h_new = o * jnp.tanh(c_new)
        return h_new, c_new

    def step(t, carry):
        r0, h1, c0, c1 = carry
        # Layer 0 at step t: NO matmul here.  The recurrent term
        # r0 = h0_{t-1} @ W_hh0^T came out of the previous step's fused dot,
        # and the input term (+bias) was precomputed into gx.
        g0 = gx_ref[t].astype(jnp.float32) + r0
        h0, c0 = gates_to_hc(g0, c0)
        # Single fused dot per step on the serial chain:
        #   [h0_t, h1_{t-1}] @ [[W_ih1^T, W_hh0^T], [W_hh1^T, 0]]
        z = jnp.concatenate([h0, h1], axis=-1).astype(cdt)      # (B, 2Hp), tile-aligned
        fused = jnp.dot(z, w_big, preferred_element_type=jnp.float32)   # (B, 8Hp)
        g1 = fused[:, :H4] + b1          # layer-1 gates at t
        r0_next = fused[:, H4:]          # recurrent part of layer-0 gates at t+1
        h1, c1 = gates_to_hc(g1, c1)
        return (r0_next, h1, c0, c1)

    zeros_s = jnp.zeros((B, H), jnp.float32)
    zeros_g = jnp.zeros((B, H4), jnp.float32)   # h0_{-1} = 0  =>  r0_0 = 0
    _, h1, _, _ = lax.fori_loop(0, T, step, (zeros_g, zeros_s, zeros_s, zeros_s),
                                unroll=(True if T <= 32 else 8))

    # Final Linear(H, 1) as a VPU multiply + lane reduction (avoids an N=1 MXU dot).
    out_ref[...] = (jnp.sum(h1 * wfc_ref[...], axis=-1, keepdims=True)
                    + bfc_ref[...])


def _pack_gate_mat(w, h, h_pad, d, d_pad):
    """(4h, d) PyTorch [i,f,g,o] gate matrix -> [i,f,o,g], zero-padded (4*h_pad, d_pad)."""
    w4 = w.reshape(4, h, d)
    w4 = jnp.stack([w4[0], w4[1], w4[3], w4[2]])       # i, f, o, g
    w4 = jnp.pad(w4, ((0, 0), (0, h_pad - h), (0, d_pad - d)))
    return w4.reshape(4 * h_pad, d_pad)


def _pack_gate_vec(b, h, h_pad):
    b4 = b.reshape(4, h)
    b4 = jnp.stack([b4[0], b4[1], b4[3], b4[2]])        # i, f, o, g
    return jnp.pad(b4, ((0, 0), (0, h_pad - h))).reshape(4 * h_pad)


@functools.lru_cache(maxsize=None)
def _vmem_limit_bytes():
    """Generation-aware VMEM limit: ~100 MiB on v5e/v6e, ~48 MiB on v7x."""
    try:
        cap = int(pltpu.get_tpu_info().vmem_capacity_bytes)
    except Exception:
        cap = 64 * 1024 * 1024          # conservative fallback (v7x per-core VMEM)
    return int(max(32 * 1024 * 1024,
                   min(cap - 16 * 1024 * 1024, 100 * 1024 * 1024)))


@functools.partial(jax.jit, static_argnames=("compute_dtype",))
def lstm_model_forward(x, params, compute_dtype=jnp.float32):
    """x: (B, T, I) float32 -> (B, 1) float32."""
    B, T, I = x.shape
    H = params["w_hh_l0"].shape[1]
    # Pad H to a full 128-lane tile so gate slices, states and the [h0,h1] concat
    # are vreg-tile aligned (H=50 -> 128).  Pad I (=K of the input projection) to 8.
    Hp = -(-H // 128) * 128
    Ip = -(-I // 8) * 8

    x_tm = jnp.transpose(x, (1, 0, 2)).astype(jnp.float32)           # (T, B, I)
    x_tm = jnp.pad(x_tm, ((0, 0), (0, 0), (0, Ip - I))).astype(compute_dtype)

    wih0 = _pack_gate_mat(params["w_ih_l0"], H, Hp, I, Ip)            # (4Hp, Ip)
    whh0 = _pack_gate_mat(params["w_hh_l0"], H, Hp, H, Hp)            # (4Hp, Hp)
    wih1 = _pack_gate_mat(params["w_ih_l1"], H, Hp, H, Hp)            # (4Hp, Hp)
    whh1 = _pack_gate_mat(params["w_hh_l1"], H, Hp, H, Hp)            # (4Hp, Hp)
    b0 = (_pack_gate_vec(params["b_ih_l0"], H, Hp)
          + _pack_gate_vec(params["b_hh_l0"], H, Hp)).reshape(1, 4 * Hp)
    b1 = (_pack_gate_vec(params["b_ih_l1"], H, Hp)
          + _pack_gate_vec(params["b_hh_l1"], H, Hp)).reshape(1, 4 * Hp)
    wfc = jnp.pad(params["w_fc"], ((0, 0), (0, Hp - H)))              # (1, Hp)
    bfc = params["b_fc"].reshape(1, 1)                                # (1, 1)

    wih0_T = wih0.T.astype(compute_dtype)                             # (Ip, 4Hp)
    # Fused recurrent weight for the single per-step dot on z_t = [h0_t, h1_{t-1}]:
    #   cols [0:4Hp)   -> layer-1 gates g1_t (pre-bias)
    #   cols [4Hp:8Hp) -> recurrent part of layer-0 gates at t+1
    w_big = jnp.concatenate([
        jnp.concatenate([wih1.T, whh0.T], axis=1),                        # rows for h0_t
        jnp.concatenate([whh1.T, jnp.zeros((Hp, 4 * Hp), whh1.dtype)], axis=1),  # rows for h1_{t-1}
    ], axis=0).astype(compute_dtype)                                   # (2Hp, 8Hp)

    vmem = pl.BlockSpec(memory_space=pltpu.MemorySpace.VMEM)
    # TODO(synk): for large B, add a leading batch grid axis with
    # dimension_semantics=("parallel",) so v7x's two TensorCores both work; for large
    # T stream x/gx in T-chunks via BlockSpecs with h/c carried in VMEM scratch.
    out = pl.pallas_call(
        lstm_kernel,
        out_shape=jax.ShapeDtypeStruct((B, 1), jnp.float32),
        in_specs=[vmem] * 7,
        out_specs=vmem,
        scratch_shapes=[pltpu.VMEM((T, B, 4 * Hp), compute_dtype)],
        compiler_params=pltpu.CompilerParams(vmem_limit_bytes=_vmem_limit_bytes()),
    )(x_tm, wih0_T, b0, w_big, b1, wfc, bfc)
    return out


def lstm_model_reference(x, params):
    """Pure-JAX reference matching torch.nn.LSTM(num_layers=2) + Linear semantics."""
    B, T, I = x.shape
    H = params["w_hh_l0"].shape[1]

    def cell(x_t, h, c, wih, whh, bih, bhh):
        gates = x_t @ wih.T + bih + h @ whh.T + bhh
        i = jax.nn.sigmoid(gates[:, :H])
        f = jax.nn.sigmoid(gates[:, H:2 * H])
        g = jnp.tanh(gates[:, 2 * H:3 * H])
        o = jax.nn.sigmoid(gates[:, 3 * H:])
        c = f * c + i * g
        h = o * jnp.tanh(c)
        return h, c

    zeros = jnp.zeros((B, H), jnp.float32)

    def step(carry, x_t):
        h0, c0, h1, c1 = carry
        h0, c0 = cell(x_t, h0, c0, params["w_ih_l0"], params["w_hh_l0"],
                      params["b_ih_l0"], params["b_hh_l0"])
        h1, c1 = cell(h0, h1, c1, params["w_ih_l1"], params["w_hh_l1"],
                      params["b_ih_l1"], params["b_hh_l1"])
        return (h0, c0, h1, c1), None

    (h0, c0, h1, c1), _ = lax.scan(step, (zeros, zeros, zeros, zeros),
                                   jnp.transpose(x, (1, 0, 2)))
    return h1 @ params["w_fc"].T + params["b_fc"]


def init_params(key, input_size, hidden_size):
    """Deterministic init with shapes matching nn.LSTM(num_layers=2) + nn.Linear(H,1)."""
    H, I = hidden_size, input_size
    k = 1.0 / jnp.sqrt(jnp.float32(H))
    names_shapes = [
        ("w_ih_l0", (4 * H, I)), ("w_hh_l0", (4 * H, H)),
        ("b_ih_l0", (4 * H,)),   ("b_hh_l0", (4 * H,)),
        ("w_ih_l1", (4 * H, H)), ("w_hh_l1", (4 * H, H)),
        ("b_ih_l1", (4 * H,)),   ("b_hh_l1", (4 * H,)),
        ("w_fc", (1, H)),        ("b_fc", (1,)),
    ]
    keys = jax.random.split(key, len(names_shapes))
    params = {}
    for (name, shape), kk in zip(names_shapes, keys):
        params[name] = jax.random.uniform(kk, shape, jnp.float32, minval=-k, maxval=k)
    return params


if __name__ == "__main__":
    B, T, I = 2, 8, 1
    key = jax.random.PRNGKey(0)
    kx, kp = jax.random.split(key)
    x = jax.random.normal(kx, (B, T, I), jnp.float32)

    # H=50 (module default): pads to Hp=128, full f32.
    params50 = init_params(kp, I, 50)
    out50 = jax.block_until_ready(lstm_model_forward(x, params50))
    ref50 = lstm_model_reference(x, params50)
    assert out50.shape == (B, 1)
    assert jnp.allclose(out50, ref50, rtol=1e-4, atol=1e-5), (out50, ref50)

    # H=32: exercises heavier zero-padding (32 -> 128), full f32.
    params32 = init_params(kp, I, 32)
    out32 = jax.block_until_ready(lstm_model_forward(x, params32))
    ref32 = lstm_model_reference(x, params32)
    assert jnp.allclose(out32, ref32, rtol=1e-4, atol=1e-5), (out32, ref32)

    # bf16 MXU-operand + bf16 gx fast path (v6e/v7x); states and gate accumulation
    # stay f32.  NOTE: drift grows with T; keep f32 for long sequences.
    out_bf16 = jax.block_until_ready(
        lstm_model_forward(x, params32, compute_dtype=jnp.bfloat16))
    assert jnp.allclose(out_bf16, ref32, rtol=5e-2, atol=5e-2), (out_bf16, ref32)

    print("KERNEL_OK")
</pallas_src>

<mosaic_0001>
module attributes {stable_mosaic.version = 11 : i64} {
  func.func @lstm_kernel(%arg0: memref<8x2x8xf32, #tpu.memory_space<vmem>>, %arg1: memref<8x512xf32, #tpu.memory_space<vmem>>, %arg2: memref<1x512xf32, #tpu.memory_space<vmem>>, %arg3: memref<256x1024xf32, #tpu.memory_space<vmem>>, %arg4: memref<1x512xf32, #tpu.memory_space<vmem>>, %arg5: memref<1x128xf32, #tpu.memory_space<vmem>>, %arg6: memref<1x1xf32, #tpu.memory_space<vmem>>, %arg7: memref<2x1xf32, #tpu.memory_space<vmem>>, %arg8: memref<8x2x512xf32, #tpu.memory_space<vmem>>) attributes {dimension_semantics = [], scalar_prefetch = 0 : i64, scratch_operands = 1 : i64, tpu.core_type = #tpu.core_type<tc>} {
    %c0 = arith.constant 0 : index
    %c0_0 = arith.constant 0 : index
    %0 = vector.load %arg1[%c0, %c0_0] : memref<8x512xf32, #tpu.memory_space<vmem>>, vector<8x512xf32>
    %c0_1 = arith.constant 0 : index
    %c0_2 = arith.constant 0 : index
    %1 = vector.load %arg2[%c0_1, %c0_2] : memref<1x512xf32, #tpu.memory_space<vmem>>, vector<1x512xf32>
    %c0_3 = arith.constant 0 : index
    %c0_4 = arith.constant 0 : index
    %c0_5 = arith.constant 0 : index
    %2 = vector.load %arg0[%c0_3, %c0_4, %c0_5] : memref<8x2x8xf32, #tpu.memory_space<vmem>>, vector<1x2x8xf32>
    %3 = vector.shape_cast %2 : vector<1x2x8xf32> to vector<2x8xf32>
    %cst = arith.constant dense<0.000000e+00> : vector<2x512xf32>
    %4 = tpu.matmul %3, %0, %cst {dimension_numbers = #tpu.dot_dimension_numbers<[1], [0], [0], [1], [0, 0, 1, 1], [], []>} : vector<2x8xf32>, vector<8x512xf32>, vector<2x512xf32> -> vector<2x512xf32>
    %5 = vector.broadcast %1 : vector<1x512xf32> to vector<2x512xf32>
    %6 = arith.addf %4, %5 : vector<2x512xf32>
    %c0_6 = arith.constant 0 : index
    %c0_7 = arith.constant 0 : index
    %c0_8 = arith.constant 0 : index
    %7 = vector.load %arg8[%c0_6, %c0_7, %c0_8] : memref<8x2x512xf32, #tpu.memory_space<vmem>>, vector<1x2x512xf32>
    %8 = vector.shape_cast %7 : vector<1x2x512xf32> to vector<2x512xf32>
    %9 = vector.shape_cast %6 : vector<2x512xf32> to vector<1x2x512xf32>
    tpu.vector_store %arg8[%c0_6, %c0_7, %c0_8], %9 {strides = array<i32>} : memref<8x2x512xf32, #tpu.memory_space<vmem>>, vector<1x2x512xf32>,
    %c1 = arith.constant 1 : index
    %c0_9 = arith.constant 0 : index
    %c0_10 = arith.constant 0 : index
    %10 = vector.load %arg0[%c1, %c0_9, %c0_10] : memref<8x2x8xf32, #tpu.memory_space<vmem>>, vector<1x2x8xf32>
    %11 = vector.shape_cast %10 : vector<1x2x8xf32> to vector<2x8xf32>
    %cst_11 = arith.constant dense<0.000000e+00> : vector<2x512xf32>
    %12 = tpu.matmul %11, %0, %cst_11 {dimension_numbers = #tpu.dot_dimension_numbers<[1], [0], [0], [1], [0, 0, 1, 1], [], []>} : vector<2x8xf32>, vector<8x512xf32>, vector<2x512xf32> -> vector<2x512xf32>
    %13 = vector.broadcast %1 : vector<1x512xf32> to vector<2x512xf32>
    %14 = arith.addf %12, %13 : vector<2x512xf32>
    %c1_12 = arith.constant 1 : index
    %c0_13 = arith.constant 0 : index
    %c0_14 = arith.constant 0 : index
    %15 = vector.load %arg8[%c1_12, %c0_13, %c0_14] : memref<8x2x512xf32, #tpu.memory_space<vmem>>, vector<1x2x512xf32>
    %16 = vector.shape_cast %15 : vector<1x2x512xf32> to vector<2x512xf32>
    %17 = vector.shape_cast %14 : vector<2x512xf32> to vector<1x2x512xf32>
    tpu.vector_store %arg8[%c1_12, %c0_13, %c0_14], %17 {strides = array<i32>} : memref<8x2x512xf32, #tpu.memory_space<vmem>>, vector<1x2x512xf32>,
    %c2 = arith.constant 2 : index
    %c0_15 = arith.constant 0 : index
    %c0_16 = arith.constant 0 : index
    %18 = vector.load %arg0[%c2, %c0_15, %c0_16] : memref<8x2x8xf32, #tpu.memory_space<vmem>>, vector<1x2x8xf32>
    %19 = vector.shape_cast %18 : vector<1x2x8xf32> to vector<2x8xf32>
    %cst_17 = arith.constant dense<0.000000e+00> : vector<2x512xf32>
    %20 = tpu.matmul %19, %0, %cst_17 {dimension_numbers = #tpu.dot_dimension_numbers<[1], [0], [0], [1], [0, 0, 1, 1], [], []>} : vector<2x8xf32>, vector<8x512xf32>, vector<2x512xf32> -> vector<2x512xf32>
    %21 = vector.broadcast %1 : vector<1x512xf32> to vector<2x512xf32>
    %22 = arith.addf %20, %21 : vector<2x512xf32>
    %c2_18 = arith.constant 2 : index
    %c0_19 = arith.constant 0 : index
    %c0_20 = arith.constant 0 : index
    %23 = vector.load %arg8[%c2_18, %c0_19, %c0_20] : memref<8x2x512xf32, #tpu.memory_space<vmem>>, vector<1x2x512xf32>
    %24 = vector.shape_cast %23 : vector<1x2x512xf32> to vector<2x512xf32>
    %25 = vector.shape_cast %22 : vector<2x512xf32> to vector<1x2x512xf32>
    tpu.vector_store %arg8[%c2_18, %c0_19, %c0_20], %25 {strides = array<i32>} : memref<8x2x512xf32, #tpu.memory_space<vmem>>, vector<1x2x512xf32>,
    %c3 = arith.constant 3 : index
    %c0_21 = arith.constant 0 : index
    %c0_22 = arith.constant 0 : index
    %26 = vector.load %arg0[%c3, %c0_21, %c0_22] : memref<8x2x8xf32, #tpu.memory_space<vmem>>, vector<1x2x8xf32>
    %27 = vector.shape_cast %26 : vector<1x2x8xf32> to vector<2x8xf32>
    %cst_23 = arith.constant dense<0.000000e+00> : vector<2x512xf32>
    %28 = tpu.matmul %27, %0, %cst_23 {dimension_numbers = #tpu.dot_dimension_numbers<[1], [0], [0], [1], [0, 0, 1, 1], [], []>} : vector<2x8xf32>, vector<8x512xf32>, vector<2x512xf32> -> vector<2x512xf32>
    %29 = vector.broadcast %1 : vector<1x512xf32> to vector<2x512xf32>
    %30 = arith.addf %28, %29 : vector<2x512xf32>
    %c3_24 = arith.constant 3 : index
    %c0_25 = arith.constant 0 : index
    %c0_26 = arith.constant 0 : index
    %31 = vector.load %arg8[%c3_24, %c0_25, %c0_26] : memref<8x2x512xf32, #tpu.memory_space<vmem>>, vector<1x2x512xf32>
    %32 = vector.shape_cast %31 : vector<1x2x512xf32> to vector<2x512xf32>
    %33 = vector.shape_cast %30 : vector<2x512xf32> to vector<1x2x512xf32>
    tpu.vector_store %arg8[%c3_24, %c0_25, %c0_26], %33 {strides = array<i32>} : memref<8x2x512xf32, #tpu.memory_space<vmem>>, vector<1x2x512xf32>,
    %c4 = arith.constant 4 : index
    %c0_27 = arith.constant 0 : index
    %c0_28 = arith.constant 0 : index
    %34 = vector.load %arg0[%c4, %c0_27, %c0_28] : memref<8x2x8xf32, #tpu.memory_space<vmem>>, vector<1x2x8xf32>
    %35 = vector.shape_cast %34 : vector<1x2x8xf32> to vector<2x8xf32>
    %cst_29 = arith.constant dense<0.000000e+00> : vector<2x512xf32>
    %36 = tpu.matmul %35, %0, %cst_29 {dimension_numbers = #tpu.dot_dimension_numbers<[1], [0], [0], [1], [0, 0, 1, 1], [], []>} : vector<2x8xf32>, vector<8x512xf32>, vector<2x512xf32> -> vector<2x512xf32>
    %37 = vector.broadcast %1 : vector<1x512xf32> to vector<2x512xf32>
    %38 = arith.addf %36, %37 : vector<2x512xf32>
    %c4_30 = arith.constant 4 : index
    %c0_31 = arith.constant 0 : index
    %c0_32 = arith.constant 0 : index
    %39 = vector.load %arg8[%c4_30, %c0_31, %c0_32] : memref<8x2x512xf32, #tpu.memory_space<vmem>>, vector<1x2x512xf32>
    %40 = vector.shape_cast %39 : vector<1x2x512xf32> to vector<2x512xf32>
    %41 = vector.shape_cast %38 : vector<2x512xf32> to vector<1x2x512xf32>
    tpu.vector_store %arg8[%c4_30, %c0_31, %c0_32], %41 {strides = array<i32>} : memref<8x2x512xf32, #tpu.memory_space<vmem>>, vector<1x2x512xf32>,
    %c5 = arith.constant 5 : index
    %c0_33 = arith.constant 0 : index
    %c0_34 = arith.constant 0 : index
    %42 = vector.load %arg0[%c5, %c0_33, %c0_34] : memref<8x2x8xf32, #tpu.memory_space<vmem>>, vector<1x2x8xf32>
    %43 = vector.shape_cast %42 : vector<1x2x8xf32> to vector<2x8xf32>
    %cst_35 = arith.constant dense<0.000000e+00> : vector<2x512xf32>
    %44 = tpu.matmul %43, %0, %cst_35 {dimension_numbers = #tpu.dot_dimension_numbers<[1], [0], [0], [1], [0, 0, 1, 1], [], []>} : vector<2x8xf32>, vector<8x512xf32>, vector<2x512xf32> -> vector<2x512xf32>
    %45 = vector.broadcast %1 : vector<1x512xf32> to vector<2x512xf32>
    %46 = arith.addf %44, %45 : vector<2x512xf32>
    %c5_36 = arith.constant 5 : index
    %c0_37 = arith.constant 0 : index
    %c0_38 = arith.constant 0 : index
    %47 = vector.load %arg8[%c5_36, %c0_37, %c0_38] : memref<8x2x512xf32, #tpu.memory_space<vmem>>, vector<1x2x512xf32>
    %48 = vector.shape_cast %47 : vector<1x2x512xf32> to vector<2x512xf32>
    %49 = vector.shape_cast %46 : vector<2x512xf32> to vector<1x2x512xf32>
    tpu.vector_store %arg8[%c5_36, %c0_37, %c0_38], %49 {strides = array<i32>} : memref<8x2x512xf32, #tpu.memory_space<vmem>>, vector<1x2x512xf32>,
    %c6 = arith.constant 6 : index
    %c0_39 = arith.constant 0 : index
    %c0_40 = arith.constant 0 : index
    %50 = vector.load %arg0[%c6, %c0_39, %c0_40] : memref<8x2x8xf32, #tpu.memory_space<vmem>>, vector<1x2x8xf32>
    %51 = vector.shape_cast %50 : vector<1x2x8xf32> to vector<2x8xf32>
    %cst_41 = arith.constant dense<0.000000e+00> : vector<2x512xf32>
    %52 = tpu.matmul %51, %0, %cst_41 {dimension_numbers = #tpu.dot_dimension_numbers<[1], [0], [0], [1], [0, 0, 1, 1], [], []>} : vector<2x8xf32>, vector<8x512xf32>, vector<2x512xf32> -> vector<2x512xf32>
    %53 = vector.broadcast %1 : vector<1x512xf32> to vector<2x512xf32>
    %54 = arith.addf %52, %53 : vector<2x512xf32>
    %c6_42 = arith.constant 6 : index
    %c0_43 = arith.constant 0 : index
    %c0_44 = arith.constant 0 : index
    %55 = vector.load %arg8[%c6_42, %c0_43, %c0_44] : memref<8x2x512xf32, #tpu.memory_space<vmem>>, vector<1x2x512xf32>
    %56 = vector.shape_cast %55 : vector<1x2x512xf32> to vector<2x512xf32>
    %57 = vector.shape_cast %54 : vector<2x512xf32> to vector<1x2x512xf32>
    tpu.vector_store %arg8[%c6_42, %c0_43, %c0_44], %57 {strides = array<i32>} : memref<8x2x512xf32, #tpu.memory_space<vmem>>, vector<1x2x512xf32>,
    %c7 = arith.constant 7 : index
    %c0_45 = arith.constant 0 : index
    %c0_46 = arith.constant 0 : index
    %58 = vector.load %arg0[%c7, %c0_45, %c0_46] : memref<8x2x8xf32, #tpu.memory_space<vmem>>, vector<1x2x8xf32>
    %59 = vector.shape_cast %58 : vector<1x2x8xf32> to vector<2x8xf32>
    %cst_47 = arith.constant dense<0.000000e+00> : vector<2x512xf32>
    %60 = tpu.matmul %59, %0, %cst_47 {dimension_numbers = #tpu.dot_dimension_numbers<[1], [0], [0], [1], [0, 0, 1, 1], [], []>} : vector<2x8xf32>, vector<8x512xf32>, vector<2x512xf32> -> vector<2x512xf32>
    %61 = vector.broadcast %1 : vector<1x512xf32> to vector<2x512xf32>
    %62 = arith.addf %60, %61 : vector<2x512xf32>
    %c7_48 = arith.constant 7 : index
    %c0_49 = arith.constant 0 : index
    %c0_50 = arith.constant 0 : index
    %63 = vector.load %arg8[%c7_48, %c0_49, %c0_50] : memref<8x2x512xf32, #tpu.memory_space<vmem>>, vector<1x2x512xf32>
    %64 = vector.shape_cast %63 : vector<1x2x512xf32> to vector<2x512xf32>
    %65 = vector.shape_cast %62 : vector<2x512xf32> to vector<1x2x512xf32>
    tpu.vector_store %arg8[%c7_48, %c0_49, %c0_50], %65 {strides = array<i32>} : memref<8x2x512xf32, #tpu.memory_space<vmem>>, vector<1x2x512xf32>,
    %c0_51 = arith.constant 0 : index
    %c0_52 = arith.constant 0 : index
    %66 = vector.load %arg3[%c0_51, %c0_52] : memref<256x1024xf32, #tpu.memory_space<vmem>>, vector<256x1024xf32>
    %c0_53 = arith.constant 0 : index
    %c0_54 = arith.constant 0 : index
    %67 = vector.load %arg4[%c0_53, %c0_54] : memref<1x512xf32, #tpu.memory_space<vmem>>, vector<1x512xf32>
    %68 = vector.shape_cast %67 : vector<1x512xf32> to vector<1x512xf32>
    %69 = vector.broadcast %68 : vector<1x512xf32> to vector<2x512xf32>
    %cst_55 = arith.constant 0.000000e+00 : f32
    %70 = vector.broadcast %cst_55 : f32 to vector<2x128xf32>
    %cst_56 = arith.constant 0.000000e+00 : f32
    %71 = vector.broadcast %cst_56 : f32 to vector<2x512xf32>
    %c0_i32 = arith.constant 0 : i32
    %72 = arith.index_cast %c0_i32 : i32 to index
    %c0_57 = arith.constant 0 : index
    %c0_58 = arith.constant 0 : index
    %73 = vector.load %arg8[%72, %c0_57, %c0_58] : memref<8x2x512xf32, #tpu.memory_space<vmem>>, vector<1x2x512xf32>
    %74 = vector.shape_cast %73 : vector<1x2x512xf32> to vector<2x512xf32>
    %75 = arith.addf %74, %71 : vector<2x512xf32>
    %76 = vector.extract_strided_slice %75 {offsets = [0, 0], sizes = [2, 384], strides = [1, 1]} : vector<2x512xf32> to vector<2x384xf32>
    %77 = arith.negf %76 : vector<2x384xf32>
    %78 = math.exp %77 : vector<2x384xf32>
    %cst_59 = arith.constant 1.000000e+00 : f32
    %79 = vector.broadcast %cst_59 : f32 to vector<2x384xf32>
    %80 = arith.addf %79, %78 : vector<2x384xf32>
    %81 = arith.divf %79, %80 : vector<2x384xf32>
    %82 = vector.extract_strided_slice %75 {offsets = [0, 384], sizes = [2, 128], strides = [1, 1]} : vector<2x512xf32> to vector<2x128xf32>
    %83 = math.tanh %82 : vector<2x128xf32>
    %84 = vector.extract_strided_slice %81 {offsets = [0, 0], sizes = [2, 128], strides = [1, 1]} : vector<2x384xf32> to vector<2x128xf32>
    %85 = vector.extract_strided_slice %81 {offsets = [0, 128], sizes = [2, 128], strides = [1, 1]} : vector<2x384xf32> to vector<2x128xf32>
    %86 = vector.extract_strided_slice %81 {offsets = [0, 256], sizes = [2, 128], strides = [1, 1]} : vector<2x384xf32> to vector<2x128xf32>
    %87 = arith.mulf %85, %70 : vector<2x128xf32>
    %88 = arith.mulf %84, %83 : vector<2x128xf32>
    %89 = arith.addf %87, %88 : vector<2x128xf32>
    %90 = math.tanh %89 : vector<2x128xf32>
    %91 = arith.mulf %86, %90 : vector<2x128xf32>
    %92 = tpu.concatenate %91, %70 in 1 : vector<2x128xf32>, vector<2x128xf32> -> vector<2x256xf32>
    %cst_60 = arith.constant dense<0.000000e+00> : vector<2x1024xf32>
    %93 = tpu.matmul %92, %66, %cst_60 {dimension_numbers = #tpu.dot_dimension_numbers<[1], [0], [0], [1], [0, 0, 1, 1], [], []>} : vector<2x256xf32>, vector<256x1024xf32>, vector<2x1024xf32> -> vector<2x1024xf32>
    %94 = vector.extract_strided_slice %93 {offsets = [0, 0], sizes = [2, 512], strides = [1, 1]} : vector<2x1024xf32> to vector<2x512xf32>
    %95 = arith.addf %94, %69 : vector<2x512xf32>
    %96 = vector.extract_strided_slice %93 {offsets = [0, 512], sizes = [2, 512], strides = [1, 1]} : vector<2x1024xf32> to vector<2x512xf32>
    %97 = vector.extract_strided_slice %95 {offsets = [0, 0], sizes = [2, 384], strides = [1, 1]} : vector<2x512xf32> to vector<2x384xf32>
    %98 = arith.negf %97 : vector<2x384xf32>
    %99 = math.exp %98 : vector<2x384xf32>
    %cst_61 = arith.constant 1.000000e+00 : f32
    %100 = vector.broadcast %cst_61 : f32 to vector<2x384xf32>
    %101 = arith.addf %100, %99 : vector<2x384xf32>
    %102 = arith.divf %100, %101 : vector<2x384xf32>
    %103 = vector.extract_strided_slice %95 {offsets = [0, 384], sizes = [2, 128], strides = [1, 1]} : vector<2x512xf32> to vector<2x128xf32>
    %104 = math.tanh %103 : vector<2x128xf32>
    %105 = vector.extract_strided_slice %102 {offsets = [0, 0], sizes = [2, 128], strides = [1, 1]} : vector<2x384xf32> to vector<2x128xf32>
    %106 = vector.extract_strided_slice %102 {offsets = [0, 128], sizes = [2, 128], strides = [1, 1]} : vector<2x384xf32> to vector<2x128xf32>
    %107 = vector.extract_strided_slice %102 {offsets = [0, 256], sizes = [2, 128], strides = [1, 1]} : vector<2x384xf32> to vector<2x128xf32>
    %108 = arith.mulf %106, %70 : vector<2x128xf32>
    %109 = arith.mulf %105, %104 : vector<2x128xf32>
    %110 = arith.addf %108, %109 : vector<2x128xf32>
    %111 = math.tanh %110 : vector<2x128xf32>
    %112 = arith.mulf %107, %111 : vector<2x128xf32>
    %c1_i32 = arith.constant 1 : i32
    %113 = arith.index_cast %c1_i32 : i32 to index
    %c0_62 = arith.constant 0 : index
    %c0_63 = arith.constant 0 : index
    %114 = vector.load %arg8[%113, %c0_62, %c0_63] : memref<8x2x512xf32, #tpu.memory_space<vmem>>, vector<1x2x512xf32>
    %115 = vector.shape_cast %114 : vector<1x2x512xf32> to vector<2x512xf32>
    %116 = arith.addf %115, %96 : vector<2x512xf32>
    %117 = vector.extract_strided_slice %116 {offsets = [0, 0], sizes = [2, 384], strides = [1, 1]} : vector<2x512xf32> to vector<2x384xf32>
    %118 = arith.negf %117 : vector<2x384xf32>
    %119 = math.exp %118 : vector<2x384xf32>
    %cst_64 = arith.constant 1.000000e+00 : f32
    %120 = vector.broadcast %cst_64 : f32 to vector<2x384xf32>
    %121 = arith.addf %120, %119 : vector<2x384xf32>
    %122 = arith.divf %120, %121 : vector<2x384xf32>
    %123 = vector.extract_strided_slice %116 {offsets = [0, 384], sizes = [2, 128], strides = [1, 1]} : vector<2x512xf32> to vector<2x128xf32>
    %124 = math.tanh %123 : vector<2x128xf32>
    %125 = vector.extract_strided_slice %122 {offsets = [0, 0], sizes = [2, 128], strides = [1, 1]} : vector<2x384xf32> to vector<2x128xf32>
    %126 = vector.extract_strided_slice %122 {offsets = [0, 128], sizes = [2, 128], strides = [1, 1]} : vector<2x384xf32> to vector<2x128xf32>
    %127 = vector.extract_strided_slice %122 {offsets = [0, 256], sizes = [2, 128], strides = [1, 1]} : vector<2x384xf32> to vector<2x128xf32>
    %128 = arith.mulf %126, %89 : vector<2x128xf32>
    %129 = arith.mulf %125, %124 : vector<2x128xf32>
    %130 = arith.addf %128, %129 : vector<2x128xf32>
    %131 = math.tanh %130 : vector<2x128xf32>
    %132 = arith.mulf %127, %131 : vector<2x128xf32>
    %133 = tpu.concatenate %132, %112 in 1 : vector<2x128xf32>, vector<2x128xf32> -> vector<2x256xf32>
    %cst_65 = arith.constant dense<0.000000e+00> : vector<2x1024xf32>
    %134 = tpu.matmul %133, %66, %cst_65 {dimension_numbers = #tpu.dot_dimension_numbers<[1], [0], [0], [1], [0, 0, 1, 1], [], []>} : vector<2x256xf32>, vector<256x1024xf32>, vector<2x1024xf32> -> vector<2x1024xf32>
    %135 = vector.extract_strided_slice %134 {offsets = [0, 0], sizes = [2, 512], strides = [1, 1]} : vector<2x1024xf32> to vector<2x512xf32>
    %136 = arith.addf %135, %69 : vector<2x512xf32>
    %137 = vector.extract_strided_slice %134 {offsets = [0, 512], sizes = [2, 512], strides = [1, 1]} : vector<2x1024xf32> to vector<2x512xf32>
    %138 = vector.extract_strided_slice %136 {offsets = [0, 0], sizes = [2, 384], strides = [1, 1]} : vector<2x512xf32> to vector<2x384xf32>
    %139 = arith.negf %138 : vector<2x384xf32>
    %140 = math.exp %139 : vector<2x384xf32>
    %cst_66 = arith.constant 1.000000e+00 : f32
    %141 = vector.broadcast %cst_66 : f32 to vector<2x384xf32>
    %142 = arith.addf %141, %140 : vector<2x384xf32>
    %143 = arith.divf %141, %142 : vector<2x384xf32>
    %144 = vector.extract_strided_slice %136 {offsets = [0, 384], sizes = [2, 128], strides = [1, 1]} : vector<2x512xf32> to vector<2x128xf32>
    %145 = math.tanh %144 : vector<2x128xf32>
    %146 = vector.extract_strided_slice %143 {offsets = [0, 0], sizes = [2, 128], strides = [1, 1]} : vector<2x384xf32> to vector<2x128xf32>
    %147 = vector.extract_strided_slice %143 {offsets = [0, 128], sizes = [2, 128], strides = [1, 1]} : vector<2x384xf32> to vector<2x128xf32>
    %148 = vector.extract_strided_slice %143 {offsets = [0, 256], sizes = [2, 128], strides = [1, 1]} : vector<2x384xf32> to vector<2x128xf32>
    %149 = arith.mulf %147, %110 : vector<2x128xf32>
    %150 = arith.mulf %146, %145 : vector<2x128xf32>
    %151 = arith.addf %149, %150 : vector<2x128xf32>
    %152 = math.tanh %151 : vector<2x128xf32>
    %153 = arith.mulf %148, %152 : vector<2x128xf32>
    %c2_i32 = arith.constant 2 : i32
    %154 = arith.index_cast %c2_i32 : i32 to index
    %c0_67 = arith.constant 0 : index
    %c0_68 = arith.constant 0 : index
    %155 = vector.load %arg8[%154, %c0_67, %c0_68] : memref<8x2x512xf32, #tpu.memory_space<vmem>>, vector<1x2x512xf32>
    %156 = vector.shape_cast %155 : vector<1x2x512xf32> to vector<2x512xf32>
    %157 = arith.addf %156, %137 : vector<2x512xf32>
    %158 = vector.extract_strided_slice %157 {offsets = [0, 0], sizes = [2, 384], strides = [1, 1]} : vector<2x512xf32> to vector<2x384xf32>
    %159 = arith.negf %158 : vector<2x384xf32>
    %160 = math.exp %159 : vector<2x384xf32>
    %cst_69 = arith.constant 1.000000e+00 : f32
    %161 = vector.broadcast %cst_69 : f32 to vector<2x384xf32>
    %162 = arith.addf %161, %160 : vector<2x384xf32>
    %163 = arith.divf %161, %162 : vector<2x384xf32>
    %164 = vector.extract_strided_slice %157 {offsets = [0, 384], sizes = [2, 128], strides = [1, 1]} : vector<2x512xf32> to vector<2x128xf32>
    %165 = math.tanh %164 : vector<2x128xf32>
    %166 = vector.extract_strided_slice %163 {offsets = [0, 0], sizes = [2, 128], strides = [1, 1]} : vector<2x384xf32> to vector<2x128xf32>
    %167 = vector.extract_strided_slice %163 {offsets = [0, 128], sizes = [2, 128], strides = [1, 1]} : vector<2x384xf32> to vector<2x128xf32>
    %168 = vector.extract_strided_slice %163 {offsets = [0, 256], sizes = [2, 128], strides = [1, 1]} : vector<2x384xf32> to vector<2x128xf32>
    %169 = arith.mulf %167, %130 : vector<2x128xf32>
    %170 = arith.mulf %166, %165 : vector<2x128xf32>
    %171 = arith.addf %169, %170 : vector<2x128xf32>
    %172 = math.tanh %171 : vector<2x128xf32>
    %173 = arith.mulf %168, %172 : vector<2x128xf32>
    %174 = tpu.concatenate %173, %153 in 1 : vector<2x128xf32>, vector<2x128xf32> -> vector<2x256xf32>
    %cst_70 = arith.constant dense<0.000000e+00> : vector<2x1024xf32>
    %175 = tpu.matmul %174, %66, %cst_70 {dimension_numbers = #tpu.dot_dimension_numbers<[1], [0], [0], [1], [0, 0, 1, 1], [], []>} : vector<2x256xf32>, vector<256x1024xf32>, vector<2x1024xf32> -> vector<2x1024xf32>
    %176 = vector.extract_strided_slice %175 {offsets = [0, 0], sizes = [2, 512], strides = [1, 1]} : vector<2x1024xf32> to vector<2x512xf32>
    %177 = arith.addf %176, %69 : vector<2x512xf32>
    %178 = vector.extract_strided_slice %175 {offsets = [0, 512], sizes = [2, 512], strides = [1, 1]} : vector<2x1024xf32> to vector<2x512xf32>
    %179 = vector.extract_strided_slice %177 {offsets = [0, 0], sizes = [2, 384], strides = [1, 1]} : vector<2x512xf32> to vector<2x384xf32>
    %180 = arith.negf %179 : vector<2x384xf32>
    %181 = math.exp %180 : vector<2x384xf32>
    %cst_71 = arith.constant 1.000000e+00 : f32
    %182 = vector.broadcast %cst_71 : f32 to vector<2x384xf32>
    %183 = arith.addf %182, %181 : vector<2x384xf32>
    %184 = arith.divf %182, %183 : vector<2x384xf32>
    %185 = vector.extract_strided_slice %177 {offsets = [0, 384], sizes = [2, 128], strides = [1, 1]} : vector<2x512xf32> to vector<2x128xf32>
    %186 = math.tanh %185 : vector<2x128xf32>
    %187 = vector.extract_strided_slice %184 {offsets = [0, 0], sizes = [2, 128], strides = [1, 1]} : vector<2x384xf32> to vector<2x128xf32>
    %188 = vector.extract_strided_slice %184 {offsets = [0, 128], sizes = [2, 128], strides = [1, 1]} : vector<2x384xf32> to vector<2x128xf32>
    %189 = vector.extract_strided_slice %184 {offsets = [0, 256], sizes = [2, 128], strides = [1, 1]} : vector<2x384xf32> to vector<2x128xf32>
    %190 = arith.mulf %188, %151 : vector<2x128xf32>
    %191 = arith.mulf %187, %186 : vector<2x128xf32>
    %192 = arith.addf %190, %191 : vector<2x128xf32>
    %193 = math.tanh %192 : vector<2x128xf32>
    %194 = arith.mulf %189, %193 : vector<2x128xf32>
    %c3_i32 = arith.constant 3 : i32
    %195 = arith.index_cast %c3_i32 : i32 to index
    %c0_72 = arith.constant 0 : index
    %c0_73 = arith.constant 0 : index
    %196 = vector.load %arg8[%195, %c0_72, %c0_73] : memref<8x2x512xf32, #tpu.memory_space<vmem>>, vector<1x2x512xf32>
    %197 = vector.shape_cast %196 : vector<1x2x512xf32> to vector<2x512xf32>
    %198 = arith.addf %197, %178 : vector<2x512xf32>
    %199 = vector.extract_strided_slice %198 {offsets = [0, 0], sizes = [2, 384], strides = [1, 1]} : vector<2x512xf32> to vector<2x384xf32>
    %200 = arith.negf %199 : vector<2x384xf32>
    %201 = math.exp %200 : vector<2x384xf32>
    %cst_74 = arith.constant 1.000000e+00 : f32
    %202 = vector.broadcast %cst_74 : f32 to vector<2x384xf32>
    %203 = arith.addf %202, %201 : vector<2x384xf32>
    %204 = arith.divf %202, %203 : vector<2x384xf32>
    %205 = vector.extract_strided_slice %198 {offsets = [0, 384], sizes = [2, 128], strides = [1, 1]} : vector<2x512xf32> to vector<2x128xf32>
    %206 = math.tanh %205 : vector<2x128xf32>
    %207 = vector.extract_strided_slice %204 {offsets = [0, 0], sizes = [2, 128], strides = [1, 1]} : vector<2x384xf32> to vector<2x128xf32>
    %208 = vector.extract_strided_slice %204 {offsets = [0, 128], sizes = [2, 128], strides = [1, 1]} : vector<2x384xf32> to vector<2x128xf32>
    %209 = vector.extract_strided_slice %204 {offsets = [0, 256], sizes = [2, 128], strides = [1, 1]} : vector<2x384xf32> to vector<2x128xf32>
    %210 = arith.mulf %208, %171 : vector<2x128xf32>
    %211 = arith.mulf %207, %206 : vector<2x128xf32>
    %212 = arith.addf %210, %211 : vector<2x128xf32>
    %213 = math.tanh %212 : vector<2x128xf32>
    %214 = arith.mulf %209, %213 : vector<2x128xf32>
    %215 = tpu.concatenate %214, %194 in 1 : vector<2x128xf32>, vector<2x128xf32> -> vector<2x256xf32>
    %cst_75 = arith.constant dense<0.000000e+00> : vector<2x1024xf32>
    %216 = tpu.matmul %215, %66, %cst_75 {dimension_numbers = #tpu.dot_dimension_numbers<[1], [0], [0], [1], [0, 0, 1, 1], [], []>} : vector<2x256xf32>, vector<256x1024xf32>, vector<2x1024xf32> -> vector<2x1024xf32>
    %217 = vector.extract_strided_slice %216 {offsets = [0, 0], sizes = [2, 512], strides = [1, 1]} : vector<2x1024xf32> to vector<2x512xf32>
    %218 = arith.addf %217, %69 : vector<2x512xf32>
    %219 = vector.extract_strided_slice %216 {offsets = [0, 512], sizes = [2, 512], strides = [1, 1]} : vector<2x1024xf32> to vector<2x512xf32>
    %220 = vector.extract_strided_slice %218 {offsets = [0, 0], sizes = [2, 384], strides = [1, 1]} : vector<2x512xf32> to vector<2x384xf32>
    %221 = arith.negf %220 : vector<2x384xf32>
    %222 = math.exp %221 : vector<2x384xf32>
    %cst_76 = arith.constant 1.000000e+00 : f32
    %223 = vector.broadcast %cst_76 : f32 to vector<2x384xf32>
    %224 = arith.addf %223, %222 : vector<2x384xf32>
    %225 = arith.divf %223, %224 : vector<2x384xf32>
    %226 = vector.extract_strided_slice %218 {offsets = [0, 384], sizes = [2, 128], strides = [1, 1]} : vector<2x512xf32> to vector<2x128xf32>
    %227 = math.tanh %226 : vector<2x128xf32>
    %228 = vector.extract_strided_slice %225 {offsets = [0, 0], sizes = [2, 128], strides = [1, 1]} : vector<2x384xf32> to vector<2x128xf32>
    %229 = vector.extract_strided_slice %225 {offsets = [0, 128], sizes = [2, 128], strides = [1, 1]} : vector<2x384xf32> to vector<2x128xf32>
    %230 = vector.extract_strided_slice %225 {offsets = [0, 256], sizes = [2, 128], strides = [1, 1]} : vector<2x384xf32> to vector<2x128xf32>
    %231 = arith.mulf %229, %192 : vector<2x128xf32>
    %232 = arith.mulf %228, %227 : vector<2x128xf32>
    %233 = arith.addf %231, %232 : vector<2x128xf32>
    %234 = math.tanh %233 : vector<2x128xf32>
    %235 = arith.mulf %230, %234 : vector<2x128xf32>
    %c4_i32 = arith.constant 4 : i32
    %236 = arith.index_cast %c4_i32 : i32 to index
    %c0_77 = arith.constant 0 : index
    %c0_78 = arith.constant 0 : index
    %237 = vector.load %arg8[%236, %c0_77, %c0_78] : memref<8x2x512xf32, #tpu.memory_space<vmem>>, vector<1x2x512xf32>
    %238 = vector.shape_cast %237 : vector<1x2x512xf32> to vector<2x512xf32>
    %239 = arith.addf %238, %219 : vector<2x512xf32>
    %240 = vector.extract_strided_slice %239 {offsets = [0, 0], sizes = [2, 384], strides = [1, 1]} : vector<2x512xf32> to vector<2x384xf32>
    %241 = arith.negf %240 : vector<2x384xf32>
    %242 = math.exp %241 : vector<2x384xf32>
    %cst_79 = arith.constant 1.000000e+00 : f32
    %243 = vector.broadcast %cst_79 : f32 to vector<2x384xf32>
    %244 = arith.addf %243, %242 : vector<2x384xf32>
    %245 = arith.divf %243, %244 : vector<2x384xf32>
    %246 = vector.extract_strided_slice %239 {offsets = [0, 384], sizes = [2, 128], strides = [1, 1]} : vector<2x512xf32> to vector<2x128xf32>
    %247 = math.tanh %246 : vector<2x128xf32>
    %248 = vector.extract_strided_slice %245 {offsets = [0, 0], sizes = [2, 128], strides = [1, 1]} : vector<2x384xf32> to vector<2x128xf32>
    %249 = vector.extract_strided_slice %245 {offsets = [0, 128], sizes = [2, 128], strides = [1, 1]} : vector<2x384xf32> to vector<2x128xf32>
    %250 = vector.extract_strided_slice %245 {offsets = [0, 256], sizes = [2, 128], strides = [1, 1]} : vector<2x384xf32> to vector<2x128xf32>
    %251 = arith.mulf %249, %212 : vector<2x128xf32>
    %252 = arith.mulf %248, %247 : vector<2x128xf32>
    %253 = arith.addf %251, %252 : vector<2x128xf32>
    %254 = math.tanh %253 : vector<2x128xf32>
    %255 = arith.mulf %250, %254 : vector<2x128xf32>
    %256 = tpu.concatenate %255, %235 in 1 : vector<2x128xf32>, vector<2x128xf32> -> vector<2x256xf32>
    %cst_80 = arith.constant dense<0.000000e+00> : vector<2x1024xf32>
    %257 = tpu.matmul %256, %66, %cst_80 {dimension_numbers = #tpu.dot_dimension_numbers<[1], [0], [0], [1], [0, 0, 1, 1], [], []>} : vector<2x256xf32>, vector<256x1024xf32>, vector<2x1024xf32> -> vector<2x1024xf32>
    %258 = vector.extract_strided_slice %257 {offsets = [0, 0], sizes = [2, 512], strides = [1, 1]} : vector<2x1024xf32> to vector<2x512xf32>
    %259 = arith.addf %258, %69 : vector<2x512xf32>
    %260 = vector.extract_strided_slice %257 {offsets = [0, 512], sizes = [2, 512], strides = [1, 1]} : vector<2x1024xf32> to vector<2x512xf32>
    %261 = vector.extract_strided_slice %259 {offsets = [0, 0], sizes = [2, 384], strides = [1, 1]} : vector<2x512xf32> to vector<2x384xf32>
    %262 = arith.negf %261 : vector<2x384xf32>
    %263 = math.exp %262 : vector<2x384xf32>
    %cst_81 = arith.constant 1.000000e+00 : f32
    %264 = vector.broadcast %cst_81 : f32 to vector<2x384xf32>
    %265 = arith.addf %264, %263 : vector<2x384xf32>
    %266 = arith.divf %264, %265 : vector<2x384xf32>
    %267 = vector.extract_strided_slice %259 {offsets = [0, 384], sizes = [2, 128], strides = [1, 1]} : vector<2x512xf32> to vector<2x128xf32>
    %268 = math.tanh %267 : vector<2x128xf32>
    %269 = vector.extract_strided_slice %266 {offsets = [0, 0], sizes = [2, 128], strides = [1, 1]} : vector<2x384xf32> to vector<2x128xf32>
    %270 = vector.extract_strided_slice %266 {offsets = [0, 128], sizes = [2, 128], strides = [1, 1]} : vector<2x384xf32> to vector<2x128xf32>
    %271 = vector.extract_strided_slice %266 {offsets = [0, 256], sizes = [2, 128], strides = [1, 1]} : vector<2x384xf32> to vector<2x128xf32>
    %272 = arith.mulf %270, %233 : vector<2x128xf32>
    %273 = arith.mulf %269, %268 : vector<2x128xf32>
    %274 = arith.addf %272, %273 : vector<2x128xf32>
    %275 = math.tanh %274 : vector<2x128xf32>
    %276 = arith.mulf %271, %275 : vector<2x128xf32>
    %c5_i32 = arith.constant 5 : i32
    %277 = arith.index_cast %c5_i32 : i32 to index
    %c0_82 = arith.constant 0 : index
    %c0_83 = arith.constant 0 : index
    %278 = vector.load %arg8[%277, %c0_82, %c0_83] : memref<8x2x512xf32, #tpu.memory_space<vmem>>, vector<1x2x512xf32>
    %279 = vector.shape_cast %278 : vector<1x2x512xf32> to vector<2x512xf32>
    %280 = arith.addf %279, %260 : vector<2x512xf32>
    %281 = vector.extract_strided_slice %280 {offsets = [0, 0], sizes = [2, 384], strides = [1, 1]} : vector<2x512xf32> to vector<2x384xf32>
    %282 = arith.negf %281 : vector<2x384xf32>
    %283 = math.exp %282 : vector<2x384xf32>
    %cst_84 = arith.constant 1.000000e+00 : f32
    %284 = vector.broadcast %cst_84 : f32 to vector<2x384xf32>
    %285 = arith.addf %284, %283 : vector<2x384xf32>
    %286 = arith.divf %284, %285 : vector<2x384xf32>
    %287 = vector.extract_strided_slice %280 {offsets = [0, 384], sizes = [2, 128], strides = [1, 1]} : vector<2x512xf32> to vector<2x128xf32>
    %288 = math.tanh %287 : vector<2x128xf32>
    %289 = vector.extract_strided_slice %286 {offsets = [0, 0], sizes = [2, 128], strides = [1, 1]} : vector<2x384xf32> to vector<2x128xf32>
    %290 = vector.extract_strided_slice %286 {offsets = [0, 128], sizes = [2, 128], strides = [1, 1]} : vector<2x384xf32> to vector<2x128xf32>
    %291 = vector.extract_strided_slice %286 {offsets = [0, 256], sizes = [2, 128], strides = [1, 1]} : vector<2x384xf32> to vector<2x128xf32>
    %292 = arith.mulf %290, %253 : vector<2x128xf32>
    %293 = arith.mulf %289, %288 : vector<2x128xf32>
    %294 = arith.addf %292, %293 : vector<2x128xf32>
    %295 = math.tanh %294 : vector<2x128xf32>
    %296 = arith.mulf %291, %295 : vector<2x128xf32>
    %297 = tpu.concatenate %296, %276 in 1 : vector<2x128xf32>, vector<2x128xf32> -> vector<2x256xf32>
    %cst_85 = arith.constant dense<0.000000e+00> : vector<2x1024xf32>
    %298 = tpu.matmul %297, %66, %cst_85 {dimension_numbers = #tpu.dot_dimension_numbers<[1], [0], [0], [1], [0, 0, 1, 1], [], []>} : vector<2x256xf32>, vector<256x1024xf32>, vector<2x1024xf32> -> vector<2x1024xf32>
    %299 = vector.extract_strided_slice %298 {offsets = [0, 0], sizes = [2, 512], strides = [1, 1]} : vector<2x1024xf32> to vector<2x512xf32>
    %300 = arith.addf %299, %69 : vector<2x512xf32>
    %301 = vector.extract_strided_slice %298 {offsets = [0, 512], sizes = [2, 512], strides = [1, 1]} : vector<2x1024xf32> to vector<2x512xf32>
    %302 = vector.extract_strided_slice %300 {offsets = [0, 0], sizes = [2, 384], strides = [1, 1]} : vector<2x512xf32> to vector<2x384xf32>
    %303 = arith.negf %302 : vector<2x384xf32>
    %304 = math.exp %303 : vector<2x384xf32>
    %cst_86 = arith.constant 1.000000e+00 : f32
    %305 = vector.broadcast %cst_86 : f32 to vector<2x384xf32>
    %306 = arith.addf %305, %304 : vector<2x384xf32>
    %307 = arith.divf %305, %306 : vector<2x384xf32>
    %308 = vector.extract_strided_slice %300 {offsets = [0, 384], sizes = [2, 128], strides = [1, 1]} : vector<2x512xf32> to vector<2x128xf32>
    %309 = math.tanh %308 : vector<2x128xf32>
    %310 = vector.extract_strided_slice %307 {offsets = [0, 0], sizes = [2, 128], strides = [1, 1]} : vector<2x384xf32> to vector<2x128xf32>
    %311 = vector.extract_strided_slice %307 {offsets = [0, 128], sizes = [2, 128], strides = [1, 1]} : vector<2x384xf32> to vector<2x128xf32>
    %312 = vector.extract_strided_slice %307 {offsets = [0, 256], sizes = [2, 128], strides = [1, 1]} : vector<2x384xf32> to vector<2x128xf32>
    %313 = arith.mulf %311, %274 : vector<2x128xf32>
    %314 = arith.mulf %310, %309 : vector<2x128xf32>
    %315 = arith.addf %313, %314 : vector<2x128xf32>
    %316 = math.tanh %315 : vector<2x128xf32>
    %317 = arith.mulf %312, %316 : vector<2x128xf32>
    %c6_i32 = arith.constant 6 : i32
    %318 = arith.index_cast %c6_i32 : i32 to index
    %c0_87 = arith.constant 0 : index
    %c0_88 = arith.constant 0 : index
    %319 = vector.load %arg8[%318, %c0_87, %c0_88] : memref<8x2x512xf32, #tpu.memory_space<vmem>>, vector<1x2x512xf32>
    %320 = vector.shape_cast %319 : vector<1x2x512xf32> to vector<2x512xf32>
    %321 = arith.addf %320, %301 : vector<2x512xf32>
    %322 = vector.extract_strided_slice %321 {offsets = [0, 0], sizes = [2, 384], strides = [1, 1]} : vector<2x512xf32> to vector<2x384xf32>
    %323 = arith.negf %322 : vector<2x384xf32>
    %324 = math.exp %323 : vector<2x384xf32>
    %cst_89 = arith.constant 1.000000e+00 : f32
    %325 = vector.broadcast %cst_89 : f32 to vector<2x384xf32>
    %326 = arith.addf %325, %324 : vector<2x384xf32>
    %327 = arith.divf %325, %326 : vector<2x384xf32>
    %328 = vector.extract_strided_slice %321 {offsets = [0, 384], sizes = [2, 128], strides = [1, 1]} : vector<2x512xf32> to vector<2x128xf32>
    %329 = math.tanh %328 : vector<2x128xf32>
    %330 = vector.extract_strided_slice %327 {offsets = [0, 0], sizes = [2, 128], strides = [1, 1]} : vector<2x384xf32> to vector<2x128xf32>
    %331 = vector.extract_strided_slice %327 {offsets = [0, 128], sizes = [2, 128], strides = [1, 1]} : vector<2x384xf32> to vector<2x128xf32>
    %332 = vector.extract_strided_slice %327 {offsets = [0, 256], sizes = [2, 128], strides = [1, 1]} : vector<2x384xf32> to vector<2x128xf32>
    %333 = arith.mulf %331, %294 : vector<2x128xf32>
    %334 = arith.mulf %330, %329 : vector<2x128xf32>
    %335 = arith.addf %333, %334 : vector<2x128xf32>
    %336 = math.tanh %335 : vector<2x128xf32>
    %337 = arith.mulf %332, %336 : vector<2x128xf32>
    %338 = tpu.concatenate %337, %317 in 1 : vector<2x128xf32>, vector<2x128xf32> -> vector<2x256xf32>
    %cst_90 = arith.constant dense<0.000000e+00> : vector<2x1024xf32>
    %339 = tpu.matmul %338, %66, %cst_90 {dimension_numbers = #tpu.dot_dimension_numbers<[1], [0], [0], [1], [0, 0, 1, 1], [], []>} : vector<2x256xf32>, vector<256x1024xf32>, vector<2x1024xf32> -> vector<2x1024xf32>
    %340 = vector.extract_strided_slice %339 {offsets = [0, 0], sizes = [2, 512], strides = [1, 1]} : vector<2x1024xf32> to vector<2x512xf32>
    %341 = arith.addf %340, %69 : vector<2x512xf32>
    %342 = vector.extract_strided_slice %339 {offsets = [0, 512], sizes = [2, 512], strides = [1, 1]} : vector<2x1024xf32> to vector<2x512xf32>
    %343 = vector.extract_strided_slice %341 {offsets = [0, 0], sizes = [2, 384], strides = [1, 1]} : vector<2x512xf32> to vector<2x384xf32>
    %344 = arith.negf %343 : vector<2x384xf32>
    %345 = math.exp %344 : vector<2x384xf32>
    %cst_91 = arith.constant 1.000000e+00 : f32
    %346 = vector.broadcast %cst_91 : f32 to vector<2x384xf32>
    %347 = arith.addf %346, %345 : vector<2x384xf32>
    %348 = arith.divf %346, %347 : vector<2x384xf32>
    %349 = vector.extract_strided_slice %341 {offsets = [0, 384], sizes = [2, 128], strides = [1, 1]} : vector<2x512xf32> to vector<2x128xf32>
    %350 = math.tanh %349 : vector<2x128xf32>
    %351 = vector.extract_strided_slice %348 {offsets = [0, 0], sizes = [2, 128], strides = [1, 1]} : vector<2x384xf32> to vector<2x128xf32>
    %352 = vector.extract_strided_slice %348 {offsets = [0, 128], sizes = [2, 128], strides = [1, 1]} : vector<2x384xf32> to vector<2x128xf32>
    %353 = vector.extract_strided_slice %348 {offsets = [0, 256], sizes = [2, 128], strides = [1, 1]} : vector<2x384xf32> to vector<2x128xf32>
    %354 = arith.mulf %352, %315 : vector<2x128xf32>
    %355 = arith.mulf %351, %350 : vector<2x128xf32>
    %356 = arith.addf %354, %355 : vector<2x128xf32>
    %357 = math.tanh %356 : vector<2x128xf32>
    %358 = arith.mulf %353, %357 : vector<2x128xf32>
    %c7_i32 = arith.constant 7 : i32
    %359 = arith.index_cast %c7_i32 : i32 to index
    %c0_92 = arith.constant 0 : index
    %c0_93 = arith.constant 0 : index
    %360 = vector.load %arg8[%359, %c0_92, %c0_93] : memref<8x2x512xf32, #tpu.memory_space<vmem>>, vector<1x2x512xf32>
    %361 = vector.shape_cast %360 : vector<1x2x512xf32> to vector<2x512xf32>
    %362 = arith.addf %361, %342 : vector<2x512xf32>
    %363 = vector.extract_strided_slice %362 {offsets = [0, 0], sizes = [2, 384], strides = [1, 1]} : vector<2x512xf32> to vector<2x384xf32>
    %364 = arith.negf %363 : vector<2x384xf32>
    %365 = math.exp %364 : vector<2x384xf32>
    %cst_94 = arith.constant 1.000000e+00 : f32
    %366 = vector.broadcast %cst_94 : f32 to vector<2x384xf32>
    %367 = arith.addf %366, %365 : vector<2x384xf32>
    %368 = arith.divf %366, %367 : vector<2x384xf32>
    %369 = vector.extract_strided_slice %362 {offsets = [0, 384], sizes = [2, 128], strides = [1, 1]} : vector<2x512xf32> to vector<2x128xf32>
    %370 = math.tanh %369 : vector<2x128xf32>
    %371 = vector.extract_strided_slice %368 {offsets = [0, 0], sizes = [2, 128], strides = [1, 1]} : vector<2x384xf32> to vector<2x128xf32>
    %372 = vector.extract_strided_slice %368 {offsets = [0, 128], sizes = [2, 128], strides = [1, 1]} : vector<2x384xf32> to vector<2x128xf32>
    %373 = vector.extract_strided_slice %368 {offsets = [0, 256], sizes = [2, 128], strides = [1, 1]} : vector<2x384xf32> to vector<2x128xf32>
    %374 = arith.mulf %372, %335 : vector<2x128xf32>
    %375 = arith.mulf %371, %370 : vector<2x128xf32>
    %376 = arith.addf %374, %375 : vector<2x128xf32>
    %377 = math.tanh %376 : vector<2x128xf32>
    %378 = arith.mulf %373, %377 : vector<2x128xf32>
    %379 = tpu.concatenate %378, %358 in 1 : vector<2x128xf32>, vector<2x128xf32> -> vector<2x256xf32>
    %cst_95 = arith.constant dense<0.000000e+00> : vector<2x1024xf32>
    %380 = tpu.matmul %379, %66, %cst_95 {dimension_numbers = #tpu.dot_dimension_numbers<[1], [0], [0], [1], [0, 0, 1, 1], [], []>} : vector<2x256xf32>, vector<256x1024xf32>, vector<2x1024xf32> -> vector<2x1024xf32>
    %381 = vector.extract_strided_slice %380 {offsets = [0, 0], sizes = [2, 512], strides = [1, 1]} : vector<2x1024xf32> to vector<2x512xf32>
    %382 = arith.addf %381, %69 : vector<2x512xf32>
    %383 = vector.extract_strided_slice %380 {offsets = [0, 512], sizes = [2, 512], strides = [1, 1]} : vector<2x1024xf32> to vector<2x512xf32>
    %384 = vector.extract_strided_slice %382 {offsets = [0, 0], sizes = [2, 384], strides = [1, 1]} : vector<2x512xf32> to vector<2x384xf32>
    %385 = arith.negf %384 : vector<2x384xf32>
    %386 = math.exp %385 : vector<2x384xf32>
    %cst_96 = arith.constant 1.000000e+00 : f32
    %387 = vector.broadcast %cst_96 : f32 to vector<2x384xf32>
    %388 = arith.addf %387, %386 : vector<2x384xf32>
    %389 = arith.divf %387, %388 : vector<2x384xf32>
    %390 = vector.extract_strided_slice %382 {offsets = [0, 384], sizes = [2, 128], strides = [1, 1]} : vector<2x512xf32> to vector<2x128xf32>
    %391 = math.tanh %390 : vector<2x128xf32>
    %392 = vector.extract_strided_slice %389 {offsets = [0, 0], sizes = [2, 128], strides = [1, 1]} : vector<2x384xf32> to vector<2x128xf32>
    %393 = vector.extract_strided_slice %389 {offsets = [0, 128], sizes = [2, 128], strides = [1, 1]} : vector<2x384xf32> to vector<2x128xf32>
    %394 = vector.extract_strided_slice %389 {offsets = [0, 256], sizes = [2, 128], strides = [1, 1]} : vector<2x384xf32> to vector<2x128xf32>
    %395 = arith.mulf %393, %356 : vector<2x128xf32>
    %396 = arith.mulf %392, %391 : vector<2x128xf32>
    %397 = arith.addf %395, %396 : vector<2x128xf32>
    %398 = math.tanh %397 : vector<2x128xf32>
    %399 = arith.mulf %394, %398 : vector<2x128xf32>
    %c8_i32 = arith.constant 8 : i32
    %c0_97 = arith.constant 0 : index
    %c0_98 = arith.constant 0 : index
    %400 = vector.load %arg5[%c0_97, %c0_98] : memref<1x128xf32, #tpu.memory_space<vmem>>, vector<1x128xf32>
    %401 = vector.broadcast %400 : vector<1x128xf32> to vector<2x128xf32>
    %402 = arith.mulf %399, %401 : vector<2x128xf32>
    %cst_99 = arith.constant dense<0.000000e+00> : vector<2xf32>
    %403 = vector.multi_reduction <add>, %402, %cst_99 [1] : vector<2x128xf32> to vector<2xf32>
    %404 = vector.shape_cast %403 : vector<2xf32> to vector<2x1xf32>
    %c0_100 = arith.constant 0 : index
    %c0_101 = arith.constant 0 : index
    %405 = vector.load %arg6[%c0_100, %c0_101] : memref<1x1xf32, #tpu.memory_space<vmem>>, vector<1x1xf32>
    %406 = vector.broadcast %405 : vector<1x1xf32> to vector<2x1xf32>
    %407 = arith.addf %404, %406 : vector<2x1xf32>
    %c0_102 = arith.constant 0 : index
    %c0_103 = arith.constant 0 : index
    %408 = vector.load %arg7[%c0_102, %c0_103] : memref<2x1xf32, #tpu.memory_space<vmem>>, vector<2x1xf32>
    tpu.vector_store %arg7[%c0_102, %c0_103], %407 {strides = array<i32>} : memref<2x1xf32, #tpu.memory_space<vmem>>, vector<2x1xf32>,
    return
  }
}

</mosaic_0001>

<bundles_post_ra>
// kernel: lstm_model_forward.1
= control target key start
LH: loop header
LB: loop body
LE: loop exit
PB: predicated region body
PF: predicated region fallthrough
CT: control target
= control target key end

     0   :  { %v9041_v3 = vmov 0.0   ;;  %vm55_vm0 = vcmask 64512   ;;  %vm4391_vm1 = vcmask 1041408   ;;  %vm4403_vm2 = vcmask 1024   ;;  %s9033_s1 = inlined_call_operand.vmem [shape: f32[8,512], index: 1, kind: input, shape index: {}]   ;;  %s9034_s0 = inlined_call_operand.vmem [shape: f32[8,2,8], index: 0, kind: input, shape index: {}]   ;;  %s9035_s3 = inlined_call_operand.vmem [shape: f32[256,1024], index: 3, kind: input, shape index: {}]   ;;  %s9036_s2 = inlined_call_operand.vmem [shape: f32[1,512], index: 2, kind: input, shape index: {}]   ;;  %s9037_s4 = inlined_call_operand.vmem [shape: f32[1,512], index: 4, kind: input, shape index: {}]   ;;  %s9038_s6 = inlined_call_operand.<no memory space> [shape: f32[1,1], index: 6, kind: input, shape index: {}]   ;;  %s9039_s5 = inlined_call_operand.vmem [shape: f32[1,128], index: 5, kind: input, shape index: {}]   ;;  %s9040_s7 = inlined_call_operand.vmem [shape: f32[2,1], index: 7, kind: output, shape index: {}]  }
   0x1   :  { %v6625_v0 = vld [vmem:[%s9033_s1 + $0x8] sm:$0xff]  ;;  %v6630_v1 = vld [vmem:[%s9033_s1 + $0x18] sm:$0xff]  ;;  %v6635_v2 = vld [vmem:[%s9033_s1] sm:$0xff]  ;;  %123 = vmatprep.mubr.f32.mxu0 %v9041_v3  ;;  %194 = vmatprep.mubr.f32.mxu1 %v9041_v3 }
   0x2   :  { %59 = vmatprep.subr.mxu0 %v6625_v0  ;;  %130 = vmatprep.subr.mxu1 %v6630_v1  ;;  %v6644_v4 = vld [vmem:[%s9033_s1 + $0x10] sm:$0xff]  ;;  %v33_v5 = vld [vmem:[%s9034_s0] sm:$0x3]  ;;  %v4411_v6 = vld [vmem:[%s9034_s0 + $0x2] sm:$0x3] }
   0x3   :  { %60 = vmatpush1.msra.mxu0 %v6635_v2  ;;  %131 = vmatpush1.msra.mxu1 %v6644_v4  ;;  %v4414_v7 = vld [vmem:[%s9034_s0 + $0x4] sm:$0x3]  ;;  %v4417_v8 = vld [vmem:[%s9034_s0 + $0x6] sm:$0x3]  ;;  %v4420_v9 = vld [vmem:[%s9034_s0 + $0x8] sm:$0x3] }
   0x4   :  { %4409 = vmatmul.mubr.msk.f32.vlgmr.msra.gmra.mrb[0].mxu0 %vm55_vm0, %v33_v5  ;;  %4410 = vmatmul.mubr.msk.f32.vlgmr.msra.gmra.mrb[0].mxu1 %vm55_vm0, %v33_v5  ;;  %v4423_v10 = vld [vmem:[%s9034_s0 + $0xa] sm:$0x3]  ;;  %v4426_v11 = vld [vmem:[%s9034_s0 + $0xc] sm:$0x3]  ;;  %v1424_v14 = vld [vmem:[%s9035_s3 + $0x18] sm:$0xff] }
   0x5   :  { %229 = vmatprep.subr.mxu0 %v6625_v0  ;;  %300 = vmatprep.subr.mxu1 %v6630_v1  ;;  %v1422_v12 = vld [vmem:[%s9035_s3 + $0x8] sm:$0xff]  ;;  %v1432_v15 = vld [vmem:[%s9035_s3 + $0x58] sm:$0xff]  ;;  %v1421_v16 = vld [vmem:[%s9035_s3] sm:$0xff] }
   0x6   :  { %230 = vmatpush1.msra.mxu0 %v6635_v2  ;;  %301 = vmatpush1.msra.mxu1 %v6644_v4  ;;  %v1430_v13 = vld [vmem:[%s9035_s3 + $0x48] sm:$0xff]  ;;  %v1429_v17 = vld [vmem:[%s9035_s3 + $0x40] sm:$0xff]  ;;  %v1423_v18 = vld [vmem:[%s9035_s3 + $0x10] sm:$0xff]  ;;  %v6762_v26 = vpack.c.bf16 %v1432_v15, %v1424_v14 }
   0x7   :  { %293 = vmatprep.mubr.f32.mxu0 %v9041_v3  ;;  %364 = vmatprep.mubr.f32.mxu1 %v9041_v3  ;;  %v1431_v19 = vld [vmem:[%s9035_s3 + $0x50] sm:$0xff]  ;;  %v1438_v20 = vld [vmem:[%s9035_s3 + $0x88] sm:$0xff]  ;;  %v1440_v22 = vld [vmem:[%s9035_s3 + $0x98] sm:$0xff]  ;;  %v6760_v25 = vpack.c.bf16 %v1430_v13, %v1422_v12  ;;  %v6766_v27 = vpack.c.bf16 %v1429_v17, %v1421_v16 }
   0x8   :  { %4412 = vmatmul.mubr.msk.f32.vlgmr.msra.gmra.mrb[2].mxu0 %vm55_vm0, %v4411_v6  ;;  %4413 = vmatmul.mubr.msk.f32.vlgmr.msra.gmra.mrb[2].mxu1 %vm55_vm0, %v4411_v6  ;;  %v1446_v21 = vld [vmem:[%s9035_s3 + $0xc8] sm:$0xff]  ;;  %v1448_v23 = vld [vmem:[%s9035_s3 + $0xd8] sm:$0xff]  ;;  %9333 = vst [vmem:[#allocation5_spill] sm:$0xff] %v6762_v26  ;;  %v6768_v28 = vpack.c.bf16 %v1431_v19, %v1423_v18  ;;  %v1437_v29 = vld [vmem:[%s9035_s3 + $0x80] sm:$0xff] }
   0x9   :  { %400 = vmatprep.subr.mxu0 %v6625_v0  ;;  %471 = vmatprep.subr.mxu1 %v6630_v1  ;;  %v4429_v24 = vld [vmem:[%s9034_s0 + $0xe] sm:$0x3]  ;;  %9332 = vst [vmem:[#allocation4_spill] sm:$0xff] %v6760_v25  ;;  %9334 = vst [vmem:[#allocation6_spill] sm:$0xff] %v6766_v27  ;;  %v1445_v30 = vld [vmem:[%s9035_s3 + $0xc0] sm:$0xff]  ;;  %v6778_v31 = vpack.c.bf16 %v1446_v21, %v1438_v20  ;;  %v6780_v32 = vpack.c.bf16 %v1448_v23, %v1440_v22 }
   0xa   :  { %401 = vmatpush1.msra.mxu0 %v6635_v2  ;;  %472 = vmatpush1.msra.mxu1 %v6644_v4  ;;  %9335 = vst [vmem:[#allocation7_spill] sm:$0xff] %v6768_v28  ;;  %v1439_v33 = vld [vmem:[%s9035_s3 + $0x90] sm:$0xff]  ;;  %v1454_v35 = vld [vmem:[%s9035_s3 + $0x108] sm:$0xff]  ;;  %v1456_v37 = vld [vmem:[%s9035_s3 + $0x118] sm:$0xff]  ;;  %v6806_v39 = vpack.c.bf16 %v1445_v30, %v1437_v29 }
   0xb   :  { %464 = vmatprep.mubr.f32.mxu0 %v9041_v3  ;;  %535 = vmatprep.mubr.f32.mxu1 %v9041_v3  ;;  %9336 = vst [vmem:[#allocation8_spill] sm:$0xff] %v6778_v31  ;;  %9337 = vst [vmem:[#allocation9_spill] sm:$0xff] %v6780_v32  ;;  %v1447_v34 = vld [vmem:[%s9035_s3 + $0xd0] sm:$0xff]  ;;  %v1462_v36 = vld [vmem:[%s9035_s3 + $0x148] sm:$0xff] }
   0xc   :  { %4415 = vmatmul.mubr.msk.f32.vlgmr.msra.gmra.mrb[4].mxu0 %vm55_vm0, %v4414_v7  ;;  %4416 = vmatmul.mubr.msk.f32.vlgmr.msra.gmra.mrb[4].mxu1 %vm55_vm0, %v4414_v7  ;;  %v1464_v38 = vld [vmem:[%s9035_s3 + $0x158] sm:$0xff]  ;;  %9338 = vst [vmem:[#allocation10_spill] sm:$0xff] %v6806_v39  ;;  %v6808_v40 = vpack.c.bf16 %v1447_v34, %v1439_v33  ;;  %v1453_v41 = vld [vmem:[%s9035_s3 + $0x100] sm:$0xff]  ;;  %v6815_v42 = vpack.c.bf16 %v1462_v36, %v1454_v35  ;;  %v1455_v45 = vld [vmem:[%s9035_s3 + $0x110] sm:$0xff] }
   0xd   :  { %571 = vmatprep.subr.mxu0 %v6625_v0  ;;  %642 = vmatprep.subr.mxu1 %v6630_v1  ;;  %v6817_v43 = vpack.c.bf16 %v1464_v38, %v1456_v37  ;;  %v1461_v44 = vld [vmem:[%s9035_s3 + $0x140] sm:$0xff]  ;;  %v1463_v46 = vld [vmem:[%s9035_s3 + $0x150] sm:$0xff]  ;;  %v1470_v49 = vld [vmem:[%s9035_s3 + $0x188] sm:$0xff] }
   0xe   :  { %572 = vmatpush1.msra.mxu0 %v6635_v2  ;;  %643 = vmatpush1.msra.mxu1 %v6644_v4  ;;  %9339 = vst [vmem:[#allocation11_spill] sm:$0xff] %v6808_v40  ;;  %9340 = vst [vmem:[#allocation12_spill] sm:$0xff] %v6815_v42  ;;  %v6832_v47 = vpack.c.bf16 %v1461_v44, %v1453_v41  ;;  %v6834_v48 = vpack.c.bf16 %v1463_v46, %v1455_v45  ;;  %v1478_v50 = vld [vmem:[%s9035_s3 + $0x1c8] sm:$0xff]  ;;  %v1472_v51 = vld [vmem:[%s9035_s3 + $0x198] sm:$0xff] }
   0xf   :  { %635 = vmatprep.mubr.f32.mxu0 %v9041_v3  ;;  %706 = vmatprep.mubr.f32.mxu1 %v9041_v3  ;;  %9341 = vst [vmem:[#allocation13_spill] sm:$0xff] %v6817_v43  ;;  %v6849_v52 = vpack.c.bf16 %v1478_v50, %v1470_v49  ;;  %v1480_v53 = vld [vmem:[%s9035_s3 + $0x1d8] sm:$0xff]  ;;  %v1469_v54 = vld [vmem:[%s9035_s3 + $0x180] sm:$0xff]  ;;  %v1471_v58 = vld [vmem:[%s9035_s3 + $0x190] sm:$0xff] }
  0x10   :  { %4418 = vmatmul.mubr.msk.f32.vlgmr.msra.gmra.mrb[6].mxu0 %vm55_vm0, %v4417_v8  ;;  %4419 = vmatmul.mubr.msk.f32.vlgmr.msra.gmra.mrb[6].mxu1 %vm55_vm0, %v4417_v8  ;;  %9342 = vst [vmem:[#allocation14_spill] sm:$0xff] %v6832_v47  ;;  %9343 = vst [vmem:[#allocation15_spill] sm:$0xff] %v6834_v48  ;;  %v1477_v55 = vld [vmem:[%s9035_s3 + $0x1c0] sm:$0xff]  ;;  %v6860_v56 = vpack.c.bf16 %v1480_v53, %v1472_v51  ;;  %v1479_v59 = vld [vmem:[%s9035_s3 + $0x1d0] sm:$0xff] }
  0x11   :  { %742 = vmatprep.subr.mxu0 %v6625_v0  ;;  %813 = vmatprep.subr.mxu1 %v6630_v1  ;;  %9344 = vst [vmem:[#allocation16_spill] sm:$0xff] %v6849_v52  ;;  %v6862_v57 = vpack.c.bf16 %v1477_v55, %v1469_v54  ;;  %v6871_v60 = vpack.c.bf16 %v1479_v59, %v1471_v58  ;;  %v1486_v61 = vld [vmem:[%s9035_s3 + $0x208] sm:$0xff]  ;;  %v1488_v63 = vld [vmem:[%s9035_s3 + $0x218] sm:$0xff]  ;;  %v1487_v7 = vld [vmem:[%s9035_s3 + $0x210] sm:$0xff] }
  0x12   :  { %743 = vmatpush1.msra.mxu0 %v6635_v2  ;;  %814 = vmatpush1.msra.mxu1 %v6644_v4  ;;  %9345 = vst [vmem:[#allocation17_spill] sm:$0xff] %v6860_v56  ;;  %v1494_v62 = vld [vmem:[%s9035_s3 + $0x248] sm:$0xff]  ;;  %v1495_v8 = vld [vmem:[%s9035_s3 + $0x250] sm:$0xff]  ;;  %v1504_v12 = vld [vmem:[%s9035_s3 + $0x298] sm:$0xff] }
  0x13   :  { %806 = vmatprep.mubr.f32.mxu0 %v9041_v3  ;;  %877 = vmatprep.mubr.f32.mxu1 %v9041_v3  ;;  %9346 = vst [vmem:[#allocation18_spill] sm:$0xff] %v6862_v57  ;;  %9347 = vst [vmem:[#allocation19_spill] sm:$0xff] %v6871_v60  ;;  %v1512_v14 = vld [vmem:[%s9035_s3 + $0x2d8] sm:$0xff]  ;;  %v1501_v15 = vld [vmem:[%s9035_s3 + $0x280] sm:$0xff] }
  0x14   :  { %4421 = vmatmul.mubr.msk.f32.vlgmr.msra.gmra.mrb[8].mxu0 %vm55_vm0, %v4420_v9  ;;  %4422 = vmatmul.mubr.msk.f32.vlgmr.msra.gmra.mrb[8].mxu1 %vm55_vm0, %v4420_v9  ;;  %v6907_v9 = vpack.c.bf16 %v1495_v8, %v1487_v7  ;;  %v1509_v16 = vld [vmem:[%s9035_s3 + $0x2c0] sm:$0xff]  ;;  %v6932_v17 = vpack.c.bf16 %v1512_v14, %v1504_v12  ;;  %v1503_v19 = vld [vmem:[%s9035_s3 + $0x290] sm:$0xff]  ;;  %v1518_v22 = vld [vmem:[%s9035_s3 + $0x308] sm:$0xff] }
  0x15   :  { %913 = vmatprep.subr.mxu0 %v6625_v0  ;;  %984 = vmatprep.subr.mxu1 %v6630_v1  ;;  %v6934_v18 = vpack.c.bf16 %v1509_v16, %v1501_v15  ;;  %v1511_v20 = vld [vmem:[%s9035_s3 + $0x2d0] sm:$0xff]  ;;  %v1526_v23 = vld [vmem:[%s9035_s3 + $0x348] sm:$0xff]  ;;  %v1528_v30 = vld [vmem:[%s9035_s3 + $0x358] sm:$0xff] }
  0x16   :  { %914 = vmatpush1.msra.mxu0 %v6635_v2  ;;  %985 = vmatpush1.msra.mxu1 %v6644_v4  ;;  %9351 = vst [vmem:[#allocation23_spill] sm:$0xff] %v6907_v9  ;;  %9353 = vst [vmem:[#allocation25_spill] sm:$0xff] %v6932_v17  ;;  %v6943_v21 = vpack.c.bf16 %v1511_v20, %v1503_v19  ;;  %v6957_v29 = vpack.c.bf16 %v1526_v23, %v1518_v22  ;;  %v1517_v33 = vld [vmem:[%s9035_s3 + $0x300] sm:$0xff]  ;;  %v1519_v37 = vld [vmem:[%s9035_s3 + $0x310] sm:$0xff] }
  0x17   :  { %977 = vmatprep.mubr.f32.mxu0 %v9041_v3  ;;  %1048 = vmatprep.mubr.f32.mxu1 %v9041_v3  ;;  %9354 = vst [vmem:[#allocation26_spill] sm:$0xff] %v6934_v18  ;;  %v1525_v34 = vld [vmem:[%s9035_s3 + $0x340] sm:$0xff]  ;;  %v1527_v38 = vld [vmem:[%s9035_s3 + $0x350] sm:$0xff]  ;;  %v1534_v44 = vld [vmem:[%s9035_s3 + $0x388] sm:$0xff] }
  0x18   :  { %4424 = vmatmul.mubr.msk.f32.vlgmr.msra.gmra.mrb[10].mxu0 %vm55_vm0, %v4423_v10  ;;  %4425 = vmatmul.mubr.msk.f32.vlgmr.msra.gmra.mrb[10].mxu1 %vm55_vm0, %v4423_v10  ;;  %v1502_v10 = vld [vmem:[%s9035_s3 + $0x288] sm:$0xff]  ;;  %9355 = vst [vmem:[#allocation27_spill] sm:$0xff] %v6943_v21  ;;  %9356 = vst [vmem:[#allocation28_spill] sm:$0xff] %v6957_v29  ;;  %v6970_v36 = vpack.c.bf16 %v1525_v34, %v1517_v33  ;;  %v6979_v41 = vpack.c.bf16 %v1527_v38, %v1519_v37  ;;  %v1536_v46 = vld [vmem:[%s9035_s3 + $0x398] sm:$0xff] }
  0x19   :  { %1084 = vmatprep.subr.mxu0 %v6625_v0  ;;  %1155 = vmatprep.subr.mxu1 %v6630_v1  ;;  %v1542_v45 = vld [vmem:[%s9035_s3 + $0x3c8] sm:$0xff]  ;;  %v1544_v50 = vld [vmem:[%s9035_s3 + $0x3d8] sm:$0xff]  ;;  %v1533_v51 = vld [vmem:[%s9035_s3 + $0x380] sm:$0xff] }
  0x1a   :  { %1085 = vmatpush1.msra.mxu0 %v6635_v2  ;;  %1156 = vmatpush1.msra.mxu1 %v6644_v4  ;;  %9358 = vst [vmem:[#allocation30_spill] sm:$0xff] %v6970_v36  ;;  %9359 = vst [vmem:[#allocation31_spill] sm:$0xff] %v6979_v41  ;;  %v6993_v49 = vpack.c.bf16 %v1542_v45, %v1534_v44  ;;  %v1541_v53 = vld [vmem:[%s9035_s3 + $0x3c0] sm:$0xff]  ;;  %v7004_v54 = vpack.c.bf16 %v1544_v50, %v1536_v46  ;;  %v1535_v58 = vld [vmem:[%s9035_s3 + $0x390] sm:$0xff] }
  0x1b   :  { %1148 = vmatprep.mubr.f32.mxu0 %v9041_v3  ;;  %1219 = vmatprep.mubr.f32.mxu1 %v9041_v3  ;;  %v7006_v55 = vpack.c.bf16 %v1541_v53, %v1533_v51  ;;  %v1543_v59 = vld [vmem:[%s9035_s3 + $0x3d0] sm:$0xff]  ;;  %v1549_v7 = vld [vmem:[%s9035_s3 + $0x400] sm:$0xff]  ;;  %v1566_v16 = vld [vmem:[%s9035_s3 + $0x488] sm:$0xff] }
  0x1c   :  { %4427 = vmatmul.mubr.msk.f32.vlgmr.msra.gmra.mrb[12].mxu0 %vm55_vm0, %v4426_v11  ;;  %4428 = vmatmul.mubr.msk.f32.vlgmr.msra.gmra.mrb[12].mxu1 %vm55_vm0, %v4426_v11  ;;  %v1510_v11 = vld [vmem:[%s9035_s3 + $0x2c8] sm:$0xff]  ;;  %9360 = vst [vmem:[#allocation32_spill] sm:$0xff] %v6993_v49  ;;  %9361 = vst [vmem:[#allocation33_spill] sm:$0xff] %v7004_v54  ;;  %v1557_v8 = vld [vmem:[%s9035_s3 + $0x440] sm:$0xff] }
  0x1d   :  { %1255 = vmatprep.subr.mxu0 %v6625_v0  ;;  %1326 = vmatprep.subr.mxu1 %v6630_v1  ;;  %v6885_v0 = vpack.c.bf16 %v1494_v62, %v1486_v61  ;;  %v1496_v1 = vld [vmem:[%s9035_s3 + $0x258] sm:$0xff]  ;;  %v6921_v13 = vpack.c.bf16 %v1510_v11, %v1502_v10  ;;  %9362 = vst [vmem:[#allocation34_spill] sm:$0xff] %v7006_v55  ;;  %v1550_v62 = vld [vmem:[%s9035_s3 + $0x408] sm:$0xff]  ;;  %v1551_v12 = vld [vmem:[%s9035_s3 + $0x410] sm:$0xff] }
  0x1e   :  { %1256 = vmatpush1.msra.mxu0 %v6635_v2  ;;  %1327 = vmatpush1.msra.mxu1 %v6644_v4  ;;  %v1485_v2 = vld [vmem:[%s9035_s3 + $0x200] sm:$0xff]  ;;  %v6896_v5 = vpack.c.bf16 %v1496_v1, %v1488_v63  ;;  %v7015_v61 = vpack.c.bf16 %v1543_v59, %v1535_v58  ;;  %v1558_v63 = vld [vmem:[%s9035_s3 + $0x448] sm:$0xff]  ;;  %v1552_v1 = vld [vmem:[%s9035_s3 + $0x418] sm:$0xff]  ;;  %v7042_v11 = vpack.c.bf16 %v1557_v8, %v1549_v7 }
  0x1f   :  { %1319 = vmatprep.mubr.f32.mxu0 %v9041_v3  ;;  %1390 = vmatprep.mubr.f32.mxu1 %v9041_v3  ;;  %9348 = vst [vmem:[#allocation20_spill] sm:$0xff] %v6885_v0  ;;  %v1493_v4 = vld [vmem:[%s9035_s3 + $0x240] sm:$0xff]  ;;  %9352 = vst [vmem:[#allocation24_spill] sm:$0xff] %v6921_v13  ;;  %v1559_v14 = vld [vmem:[%s9035_s3 + $0x450] sm:$0xff] }
  0x20   :  { %4430 = vmatmul.mubr.msk.f32.vlgmr.msra.gmra.mrb[14].mxu0 %vm55_vm0, %v4429_v24  ;;  %4431 = vmatmul.mubr.msk.f32.vlgmr.msra.gmra.mrb[14].mxu1 %vm55_vm0, %v4429_v24  ;;  %9349 = vst [vmem:[#allocation21_spill] sm:$0xff] %v6896_v5  ;;  %v6898_v6 = vpack.c.bf16 %v1493_v4, %v1485_v2  ;;  %v1520_v24 = vld [vmem:[%s9035_s3 + $0x318] sm:$0xff]  ;;  %9363 = vst [vmem:[#allocation35_spill] sm:$0xff] %v7015_v61  ;;  %v7029_v2 = vpack.c.bf16 %v1558_v63, %v1550_v62  ;;  %v1574_v19 = vld [vmem:[%s9035_s3 + $0x4c8] sm:$0xff] }
  0x21   :  { %4467 = vmatprep.subr.bf16.mxu0 %v6760_v25  ;;  %4531 = vmatprep.subr.bf16.mxu1 %v6762_v26  ;;  %v6968_v35 = vpack.c.bf16 %v1528_v30, %v1520_v24  ;;  %v1560_v4 = vld [vmem:[%s9035_s3 + $0x458] sm:$0xff]  ;;  %9366 = vst [vmem:[#allocation38_spill] sm:$0xff] %v7042_v11  ;;  %v7051_v15 = vpack.c.bf16 %v1559_v14, %v1551_v12  ;;  %v1565_v24 = vld [vmem:[%s9035_s3 + $0x480] sm:$0xff]  ;;  %v1567_v37 = vld [vmem:[%s9035_s3 + $0x490] sm:$0xff] }
  0x22   :  { %4469 = vmatpush1.bf16.msra.mxu0 %v6766_v27  ;;  %4533 = vmatpush1.bf16.msra.mxu1 %v6768_v28  ;;  %9350 = vst [vmem:[#allocation22_spill] sm:$0xff] %v6898_v6  ;;  %9364 = vst [vmem:[#allocation36_spill] sm:$0xff] %v7029_v2  ;;  %v7040_v10 = vpack.c.bf16 %v1560_v4, %v1552_v1  ;;  %v1568_v20 = vld [vmem:[%s9035_s3 + $0x498] sm:$0xff]  ;;  %v7065_v22 = vpack.c.bf16 %v1574_v19, %v1566_v16  ;;  %v1573_v30 = vld [vmem:[%s9035_s3 + $0x4c0] sm:$0xff] }
  0x23   :  { %4471 = vmatprep.subr.bf16.mxu0 %v6778_v31  ;;  %4535 = vmatprep.subr.bf16.mxu1 %v6780_v32  ;;  %9357 = vst [vmem:[#allocation29_spill] sm:$0xff] %v6968_v35  ;;  %9367 = vst [vmem:[#allocation39_spill] sm:$0xff] %v7051_v15  ;;  %v1576_v23 = vld [vmem:[%s9035_s3 + $0x4d8] sm:$0xff]  ;;  %v7078_v34 = vpack.c.bf16 %v1573_v30, %v1565_v24  ;;  %v1575_v38 = vld [vmem:[%s9035_s3 + $0x4d0] sm:$0xff] }
  0x24   :  { %1785 = vmatprep.mubr.f32.mxu0 %v9041_v3  ;;  %1856 = vmatprep.mubr.f32.mxu1 %v9041_v3  ;;  %9365 = vst [vmem:[#allocation37_spill] sm:$0xff] %v7040_v10  ;;  %9368 = vst [vmem:[#allocation40_spill] sm:$0xff] %v7065_v22  ;;  %v7076_v33 = vpack.c.bf16 %v1576_v23, %v1568_v20  ;;  %v7087_v44 = vpack.c.bf16 %v1575_v38, %v1567_v37  ;;  %v1582_v45 = vld [vmem:[%s9035_s3 + $0x508] sm:$0xff]  ;;  %v1584_v50 = vld [vmem:[%s9035_s3 + $0x518] sm:$0xff] }
  0x25   :  { %9370 = vst [vmem:[#allocation42_spill] sm:$0xff] %v7078_v34  ;;  %v1590_v46 = vld [vmem:[%s9035_s3 + $0x548] sm:$0xff]  ;;  %v1592_v53 = vld [vmem:[%s9035_s3 + $0x558] sm:$0xff]  ;;  %v1581_v58 = vld [vmem:[%s9035_s3 + $0x500] sm:$0xff] }
  0x26   :  { %4473 = vmatpush1.bf16.msra.mxu0 %v6806_v39  ;;  %4537 = vmatpush1.bf16.msra.mxu1 %v6808_v40  ;;  %9369 = vst [vmem:[#allocation41_spill] sm:$0xff] %v7076_v33  ;;  %9371 = vst [vmem:[#allocation43_spill] sm:$0xff] %v7087_v44  ;;  %v7101_v51 = vpack.c.bf16 %v1590_v46, %v1582_v45  ;;  %v1589_v59 = vld [vmem:[%s9035_s3 + $0x540] sm:$0xff]  ;;  %v7112_v62 = vpack.c.bf16 %v1592_v53, %v1584_v50  ;;  %v1583_v1 = vld [vmem:[%s9035_s3 + $0x510] sm:$0xff] }
  0x27   :  { %4475 = vmatprep.subr.bf16.mxu0 %v6815_v42  ;;  %4539 = vmatprep.subr.bf16.mxu1 %v6817_v43  ;;  %v7114_v63 = vpack.c.bf16 %v1589_v59, %v1581_v58  ;;  %v1591_v4 = vld [vmem:[%s9035_s3 + $0x550] sm:$0xff]  ;;  %v1598_v8 = vld [vmem:[%s9035_s3 + $0x588] sm:$0xff]  ;;  %v1600_v14 = vld [vmem:[%s9035_s3 + $0x598] sm:$0xff] }
  0x28   :  { %9372 = vst [vmem:[#allocation44_spill] sm:$0xff] %v7101_v51  ;;  %9373 = vst [vmem:[#allocation45_spill] sm:$0xff] %v7112_v62  ;;  %v7123_v7 = vpack.c.bf16 %v1591_v4, %v1583_v1  ;;  %v1606_v12 = vld [vmem:[%s9035_s3 + $0x5c8] sm:$0xff]  ;;  %v1608_v19 = vld [vmem:[%s9035_s3 + $0x5d8] sm:$0xff] }
  0x29   :  { %9374 = vst [vmem:[#allocation46_spill] sm:$0xff] %v7114_v63  ;;  %v7137_v16 = vpack.c.bf16 %v1606_v12, %v1598_v8  ;;  %v1597_v20 = vld [vmem:[%s9035_s3 + $0x580] sm:$0xff]  ;;  %v7148_v24 = vpack.c.bf16 %v1608_v19, %v1600_v14  ;;  %v1599_v37 = vld [vmem:[%s9035_s3 + $0x590] sm:$0xff]  ;;  %v1614_v46 = vld [vmem:[%s9035_s3 + $0x608] sm:$0xff] }
  0x2a   :  { %4477 = vmatpush1.bf16.msra.mxu0 %v6832_v47  ;;  %4541 = vmatpush1.bf16.msra.mxu1 %v6834_v48  ;;  %9375 = vst [vmem:[#allocation47_spill] sm:$0xff] %v7123_v7  ;;  %v1605_v23 = vld [vmem:[%s9035_s3 + $0x5c0] sm:$0xff]  ;;  %v1607_v38 = vld [vmem:[%s9035_s3 + $0x5d0] sm:$0xff]  ;;  %v1622_v50 = vld [vmem:[%s9035_s3 + $0x648] sm:$0xff] }
  0x2b   :  { %4479 = vmatprep.subr.bf16.mxu0 %v6849_v52  ;;  %4543 = vmatprep.subr.bf16.mxu1 %v6860_v56  ;;  %9376 = vst [vmem:[#allocation48_spill] sm:$0xff] %v7137_v16  ;;  %9377 = vst [vmem:[#allocation49_spill] sm:$0xff] %v7148_v24  ;;  %v7150_v30 = vpack.c.bf16 %v1605_v23, %v1597_v20  ;;  %v7159_v45 = vpack.c.bf16 %v1607_v38, %v1599_v37  ;;  %v1616_v53 = vld [vmem:[%s9035_s3 + $0x618] sm:$0xff]  ;;  %v1613_v1 = vld [vmem:[%s9035_s3 + $0x600] sm:$0xff] }
  0x2c   :  { %v7173_v58 = vpack.c.bf16 %v1622_v50, %v1614_v46  ;;  %v1624_v59 = vld [vmem:[%s9035_s3 + $0x658] sm:$0xff]  ;;  %v1621_v4 = vld [vmem:[%s9035_s3 + $0x640] sm:$0xff]  ;;  %v1615_v14 = vld [vmem:[%s9035_s3 + $0x610] sm:$0xff] }
  0x2d   :  { %9378 = vst [vmem:[#allocation50_spill] sm:$0xff] %v7150_v30  ;;  %9379 = vst [vmem:[#allocation51_spill] sm:$0xff] %v7159_v45  ;;  %v7184_v8 = vpack.c.bf16 %v1624_v59, %v1616_v53  ;;  %v7186_v12 = vpack.c.bf16 %v1621_v4, %v1613_v1  ;;  %v1623_v19 = vld [vmem:[%s9035_s3 + $0x650] sm:$0xff]  ;;  %v1630_v20 = vld [vmem:[%s9035_s3 + $0x688] sm:$0xff] }
  0x2e   :  { %4481 = vmatpush1.bf16.msra.mxu0 %v6862_v57  ;;  %4545 = vmatpush1.bf16.msra.mxu1 %v6871_v60  ;;  %9380 = vst [vmem:[#allocation52_spill] sm:$0xff] %v7173_v58  ;;  %v7198_v23 = vpack.c.bf16 %v1623_v19, %v1615_v14  ;;  %v1638_v37 = vld [vmem:[%s9035_s3 + $0x6c8] sm:$0xff]  ;;  %v1632_v38 = vld [vmem:[%s9035_s3 + $0x698] sm:$0xff]  ;;  %v1629_v59 = vld [vmem:[%s9035_s3 + $0x680] sm:$0xff] }
  0x2f   :  { %4483 = vmatprep.subr.bf16.mxu0 %v6885_v0  ;;  %4547 = vmatprep.subr.bf16.mxu1 %v6896_v5  ;;  %9381 = vst [vmem:[#allocation53_spill] sm:$0xff] %v7184_v8  ;;  %9382 = vst [vmem:[#allocation54_spill] sm:$0xff] %v7186_v12  ;;  %v1640_v46 = vld [vmem:[%s9035_s3 + $0x6d8] sm:$0xff]  ;;  %v7211_v50 = vpack.c.bf16 %v1638_v37, %v1630_v20  ;;  %v1637_v1 = vld [vmem:[%s9035_s3 + $0x6c0] sm:$0xff] }
  0x30   :  { %9383 = vst [vmem:[#allocation55_spill] sm:$0xff] %v7198_v23  ;;  %v7213_v53 = vpack.c.bf16 %v1640_v46, %v1632_v38  ;;  %v1631_v4 = vld [vmem:[%s9035_s3 + $0x690] sm:$0xff]  ;;  %v7225_v14 = vpack.c.bf16 %v1637_v1, %v1629_v59  ;;  %v1646_v20 = vld [vmem:[%s9035_s3 + $0x708] sm:$0xff]  ;;  %v1648_v59 = vld [vmem:[%s9035_s3 + $0x718] sm:$0xff] }
  0x31   :  { %9384 = vst [vmem:[#allocation56_spill] sm:$0xff] %v7211_v50  ;;  %v1639_v19 = vld [vmem:[%s9035_s3 + $0x6d0] sm:$0xff]  ;;  %v1654_v37 = vld [vmem:[%s9035_s3 + $0x748] sm:$0xff]  ;;  %v1656_v1 = vld [vmem:[%s9035_s3 + $0x758] sm:$0xff] }
  0x32   :  { %4485 = vmatpush1.bf16.msra.mxu0 %v6898_v6  ;;  %4549 = vmatpush1.bf16.msra.mxu1 %v6907_v9  ;;  %9385 = vst [vmem:[#allocation57_spill] sm:$0xff] %v7213_v53  ;;  %9386 = vst [vmem:[#allocation58_spill] sm:$0xff] %v7225_v14  ;;  %v7238_v38 = vpack.c.bf16 %v1639_v19, %v1631_v4  ;;  %v7240_v46 = vpack.c.bf16 %v1654_v37, %v1646_v20  ;;  %v1645_v3 = vld [vmem:[%s9035_s3 + $0x700] sm:$0xff]  ;;  %v1647_v19 = vld [vmem:[%s9035_s3 + $0x710] sm:$0xff] }
  0x33   :  { %4487 = vmatprep.subr.bf16.mxu0 %v6921_v13  ;;  %4551 = vmatprep.subr.bf16.mxu1 %v6932_v17  ;;  %v1653_v4 = vld [vmem:[%s9035_s3 + $0x740] sm:$0xff]  ;;  %v1655_v20 = vld [vmem:[%s9035_s3 + $0x750] sm:$0xff] }
  0x34   :  { %9387 = vst [vmem:[#allocation59_spill] sm:$0xff] %v7238_v38  ;;  %9388 = vst [vmem:[#allocation60_spill] sm:$0xff] %v7240_v46  ;;  %v7263_v37 = vpack.c.bf16 %v1653_v4, %v1645_v3  ;;  %v1672_v4 = vld [vmem:[%s9035_s3 + $0x7d8] sm:$0xff] }
  0x36   :  { %4489 = vmatpush1.bf16.msra.mxu0 %v6934_v18  ;;  %4553 = vmatpush1.bf16.msra.mxu1 %v6943_v21  ;;  %9390 = vst [vmem:[#allocation62_spill] sm:$0xff] %v7263_v37 }
  0x37   :  { %4491 = vmatprep.subr.bf16.mxu0 %v6957_v29  ;;  %4555 = vmatprep.subr.bf16.mxu1 %v6968_v35 }
  0x3a   :  { %4493 = vmatpush1.bf16.msra.mxu0 %v6970_v36  ;;  %4557 = vmatpush1.bf16.msra.mxu1 %v6979_v41 }
  0x3b   :  { %4495 = vmatprep.subr.bf16.mxu0 %v6993_v49  ;;  %4559 = vmatprep.subr.bf16.mxu1 %v7004_v54 }
  0x3e   :  { %4497 = vmatpush1.bf16.msra.mxu0 %v7006_v55  ;;  %4561 = vmatpush1.bf16.msra.mxu1 %v7015_v61 }
  0x3f   :  { %4499 = vmatprep.subr.bf16.mxu0 %v7029_v2  ;;  %4563 = vmatprep.subr.bf16.mxu1 %v7040_v10 }
  0x42   :  { %4501 = vmatpush1.bf16.msra.mxu0 %v7042_v11  ;;  %4565 = vmatpush1.bf16.msra.mxu1 %v7051_v15 }
  0x43   :  { %4503 = vmatprep.subr.bf16.mxu0 %v7065_v22  ;;  %4567 = vmatprep.subr.bf16.mxu1 %v7076_v33 }
  0x46   :  { %4505 = vmatpush1.bf16.msra.mxu0 %v7078_v34  ;;  %4569 = vmatpush1.bf16.msra.mxu1 %v7087_v44 }
  0x47   :  { %4507 = vmatprep.subr.bf16.mxu0 %v7101_v51  ;;  %4571 = vmatprep.subr.bf16.mxu1 %v7112_v62 }
  0x4a   :  { %4509 = vmatpush1.bf16.msra.mxu0 %v7114_v63  ;;  %4573 = vmatpush1.bf16.msra.mxu1 %v7123_v7 }
  0x4b   :  { %4511 = vmatprep.subr.bf16.mxu0 %v7137_v16  ;;  %4575 = vmatprep.subr.bf16.mxu1 %v7148_v24 }
  0x4e   :  { %4513 = vmatpush1.bf16.msra.mxu0 %v7150_v30  ;;  %4577 = vmatpush1.bf16.msra.mxu1 %v7159_v45 }
  0x4f   :  { %4515 = vmatprep.subr.bf16.mxu0 %v7173_v58  ;;  %4579 = vmatprep.subr.bf16.mxu1 %v7184_v8 }
  0x52   :  { %4517 = vmatpush1.bf16.msra.mxu0 %v7186_v12  ;;  %4581 = vmatpush1.bf16.msra.mxu1 %v7198_v23  ;;  %v7251_v23 = vpack.c.bf16 %v1656_v1, %v1648_v59  ;;  %v1662_v59 = vld [vmem:[%s9035_s3 + $0x788] sm:$0xff]  ;;  %v1669_v12 = vld [vmem:[%s9035_s3 + $0x7c0] sm:$0xff] }
  0x53   :  { %4519 = vmatprep.subr.bf16.mxu0 %v7211_v50  ;;  %4583 = vmatprep.subr.bf16.mxu1 %v7213_v53  ;;  %v1670_v1 = vld [vmem:[%s9035_s3 + $0x7c8] sm:$0xff]  ;;  %v1664_v53 = vld [vmem:[%s9035_s3 + $0x798] sm:$0xff]  ;;  %v7276_v50 = vpack.c.bf16 %v1655_v20, %v1647_v19  ;;  %v1663_v19 = vld [vmem:[%s9035_s3 + $0x790] sm:$0xff] }
  0x54   :  { %9389 = vst [vmem:[#allocation61_spill] sm:$0xff] %v7251_v23  ;;  %v7278_v3 = vpack.c.bf16 %v1670_v1, %v1662_v59  ;;  %v1671_v20 = vld [vmem:[%s9035_s3 + $0x7d0] sm:$0xff]  ;;  %v1426_v59 = vld [vmem:[%s9035_s3 + $0x28] sm:$0xff] }
  0x55   :  { %9391 = vst [vmem:[#allocation63_spill] sm:$0xff] %v7276_v50  ;;  %v1434_v1 = vld [vmem:[%s9035_s3 + $0x68] sm:$0xff] }
  0x56   :  { %4521 = vmatpush1.bf16.msra.mxu0 %v7225_v14  ;;  %4585 = vmatpush1.bf16.msra.mxu1 %v7238_v38  ;;  %9392 = vst [vmem:[#allocation64_spill] sm:$0xff] %v7278_v3  ;;  %v1661_v14 = vld [vmem:[%s9035_s3 + $0x780] sm:$0xff]  ;;  %v7290_v38 = vpack.c.bf16 %v1672_v4, %v1664_v53  ;;  %v1428_v53 = vld [vmem:[%s9035_s3 + $0x38] sm:$0xff]  ;;  %v7317_v8 = vpack.c.bf16 %v1434_v1, %v1426_v59  ;;  %v6581_v1 = vmov 1983009808  }
  0x57   :  { %4523 = vmatprep.subr.bf16.mxu0 %v7240_v46  ;;  %4587 = vmatprep.subr.bf16.mxu1 %v7251_v23  ;;  %v1436_v4 = vld [vmem:[%s9035_s3 + $0x78] sm:$0xff]  ;;  %v7311_v23 = vpack.c.bf16 %v1669_v12, %v1661_v14  ;;  %v7315_v46 = vpack.c.bf16 %v1671_v20, %v1663_v19  ;;  %v35_v12 = vlaneseq  ;;  %v32_v59 = vld [vmem:[%s9036_s2] sm:$0xf] }
  0x58   :  { %9393 = vst [vmem:[#allocation65_spill] sm:$0xff] %v7290_v38  ;;  %9396 = vst [vmem:[#allocation68_spill] sm:$0xff] %v7317_v8  ;;  %v7320_v58 = vpack.c.bf16 %v1436_v4, %v1428_v53  ;;  %v208_v53 = vunpack.c.l.s4 %v6581_v1 }
  0x59   :  { %9394 = vst [vmem:[#allocation66_spill] sm:$0xff] %v7311_v23  ;;  %9395 = vst [vmem:[#allocation67_spill] sm:$0xff] %v7315_v46  ;;  %v7326_v14 = vshrl.u32 %v35_v12, 7 }
  0x5a   :  { %4525 = vmatpush1.bf16.msra.mxu0 %v7263_v37  ;;  %4589 = vmatpush1.bf16.msra.mxu1 %v7276_v50  ;;  %9397 = vst [vmem:[#allocation69_spill] sm:$0xff] %v7320_v58 }
  0x5b   :  { %4527 = vmatprep.subr.bf16.mxu0 %v7278_v3  ;;  %4591 = vmatprep.subr.bf16.mxu1 %v7290_v38  ;;  %9398 = vst [vmem:[#allocation70_spill] sm:$0xff] %v7326_v14  ;;  %v9077_v19 = vsub.s32 0, %v7326_v14  ;;  %v9082_v20 = vsub.s32 2, %v7326_v14  ;;  %v9083_v4 = vsub.s32 1, %v7326_v14 }
  0x5d   :  { %v7341_v12 = vrot.slane %v32_v59, %v9082_v20 }
  0x5e   :  { %4529 = vmatpush1.bf16.msra.mxu0 %v7311_v23  ;;  %4593 = vmatpush1.bf16.msra.mxu1 %v7315_v46  ;;  %v9090_v46 = vsub.s32 3, %v7326_v14  ;;  %v7345_v23 = vrot.slane %v32_v59, %v9083_v4 }
  0x5f   :  { %4595 = vmatprep.subr.bf16.mxu0 %v7317_v8  ;;  %4659 = vmatprep.subr.bf16.mxu1 %v7320_v58  ;;  %v7337_v58 = vrot.slane %v32_v59, %v9077_v19  ;;  %v209_v8 = vunpack.c.0.s8 %v208_v53 }
  0x60   :  { %v7349_v1 = vrot.slane %v32_v59, %v9090_v46 }
  0x61   :  { %v7354_v20 = vsub.s32 %v209_v8, %v7326_v14 }
  0xd7   :  { %v125_v38 = vpop.f32.mrb[0].mxu0  ;;  %v196_v3 = vpop.f32.mrb[0].mxu1 }
  0xd8   :  { %v126_v50 = vadd.f32 %v125_v38, %v7337_v58  ;;  %v197_v19 = vadd.f32 %v196_v3, %v7341_v12  ;;  %v127_v37 = vpop.f32.mrb[1].mxu0  ;;  %v198_v45 = vpop.f32.mrb[1].mxu1 }
  0xd9   :  { %v128_v53 = vadd.f32 %v127_v37, %v7345_v23  ;;  %v199_v4 = vadd.f32 %v198_v45, %v7349_v1 }
  0xdb   :  { %v205_v30 = vcombine.low %v126_v50, %v128_v53  ;;  %v206_v24 = vcombine.low %v197_v19, %v199_v4  ;;  %v295_v16 = vpop.f32.mrb[2].mxu0  ;;  %v366_v59 = vpop.f32.mrb[2].mxu1 }
  0xdc   :  { %v296_v46 = vadd.f32 %v295_v16, %v7337_v58  ;;  %v367_v7 = vadd.f32 %v366_v59, %v7341_v12  ;;  %v297_v38 = vpop.f32.mrb[3].mxu0  ;;  %v368_v63 = vpop.f32.mrb[3].mxu1 }
  0xdd   :  { %v213_v3 = vrot.slane %v205_v30, %v7354_v20  ;;  %v220_v62 = vrot.slane %v206_v24, %v7354_v20  ;;  %v298_v8 = vadd.f32 %v297_v38, %v7345_v23  ;;  %v369_v37 = vadd.f32 %v368_v63, %v7349_v1 }
  0xdf   :  { %v7364_v14 = vcombine.low %v213_v3, %v220_v62  ;;  %v375_v45 = vcombine.low %v296_v46, %v298_v8  ;;  %v376_v50 = vcombine.low %v367_v7, %v369_v37  ;;  %v466_v19 = vpop.f32.mrb[4].mxu0  ;;  %v537_v4 = vpop.f32.mrb[4].mxu1 }
  0xe0   :  { %v467_v16 = vadd.f32 %v466_v19, %v7337_v58  ;;  %v538_v53 = vadd.f32 %v537_v4, %v7341_v12  ;;  %v468_v59 = vpop.f32.mrb[5].mxu0  ;;  %v539_v51 = vpop.f32.mrb[5].mxu1 }
  0xe1   :  { %v4432_v30 = vmul.f32 -1.442695, %v7364_v14  ;;  %v7370_v24 = vrot.slane %v375_v45, %v7354_v20  ;;  %v7373_v38 = vrot.slane %v376_v50, %v7354_v20  ;;  %v469_v62 = vadd.f32 %v468_v59, %v7345_v23 }
  0xe2   :  { %v540_v63 = vadd.f32 %v539_v51, %v7349_v1 }
  0xe3   :  { %9399 = vst [vmem:[#allocation71_spill] sm:$0xff] %v7370_v24  ;;  %9400 = vst [vmem:[#allocation72_spill] sm:$0xff] %v7373_v38  ;;  %6388 = vpow2.f32 %v4432_v30  ;;  %v637_v46 = vpop.f32.mrb[6].mxu0  ;;  %v708_v3 = vpop.f32.mrb[6].mxu1  ;;  %v546_v8 = vcombine.low %v467_v16, %v469_v62 }
  0xe4   :  { %v547_v37 = vcombine.low %v538_v53, %v540_v63  ;;  %v638_v19 = vadd.f32 %v637_v46, %v7337_v58  ;;  %v639_v4 = vpop.f32.mrb[7].mxu0  ;;  %v710_v45 = vpop.f32.mrb[7].mxu1  ;;  %v709_v44 = vadd.f32 %v708_v3, %v7341_v12 }
  0xe5   :  { %v640_v50 = vadd.f32 %v639_v4, %v7345_v23  ;;  %v711_v59 = vadd.f32 %v710_v45, %v7349_v1  ;;  %v7384_v51 = vrot.slane %v546_v8, %v7354_v20 }
  0xe6   :  { %v7387_v30 = vrot.slane %v547_v37, %v7354_v20 }
  0xe7   :  { %9401 = vst [vmem:[#allocation73_spill] sm:$0xff] %v7384_v51  ;;  %v717_v7 = vcombine.low %v638_v19, %v640_v50  ;;  %v718_v38 = vcombine.low %v709_v44, %v711_v59  ;;  %v808_v16 = vpop.f32.mrb[8].mxu0  ;;  %v879_v53 = vpop.f32.mrb[8].mxu1 }
  0xe8   :  { %9402 = vst [vmem:[#allocation74_spill] sm:$0xff] %v7387_v30  ;;  %v809_v63 = vadd.f32 %v808_v16, %v7337_v58  ;;  %v880_v46 = vadd.f32 %v879_v53, %v7341_v12  ;;  %v810_v3 = vpop.f32.mrb[9].mxu0  ;;  %v881_v4 = vpop.f32.mrb[9].mxu1 }
  0xe9   :  { %v7394_v45 = vrot.slane %v717_v7, %v7354_v20  ;;  %v7397_v8 = vrot.slane %v718_v38, %v7354_v20  ;;  %v811_v37 = vadd.f32 %v810_v3, %v7345_v23  ;;  %v882_v44 = vadd.f32 %v881_v4, %v7349_v1 }
  0xeb   :  { %9403 = vst [vmem:[#allocation75_spill] sm:$0xff] %v7394_v45  ;;  %9404 = vst [vmem:[#allocation76_spill] sm:$0xff] %v7397_v8  ;;  %v888_v50 = vcombine.low %v809_v63, %v811_v37  ;;  %v889_v59 = vcombine.low %v880_v46, %v882_v44  ;;  %v979_v16 = vpop.f32.mrb[10].mxu0  ;;  %v1050_v62 = vpop.f32.mrb[10].mxu1  ;;  %v1708_v37 = vrot.slane %v7364_v14, 6 }
  0xec   :  { %v980_v53 = vadd.f32 %v979_v16, %v7337_v58  ;;  %v1051_v30 = vadd.f32 %v1050_v62, %v7341_v12  ;;  %v981_v7 = vpop.f32.mrb[11].mxu0  ;;  %v1052_v51 = vpop.f32.mrb[11].mxu1 }
  0xed   :  { %v6389_v24 = vpop.eup %6388  ;;  %v7406_v38 = vrot.slane %v888_v50, %v7354_v20  ;;  %v7409_v3 = vrot.slane %v889_v59, %v7354_v20  ;;  %v982_v4 = vadd.f32 %v981_v7, %v7345_v23  ;;  %v1053_v63 = vadd.f32 %v1052_v51, %v7349_v1 }
  0xee   :  { %v1704_v46 = vadd.f32 1.0, %v6389_v24 }
  0xef   :  { %9405 = vst [vmem:[#allocation77_spill] sm:$0xff] %v7406_v38  ;;  %9406 = vst [vmem:[#allocation78_spill] sm:$0xff] %v7409_v3  ;;  %v1059_v62 = vcombine.low %v980_v53, %v982_v4  ;;  %v1060_v16 = vcombine.low %v1051_v30, %v1053_v63  ;;  %v1150_v19 = vpop.f32.mrb[12].mxu0  ;;  %v1221_v8 = vpop.f32.mrb[12].mxu1  ;;  %v1489_v38 = vld [vmem:[%s9035_s3 + $0x220] sm:$0xff] }
  0xf0   :  { %6390 = vrcp.f32 %v1704_v46  ;;  %v1151_v50 = vadd.f32 %v1150_v19, %v7337_v58  ;;  %v1222_v59 = vadd.f32 %v1221_v8, %v7341_v12  ;;  %v1152_v45 = vpop.f32.mrb[13].mxu0  ;;  %v1223_v34 = vpop.f32.mrb[13].mxu1 }
  0xf1   :  { %v7419_v7 = vrot.slane %v1059_v62, %v7354_v20  ;;  %v7422_v24 = vrot.slane %v1060_v16, %v7354_v20  ;;  %v1153_v14 = vadd.f32 %v1152_v45, %v7345_v23  ;;  %v1224_v51 = vadd.f32 %v1223_v34, %v7349_v1 }
  0xf2   :  { %6392 = vtanh.f32 %v1708_v37 }
  0xf3   :  { %9407 = vst [vmem:[#allocation79_spill] sm:$0xff] %v7419_v7  ;;  %9408 = vst [vmem:[#allocation80_spill] sm:$0xff] %v7422_v24  ;;  %v1230_v53 = vcombine.low %v1151_v50, %v1153_v14  ;;  %v1231_v19 = vcombine.low %v1222_v59, %v1224_v51  ;;  %v1321_v4 = vpop.f32.mrb[14].mxu0  ;;  %v1392_v8 = vpop.f32.mrb[14].mxu1  ;;  %v1449_v50 = vld [vmem:[%s9035_s3 + $0xe0] sm:$0xff] }
  0xf4   :  { %v1322_v63 = vadd.f32 %v1321_v4, %v7337_v58  ;;  %v1393_v46 = vadd.f32 %v1392_v8, %v7341_v12  ;;  %v1323_v62 = vpop.f32.mrb[15].mxu0  ;;  %v1394_v44 = vpop.f32.mrb[15].mxu1  ;;  %v1473_v24 = vld [vmem:[%s9035_s3 + $0x1a0] sm:$0xff] }
  0xf5   :  { %v7431_v16 = vrot.slane %v1230_v53, %v7354_v20  ;;  %v7434_v45 = vrot.slane %v1231_v19, %v7354_v20  ;;  %v1324_v34 = vadd.f32 %v1323_v62, %v7345_v23  ;;  %v1395_v37 = vadd.f32 %v1394_v44, %v7349_v1  ;;  %v1425_v44 = vld [vmem:[%s9035_s3 + $0x20] sm:$0xff]  ;;  %v1435_v62 = vld [vmem:[%s9035_s3 + $0x70] sm:$0xff] }
  0xf6   :  { %v1441_v19 = vld [vmem:[%s9035_s3 + $0xa0] sm:$0xff] }
  0xf7   :  { %9409 = vst [vmem:[#allocation81_spill] sm:$0xff] %v7431_v16  ;;  %9410 = vst [vmem:[#allocation82_spill] sm:$0xff] %v7434_v45  ;;  %v1401_v59 = vcombine.low %v1322_v63, %v1324_v34  ;;  %v1402_v14 = vcombine.low %v1393_v46, %v1395_v37  ;;  %v1433_v63 = vld [vmem:[%s9035_s3 + $0x60] sm:$0xff]  ;;  %v1427_v46 = vld [vmem:[%s9035_s3 + $0x30] sm:$0xff] }
  0xf8   :  { %v1442_v34 = vld [vmem:[%s9035_s3 + $0xa8] sm:$0xff]  ;;  %v1481_v7 = vld [vmem:[%s9035_s3 + $0x1e0] sm:$0xff] }
  0xf9   :  { %v7441_v58 = vrot.slane %v1401_v59, %v7354_v20  ;;  %v7444_v12 = vrot.slane %v1402_v14, %v7354_v20  ;;  %v1450_v37 = vld [vmem:[%s9035_s3 + $0xe8] sm:$0xff]  ;;  %v1444_v59 = vld [vmem:[%s9035_s3 + $0xb8] sm:$0xff] }
  0xfa   :  { %v6391_v51 = vpop.eup %6390  ;;  %v1452_v14 = vld [vmem:[%s9035_s3 + $0xf8] sm:$0xff] }
  0xfb   :  { %9411 = vst [vmem:[#allocation83_spill] sm:$0xff] %v7441_v58  ;;  %9412 = vst [vmem:[#allocation84_spill] sm:$0xff] %v7444_v12  ;;  %v1712_v53 = vrot.slane %v6391_v51, 2  ;;  %v7487_v12 = vpack.c.bf16 %v1450_v37, %v1442_v34  ;;  %v7489_v58 = vpack.c.bf16 %v1452_v14, %v1444_v59  ;;  %v1468_v34 = vld [vmem:[%s9035_s3 + $0x178] sm:$0xff]  ;;  %v7513_v37 = vpack.c.bf16 %v1449_v50, %v1441_v19  ;;  %v1457_v14 = vld [vmem:[%s9035_s3 + $0x120] sm:$0xff] }
  0xfc   :  { %v6393_v4 = vpop.eup %6392  ;;  %v1459_v50 = vld [vmem:[%s9035_s3 + $0x130] sm:$0xff] }
  0xfd   :  { %v1715_v23 = vmul.f32 %v6393_v4, %v6391_v51  ;;  %v1714_v8 = vmul.f32 0.0, %v1712_v53  ;;  %v1718_v53 = vrot.slane %v6391_v51, 4  ;;  %v1443_v51 = vld [vmem:[%s9035_s3 + $0xb0] sm:$0xff] }
  0xfe   :  { %v1467_v19 = vld [vmem:[%s9035_s3 + $0x170] sm:$0xff] }
  0xff   :  { %v7448_v1 = vadd.f32 %v1715_v23, %v1714_v8  ;;  %v7475_v23 = vpack.c.bf16 %v1433_v63, %v1425_v44  ;;  %v7477_v8 = vpack.c.bf16 %v1435_v62, %v1427_v46  ;;  %v1451_v44 = vld [vmem:[%s9035_s3 + $0xf0] sm:$0xff]  ;;  %v1458_v63 = vld [vmem:[%s9035_s3 + $0x128] sm:$0xff]  ;;  %v1460_v62 = vld [vmem:[%s9035_s3 + $0x138] sm:$0xff]  ;;  %v7553_v16 = vpack.c.bf16 %v1467_v19, %v1459_v50 }
 0x100   :  { %v1466_v46 = vld [vmem:[%s9035_s3 + $0x168] sm:$0xff]  ;;  %v7515_v59 = vpack.c.bf16 %v1451_v44, %v1443_v51  ;;  %v7527_v45 = vpack.c.bf16 %v1468_v34, %v1460_v62  ;;  %v9415_v62 = vmov 0.0  }
 0x101   :  { %6394 = vtanh.f32 %v7448_v1  ;;  %v1474_v51 = vld [vmem:[%s9035_s3 + $0x1a8] sm:$0xff]  ;;  %9417 = vst [vmem:[#allocation88_spill] sm:$0xff] %v7553_v16 }
 0x102   :  { %9414 = vst [vmem:[#allocation86_spill] sm:$0xff] %v7527_v45  ;;  %v1482_v44 = vld [vmem:[%s9035_s3 + $0x1e8] sm:$0xff] }
 0x103   :  { %v1490_v50 = vld [vmem:[%s9035_s3 + $0x228] sm:$0xff] }
 0x104   :  { %v1498_v19 = vld [vmem:[%s9035_s3 + $0x268] sm:$0xff] }
 0x10b   :  { %v6395_v4 = vpop.eup %6394 }
 0x10c   :  { %v7485_v30 = vmul.f32 %v6395_v4, %v1718_v53  ;;  %v1465_v53 = vld [vmem:[%s9035_s3 + $0x160] sm:$0xff]  ;;  %v7525_v4 = vpack.c.bf16 %v1466_v46, %v1458_v63  ;;  %v1476_v63 = vld [vmem:[%s9035_s3 + $0x1b8] sm:$0xff] }
 0x10d   :  { %v1484_v46 = vld [vmem:[%s9035_s3 + $0x1f8] sm:$0xff]  ;;  %v7551_v34 = vpack.c.bf16 %v1465_v53, %v1457_v14  ;;  %v1475_v14 = vld [vmem:[%s9035_s3 + $0x1b0] sm:$0xff] }
 0x10e   :  { %1786 = vmatmul.mubr.f32.vlgmr.msra.gmra.mrb[16].mxu0 %v7485_v30  ;;  %1857 = vmatmul.mubr.f32.vlgmr.msra.gmra.mrb[16].mxu1 %v7485_v30  ;;  %9413 = vst [vmem:[#allocation85_spill] sm:$0xff] %v7525_v4  ;;  %v7565_v3 = vpack.c.bf16 %v1484_v46, %v1476_v63  ;;  %v1483_v53 = vld [vmem:[%s9035_s3 + $0x1f0] sm:$0xff]  ;;  %v7587_v63 = vpack.c.bf16 %v1481_v7, %v1473_v24 }
 0x10f   :  { %4597 = vmatpush1.bf16.msra.mxu0 %v7475_v23  ;;  %4661 = vmatpush1.bf16.msra.mxu1 %v7477_v8  ;;  %9416 = vst [vmem:[#allocation87_spill] sm:$0xff] %v7551_v34  ;;  %v7589_v46 = vpack.c.bf16 %v1483_v53, %v1475_v14  ;;  %v1491_v7 = vld [vmem:[%s9035_s3 + $0x230] sm:$0xff]  ;;  %v1506_v14 = vld [vmem:[%s9035_s3 + $0x2a8] sm:$0xff] }
 0x110   :  { %4599 = vmatprep.subr.bf16.mxu0 %v7487_v12  ;;  %4663 = vmatprep.subr.bf16.mxu1 %v7489_v58  ;;  %9419 = vst [vmem:[#allocation90_spill] sm:$0xff] %v7565_v3  ;;  %9420 = vst [vmem:[#allocation91_spill] sm:$0xff] %v7587_v63  ;;  %v1499_v24 = vld [vmem:[%s9035_s3 + $0x270] sm:$0xff]  ;;  %v1514_v53 = vld [vmem:[%s9035_s3 + $0x2e8] sm:$0xff] }
 0x111   :  { %1927 = vmatprep.mubr.f32.mxu0 %v9415_v62  ;;  %1998 = vmatprep.mubr.f32.mxu1 %v9415_v62  ;;  %v7563_v62 = vpack.c.bf16 %v1482_v44, %v1474_v51  ;;  %v1492_v51 = vld [vmem:[%s9035_s3 + $0x238] sm:$0xff]  ;;  %9421 = vst [vmem:[#allocation92_spill] sm:$0xff] %v7589_v46 }
 0x112   :  { %v1500_v44 = vld [vmem:[%s9035_s3 + $0x278] sm:$0xff] }
 0x113   :  { %4601 = vmatpush1.bf16.msra.mxu0 %v7513_v37  ;;  %4665 = vmatpush1.bf16.msra.mxu1 %v7515_v59  ;;  %9418 = vst [vmem:[#allocation89_spill] sm:$0xff] %v7563_v62 }
 0x114   :  { %4603 = vmatprep.subr.bf16.mxu0 %v7525_v4  ;;  %4667 = vmatprep.subr.bf16.mxu1 %v7527_v45  ;;  %v1497_v45 = vld [vmem:[%s9035_s3 + $0x260] sm:$0xff]  ;;  %v7599_v4 = vpack.c.bf16 %v1498_v19, %v1490_v50  ;;  %v1508_v50 = vld [vmem:[%s9035_s3 + $0x2b8] sm:$0xff] }
 0x115   :  { %v1516_v19 = vld [vmem:[%s9035_s3 + $0x2f8] sm:$0xff] }
 0x116   :  { %9422 = vst [vmem:[#allocation93_spill] sm:$0xff] %v7599_v4 }
 0x117   :  { %4605 = vmatpush1.bf16.msra.mxu0 %v7551_v34  ;;  %4669 = vmatpush1.bf16.msra.mxu1 %v7553_v16  ;;  %v7601_v34 = vpack.c.bf16 %v1500_v44, %v1492_v51  ;;  %v7623_v51 = vpack.c.bf16 %v1497_v45, %v1489_v38  ;;  %v7625_v44 = vpack.c.bf16 %v1499_v24, %v1491_v7  ;;  %v1507_v38 = vld [vmem:[%s9035_s3 + $0x2b0] sm:$0xff]  ;;  %v1522_v7 = vld [vmem:[%s9035_s3 + $0x328] sm:$0xff] }
 0x118   :  { %4607 = vmatprep.subr.bf16.mxu0 %v7563_v62  ;;  %4671 = vmatprep.subr.bf16.mxu1 %v7565_v3  ;;  %v1505_v3 = vld [vmem:[%s9035_s3 + $0x2a0] sm:$0xff]  ;;  %v7635_v16 = vpack.c.bf16 %v1514_v53, %v1506_v14  ;;  %v1515_v45 = vld [vmem:[%s9035_s3 + $0x2f0] sm:$0xff]  ;;  %v1530_v24 = vld [vmem:[%s9035_s3 + $0x368] sm:$0xff] }
 0x119   :  { %9423 = vst [vmem:[#allocation94_spill] sm:$0xff] %v7601_v34  ;;  %9424 = vst [vmem:[#allocation95_spill] sm:$0xff] %v7623_v51  ;;  %v1513_v62 = vld [vmem:[%s9035_s3 + $0x2e0] sm:$0xff]  ;;  %v1524_v14 = vld [vmem:[%s9035_s3 + $0x338] sm:$0xff] }
 0x11a   :  { %9425 = vst [vmem:[#allocation96_spill] sm:$0xff] %v7625_v44  ;;  %9426 = vst [vmem:[#allocation97_spill] sm:$0xff] %v7635_v16  ;;  %v1532_v53 = vld [vmem:[%s9035_s3 + $0x378] sm:$0xff] }
 0x11b   :  { %4609 = vmatpush1.bf16.msra.mxu0 %v7587_v63  ;;  %4673 = vmatpush1.bf16.msra.mxu1 %v7589_v46  ;;  %v7637_v63 = vpack.c.bf16 %v1516_v19, %v1508_v50  ;;  %v7659_v50 = vpack.c.bf16 %v1513_v62, %v1505_v3  ;;  %v7661_v19 = vpack.c.bf16 %v1515_v45, %v1507_v38  ;;  %v1523_v3 = vld [vmem:[%s9035_s3 + $0x330] sm:$0xff]  ;;  %v1538_v38 = vld [vmem:[%s9035_s3 + $0x3a8] sm:$0xff] }
 0x11c   :  { %4611 = vmatprep.subr.bf16.mxu0 %v7599_v4  ;;  %4675 = vmatprep.subr.bf16.mxu1 %v7601_v34  ;;  %v1521_v34 = vld [vmem:[%s9035_s3 + $0x320] sm:$0xff]  ;;  %v7671_v46 = vpack.c.bf16 %v1530_v24, %v1522_v7  ;;  %v1531_v62 = vld [vmem:[%s9035_s3 + $0x370] sm:$0xff]  ;;  %v1546_v45 = vld [vmem:[%s9035_s3 + $0x3e8] sm:$0xff] }
 0x11d   :  { %9427 = vst [vmem:[#allocation98_spill] sm:$0xff] %v7637_v63  ;;  %9428 = vst [vmem:[#allocation99_spill] sm:$0xff] %v7659_v50  ;;  %v1529_v4 = vld [vmem:[%s9035_s3 + $0x360] sm:$0xff]  ;;  %v1540_v7 = vld [vmem:[%s9035_s3 + $0x3b8] sm:$0xff] }
 0x11e   :  { %9429 = vst [vmem:[#allocation100_spill] sm:$0xff] %v7661_v19  ;;  %9430 = vst [vmem:[#allocation101_spill] sm:$0xff] %v7671_v46  ;;  %v1548_v24 = vld [vmem:[%s9035_s3 + $0x3f8] sm:$0xff] }
 0x11f   :  { %4613 = vmatpush1.bf16.msra.mxu0 %v7623_v51  ;;  %4677 = vmatpush1.bf16.msra.mxu1 %v7625_v44  ;;  %v7673_v51 = vpack.c.bf16 %v1532_v53, %v1524_v14  ;;  %v7695_v14 = vpack.c.bf16 %v1529_v4, %v1521_v34  ;;  %v7697_v53 = vpack.c.bf16 %v1531_v62, %v1523_v3  ;;  %v1539_v4 = vld [vmem:[%s9035_s3 + $0x3b0] sm:$0xff]  ;;  %v1554_v3 = vld [vmem:[%s9035_s3 + $0x428] sm:$0xff] }
 0x120   :  { %4615 = vmatprep.subr.bf16.mxu0 %v7635_v16  ;;  %4679 = vmatprep.subr.bf16.mxu1 %v7637_v63  ;;  %v1537_v63 = vld [vmem:[%s9035_s3 + $0x3a0] sm:$0xff]  ;;  %v7707_v44 = vpack.c.bf16 %v1546_v45, %v1538_v38  ;;  %v1547_v34 = vld [vmem:[%s9035_s3 + $0x3f0] sm:$0xff]  ;;  %v1562_v62 = vld [vmem:[%s9035_s3 + $0x468] sm:$0xff] }
 0x121   :  { %9431 = vst [vmem:[#allocation102_spill] sm:$0xff] %v7673_v51  ;;  %9432 = vst [vmem:[#allocation103_spill] sm:$0xff] %v7695_v14  ;;  %v1545_v16 = vld [vmem:[%s9035_s3 + $0x3e0] sm:$0xff]  ;;  %v1556_v38 = vld [vmem:[%s9035_s3 + $0x438] sm:$0xff] }
 0x122   :  { %9433 = vst [vmem:[#allocation104_spill] sm:$0xff] %v7697_v53  ;;  %9434 = vst [vmem:[#allocation105_spill] sm:$0xff] %v7707_v44  ;;  %v1564_v45 = vld [vmem:[%s9035_s3 + $0x478] sm:$0xff] }
 0x123   :  { %4617 = vmatpush1.bf16.msra.mxu0 %v7659_v50  ;;  %4681 = vmatpush1.bf16.msra.mxu1 %v7661_v19  ;;  %v7709_v50 = vpack.c.bf16 %v1548_v24, %v1540_v7  ;;  %v7731_v7 = vpack.c.bf16 %v1545_v16, %v1537_v63  ;;  %v7733_v24 = vpack.c.bf16 %v1547_v34, %v1539_v4  ;;  %v1555_v16 = vld [vmem:[%s9035_s3 + $0x430] sm:$0xff]  ;;  %v1570_v4 = vld [vmem:[%s9035_s3 + $0x4a8] sm:$0xff] }
 0x124   :  { %4619 = vmatprep.subr.bf16.mxu0 %v7671_v46  ;;  %4683 = vmatprep.subr.bf16.mxu1 %v7673_v51  ;;  %v1553_v51 = vld [vmem:[%s9035_s3 + $0x420] sm:$0xff]  ;;  %v7743_v19 = vpack.c.bf16 %v1562_v62, %v1554_v3  ;;  %v1563_v63 = vld [vmem:[%s9035_s3 + $0x470] sm:$0xff]  ;;  %v1578_v34 = vld [vmem:[%s9035_s3 + $0x4e8] sm:$0xff] }
 0x125   :  { %9435 = vst [vmem:[#allocation106_spill] sm:$0xff] %v7709_v50  ;;  %9436 = vst [vmem:[#allocation107_spill] sm:$0xff] %v7731_v7  ;;  %v1561_v46 = vld [vmem:[%s9035_s3 + $0x460] sm:$0xff]  ;;  %v1572_v3 = vld [vmem:[%s9035_s3 + $0x4b8] sm:$0xff] }
 0x126   :  { %9437 = vst [vmem:[#allocation108_spill] sm:$0xff] %v7733_v24  ;;  %9438 = vst [vmem:[#allocation109_spill] sm:$0xff] %v7743_v19  ;;  %v1580_v62 = vld [vmem:[%s9035_s3 + $0x4f8] sm:$0xff] }
 0x127   :  { %4621 = vmatpush1.bf16.msra.mxu0 %v7695_v14  ;;  %4685 = vmatpush1.bf16.msra.mxu1 %v7697_v53  ;;  %v7745_v14 = vpack.c.bf16 %v1564_v45, %v1556_v38  ;;  %v7767_v38 = vpack.c.bf16 %v1561_v46, %v1553_v51  ;;  %v7769_v45 = vpack.c.bf16 %v1563_v63, %v1555_v16  ;;  %v1571_v46 = vld [vmem:[%s9035_s3 + $0x4b0] sm:$0xff]  ;;  %v1586_v16 = vld [vmem:[%s9035_s3 + $0x528] sm:$0xff] }
 0x128   :  { %4623 = vmatprep.subr.bf16.mxu0 %v7707_v44  ;;  %4687 = vmatprep.subr.bf16.mxu1 %v7709_v50  ;;  %v1569_v50 = vld [vmem:[%s9035_s3 + $0x4a0] sm:$0xff]  ;;  %v7779_v53 = vpack.c.bf16 %v1578_v34, %v1570_v4  ;;  %v1579_v51 = vld [vmem:[%s9035_s3 + $0x4f0] sm:$0xff]  ;;  %v1594_v63 = vld [vmem:[%s9035_s3 + $0x568] sm:$0xff] }
 0x129   :  { %9439 = vst [vmem:[#allocation110_spill] sm:$0xff] %v7745_v14  ;;  %9440 = vst [vmem:[#allocation111_spill] sm:$0xff] %v7767_v38  ;;  %v1577_v44 = vld [vmem:[%s9035_s3 + $0x4e0] sm:$0xff]  ;;  %v1588_v4 = vld [vmem:[%s9035_s3 + $0x538] sm:$0xff] }
 0x12a   :  { %9441 = vst [vmem:[#allocation112_spill] sm:$0xff] %v7769_v45  ;;  %9442 = vst [vmem:[#allocation113_spill] sm:$0xff] %v7779_v53  ;;  %v1596_v34 = vld [vmem:[%s9035_s3 + $0x578] sm:$0xff] }
 0x12b   :  { %4625 = vmatpush1.bf16.msra.mxu0 %v7731_v7  ;;  %4689 = vmatpush1.bf16.msra.mxu1 %v7733_v24  ;;  %v7781_v7 = vpack.c.bf16 %v1580_v62, %v1572_v3  ;;  %v7803_v3 = vpack.c.bf16 %v1577_v44, %v1569_v50  ;;  %v7805_v62 = vpack.c.bf16 %v1579_v51, %v1571_v46  ;;  %v1587_v44 = vld [vmem:[%s9035_s3 + $0x530] sm:$0xff]  ;;  %v1602_v46 = vld [vmem:[%s9035_s3 + $0x5a8] sm:$0xff] }
 0x12c   :  { %4627 = vmatprep.subr.bf16.mxu0 %v7743_v19  ;;  %4691 = vmatprep.subr.bf16.mxu1 %v7745_v14  ;;  %v1585_v14 = vld [vmem:[%s9035_s3 + $0x520] sm:$0xff]  ;;  %v7815_v24 = vpack.c.bf16 %v1594_v63, %v1586_v16  ;;  %v1595_v50 = vld [vmem:[%s9035_s3 + $0x570] sm:$0xff]  ;;  %v1610_v51 = vld [vmem:[%s9035_s3 + $0x5e8] sm:$0xff] }
 0x12d   :  { %9443 = vst [vmem:[#allocation114_spill] sm:$0xff] %v7781_v7  ;;  %9444 = vst [vmem:[#allocation115_spill] sm:$0xff] %v7803_v3  ;;  %v1593_v19 = vld [vmem:[%s9035_s3 + $0x560] sm:$0xff]  ;;  %v1604_v16 = vld [vmem:[%s9035_s3 + $0x5b8] sm:$0xff] }
 0x12e   :  { %9445 = vst [vmem:[#allocation116_spill] sm:$0xff] %v7805_v62  ;;  %9446 = vst [vmem:[#allocation117_spill] sm:$0xff] %v7815_v24  ;;  %v1612_v63 = vld [vmem:[%s9035_s3 + $0x5f8] sm:$0xff] }
 0x12f   :  { %4629 = vmatpush1.bf16.msra.mxu0 %v7767_v38  ;;  %4693 = vmatpush1.bf16.msra.mxu1 %v7769_v45  ;;  %v7817_v38 = vpack.c.bf16 %v1596_v34, %v1588_v4  ;;  %v7839_v4 = vpack.c.bf16 %v1593_v19, %v1585_v14  ;;  %v7841_v34 = vpack.c.bf16 %v1595_v50, %v1587_v44  ;;  %v1603_v19 = vld [vmem:[%s9035_s3 + $0x5b0] sm:$0xff]  ;;  %v1618_v44 = vld [vmem:[%s9035_s3 + $0x628] sm:$0xff] }
 0x130   :  { %4631 = vmatprep.subr.bf16.mxu0 %v7779_v53  ;;  %4695 = vmatprep.subr.bf16.mxu1 %v7781_v7  ;;  %v1601_v7 = vld [vmem:[%s9035_s3 + $0x5a0] sm:$0xff]  ;;  %v7851_v45 = vpack.c.bf16 %v1610_v51, %v1602_v46  ;;  %v1611_v14 = vld [vmem:[%s9035_s3 + $0x5f0] sm:$0xff]  ;;  %v1626_v50 = vld [vmem:[%s9035_s3 + $0x668] sm:$0xff] }
 0x131   :  { %9447 = vst [vmem:[#allocation118_spill] sm:$0xff] %v7817_v38  ;;  %9448 = vst [vmem:[#allocation119_spill] sm:$0xff] %v7839_v4  ;;  %v1609_v53 = vld [vmem:[%s9035_s3 + $0x5e0] sm:$0xff]  ;;  %v1620_v46 = vld [vmem:[%s9035_s3 + $0x638] sm:$0xff] }
 0x132   :  { %9449 = vst [vmem:[#allocation120_spill] sm:$0xff] %v7841_v34  ;;  %9450 = vst [vmem:[#allocation121_spill] sm:$0xff] %v7851_v45  ;;  %v1628_v51 = vld [vmem:[%s9035_s3 + $0x678] sm:$0xff] }
 0x133   :  { %4633 = vmatpush1.bf16.msra.mxu0 %v7803_v3  ;;  %4697 = vmatpush1.bf16.msra.mxu1 %v7805_v62  ;;  %v7853_v3 = vpack.c.bf16 %v1612_v63, %v1604_v16  ;;  %v7875_v16 = vpack.c.bf16 %v1609_v53, %v1601_v7  ;;  %v7877_v63 = vpack.c.bf16 %v1611_v14, %v1603_v19  ;;  %v1619_v53 = vld [vmem:[%s9035_s3 + $0x630] sm:$0xff]  ;;  %v1634_v19 = vld [vmem:[%s9035_s3 + $0x6a8] sm:$0xff] }
 0x134   :  { %4635 = vmatprep.subr.bf16.mxu0 %v7815_v24  ;;  %4699 = vmatprep.subr.bf16.mxu1 %v7817_v38  ;;  %v1617_v38 = vld [vmem:[%s9035_s3 + $0x620] sm:$0xff]  ;;  %v7887_v62 = vpack.c.bf16 %v1626_v50, %v1618_v44  ;;  %v1627_v7 = vld [vmem:[%s9035_s3 + $0x670] sm:$0xff]  ;;  %v1642_v14 = vld [vmem:[%s9035_s3 + $0x6e8] sm:$0xff] }
 0x135   :  { %9451 = vst [vmem:[#allocation122_spill] sm:$0xff] %v7853_v3  ;;  %9452 = vst [vmem:[#allocation123_spill] sm:$0xff] %v7875_v16  ;;  %v1625_v24 = vld [vmem:[%s9035_s3 + $0x660] sm:$0xff]  ;;  %v1636_v44 = vld [vmem:[%s9035_s3 + $0x6b8] sm:$0xff] }
 0x136   :  { %9453 = vst [vmem:[#allocation124_spill] sm:$0xff] %v7877_v63  ;;  %9454 = vst [vmem:[#allocation125_spill] sm:$0xff] %v7887_v62  ;;  %v1644_v50 = vld [vmem:[%s9035_s3 + $0x6f8] sm:$0xff] }
 0x137   :  { %4637 = vmatpush1.bf16.msra.mxu0 %v7839_v4  ;;  %4701 = vmatpush1.bf16.msra.mxu1 %v7841_v34  ;;  %v7889_v4 = vpack.c.bf16 %v1628_v51, %v1620_v46  ;;  %v7911_v46 = vpack.c.bf16 %v1625_v24, %v1617_v38  ;;  %v7913_v51 = vpack.c.bf16 %v1627_v7, %v1619_v53  ;;  %v1635_v24 = vld [vmem:[%s9035_s3 + $0x6b0] sm:$0xff]  ;;  %v1650_v53 = vld [vmem:[%s9035_s3 + $0x728] sm:$0xff] }
 0x138   :  { %4639 = vmatprep.subr.bf16.mxu0 %v7851_v45  ;;  %4703 = vmatprep.subr.bf16.mxu1 %v7853_v3  ;;  %v1633_v3 = vld [vmem:[%s9035_s3 + $0x6a0] sm:$0xff]  ;;  %v7923_v34 = vpack.c.bf16 %v1642_v14, %v1634_v19  ;;  %v1643_v38 = vld [vmem:[%s9035_s3 + $0x6f0] sm:$0xff]  ;;  %v1658_v7 = vld [vmem:[%s9035_s3 + $0x768] sm:$0xff] }
 0x139   :  { %9455 = vst [vmem:[#allocation126_spill] sm:$0xff] %v7889_v4  ;;  %9456 = vst [vmem:[#allocation127_spill] sm:$0xff] %v7911_v46  ;;  %v1641_v45 = vld [vmem:[%s9035_s3 + $0x6e0] sm:$0xff]  ;;  %v1652_v19 = vld [vmem:[%s9035_s3 + $0x738] sm:$0xff] }
 0x13a   :  { %9457 = vst [vmem:[#allocation128_spill] sm:$0xff] %v7913_v51  ;;  %9458 = vst [vmem:[#allocation129_spill] sm:$0xff] %v7923_v34  ;;  %v1660_v14 = vld [vmem:[%s9035_s3 + $0x778] sm:$0xff] }
 0x13b   :  { %4641 = vmatpush1.bf16.msra.mxu0 %v7875_v16  ;;  %4705 = vmatpush1.bf16.msra.mxu1 %v7877_v63  ;;  %v7925_v16 = vpack.c.bf16 %v1644_v50, %v1636_v44  ;;  %v7947_v44 = vpack.c.bf16 %v1641_v45, %v1633_v3  ;;  %v7949_v50 = vpack.c.bf16 %v1643_v38, %v1635_v24  ;;  %v1651_v45 = vld [vmem:[%s9035_s3 + $0x730] sm:$0xff]  ;;  %v1666_v24 = vld [vmem:[%s9035_s3 + $0x7a8] sm:$0xff] }
 0x13c   :  { %4643 = vmatprep.subr.bf16.mxu0 %v7887_v62  ;;  %4707 = vmatprep.subr.bf16.mxu1 %v7889_v4  ;;  %v1649_v4 = vld [vmem:[%s9035_s3 + $0x720] sm:$0xff]  ;;  %v7959_v63 = vpack.c.bf16 %v1658_v7, %v1650_v53  ;;  %v1659_v3 = vld [vmem:[%s9035_s3 + $0x770] sm:$0xff]  ;;  %v1674_v38 = vld [vmem:[%s9035_s3 + $0x7e8] sm:$0xff] }
 0x13d   :  { %9459 = vst [vmem:[#allocation130_spill] sm:$0xff] %v7925_v16  ;;  %9460 = vst [vmem:[#allocation131_spill] sm:$0xff] %v7947_v44  ;;  %v1657_v62 = vld [vmem:[%s9035_s3 + $0x760] sm:$0xff]  ;;  %v1668_v53 = vld [vmem:[%s9035_s3 + $0x7b8] sm:$0xff] }
 0x13e   :  { %9461 = vst [vmem:[#allocation132_spill] sm:$0xff] %v7949_v50  ;;  %9462 = vst [vmem:[#allocation133_spill] sm:$0xff] %v7959_v63  ;;  %v1676_v7 = vld [vmem:[%s9035_s3 + $0x7f8] sm:$0xff] }
 0x13f   :  { %4645 = vmatpush1.bf16.msra.mxu0 %v7911_v46  ;;  %4709 = vmatpush1.bf16.msra.mxu1 %v7913_v51  ;;  %v7961_v46 = vpack.c.bf16 %v1660_v14, %v1652_v19  ;;  %v7983_v19 = vpack.c.bf16 %v1657_v62, %v1649_v4  ;;  %v7985_v14 = vpack.c.bf16 %v1659_v3, %v1651_v45  ;;  %v1667_v62 = vld [vmem:[%s9035_s3 + $0x7b0] sm:$0xff] }
 0x140   :  { %4647 = vmatprep.subr.bf16.mxu0 %v7923_v34  ;;  %4711 = vmatprep.subr.bf16.mxu1 %v7925_v16  ;;  %v1665_v16 = vld [vmem:[%s9035_s3 + $0x7a0] sm:$0xff]  ;;  %v7992_v34 = vpack.c.bf16 %v1674_v38, %v1666_v24  ;;  %v7994_v51 = vpack.c.bf16 %v1676_v7, %v1668_v53  ;;  %v1675_v4 = vld [vmem:[%s9035_s3 + $0x7f0] sm:$0xff] }
 0x141   :  { %9463 = vst [vmem:[#allocation134_spill] sm:$0xff] %v7961_v46  ;;  %9464 = vst [vmem:[#allocation135_spill] sm:$0xff] %v7983_v19  ;;  %v8009_v3 = vpack.c.bf16 %v1675_v4, %v1667_v62  ;;  %v9473_v24 = vld [vmem:[#allocation45_spill] sm:$0xff]  ;;  %v9474_v38 = vld [vmem:[#allocation46_spill] sm:$0xff] }
 0x142   :  { %9465 = vst [vmem:[#allocation136_spill] sm:$0xff] %v7985_v14  ;;  %9466 = vst [vmem:[#allocation137_spill] sm:$0xff] %v7992_v34  ;;  %v9475_v53 = vld [vmem:[#allocation47_spill] sm:$0xff]  ;;  %v9476_v7 = vld [vmem:[#allocation48_spill] sm:$0xff] }
 0x143   :  { %4649 = vmatpush1.bf16.msra.mxu0 %v7947_v44  ;;  %4713 = vmatpush1.bf16.msra.mxu1 %v7949_v50  ;;  %9467 = vst [vmem:[#allocation138_spill] sm:$0xff] %v7994_v51  ;;  %v1673_v50 = vld [vmem:[%s9035_s3 + $0x7e0] sm:$0xff]  ;;  %9469 = vst [vmem:[#allocation140_spill] sm:$0xff] %v8009_v3  ;;  %v9477_v62 = vld [vmem:[#allocation49_spill] sm:$0xff] }
 0x144   :  { %4651 = vmatprep.subr.bf16.mxu0 %v7959_v63  ;;  %4715 = vmatprep.subr.bf16.mxu1 %v7961_v46  ;;  %v8007_v45 = vpack.c.bf16 %v1673_v50, %v1665_v16  ;;  %v9471_v16 = vld [vmem:[#allocation43_spill] sm:$0xff]  ;;  %v9472_v50 = vld [vmem:[#allocation44_spill] sm:$0xff]  ;;  %v9478_v4 = vld [vmem:[#allocation50_spill] sm:$0xff] }
 0x146   :  { %9468 = vst [vmem:[#allocation139_spill] sm:$0xff] %v8007_v45 }
 0x147   :  { %4653 = vmatpush1.bf16.msra.mxu0 %v7983_v19  ;;  %4717 = vmatpush1.bf16.msra.mxu1 %v7985_v14 }
 0x148   :  { %4655 = vmatprep.subr.bf16.mxu0 %v7992_v34  ;;  %4719 = vmatprep.subr.bf16.mxu1 %v7994_v51 }
 0x14b   :  { %4657 = vmatpush1.bf16.msra.mxu0 %v8007_v45  ;;  %4721 = vmatpush1.bf16.msra.mxu1 %v8009_v3 }
 0x14c   :  { %4723 = vmatprep.subr.bf16.mxu0 %v6760_v25  ;;  %4787 = vmatprep.subr.bf16.mxu1 %v6762_v26 }
 0x14e   :  { %1928 = vmatmul.mubr.f32.vlgmr.msra.gmra.mrb[18].mxu0 %v7485_v30  ;;  %1999 = vmatmul.mubr.f32.vlgmr.msra.gmra.mrb[18].mxu1 %v7485_v30  ;;  %v9470_v30 = vld [vmem:[#allocation42_spill] sm:$0xff] }
 0x14f   :  { %4725 = vmatpush1.bf16.msra.mxu0 %v6766_v27  ;;  %4789 = vmatpush1.bf16.msra.mxu1 %v6768_v28 }
 0x150   :  { %4727 = vmatprep.subr.bf16.mxu0 %v6778_v31  ;;  %4791 = vmatprep.subr.bf16.mxu1 %v6780_v32 }
 0x153   :  { %4729 = vmatpush1.bf16.msra.mxu0 %v6806_v39  ;;  %4793 = vmatpush1.bf16.msra.mxu1 %v6808_v40 }
 0x154   :  { %4731 = vmatprep.subr.bf16.mxu0 %v6815_v42  ;;  %4795 = vmatprep.subr.bf16.mxu1 %v6817_v43 }
 0x157   :  { %4733 = vmatpush1.bf16.msra.mxu0 %v6832_v47  ;;  %4797 = vmatpush1.bf16.msra.mxu1 %v6834_v48 }
 0x158   :  { %4735 = vmatprep.subr.bf16.mxu0 %v6849_v52  ;;  %4799 = vmatprep.subr.bf16.mxu1 %v6860_v56 }
 0x15b   :  { %4737 = vmatpush1.bf16.msra.mxu0 %v6862_v57  ;;  %4801 = vmatpush1.bf16.msra.mxu1 %v6871_v60 }
 0x15c   :  { %4739 = vmatprep.subr.bf16.mxu0 %v6885_v0  ;;  %4803 = vmatprep.subr.bf16.mxu1 %v6896_v5 }
 0x15f   :  { %4741 = vmatpush1.bf16.msra.mxu0 %v6898_v6  ;;  %4805 = vmatpush1.bf16.msra.mxu1 %v6907_v9 }
 0x160   :  { %4743 = vmatprep.subr.bf16.mxu0 %v6921_v13  ;;  %4807 = vmatprep.subr.bf16.mxu1 %v6932_v17 }
 0x163   :  { %4745 = vmatpush1.bf16.msra.mxu0 %v6934_v18  ;;  %4809 = vmatpush1.bf16.msra.mxu1 %v6943_v21 }
 0x164   :  { %4747 = vmatprep.subr.bf16.mxu0 %v6957_v29  ;;  %4811 = vmatprep.subr.bf16.mxu1 %v6968_v35 }
 0x167   :  { %4749 = vmatpush1.bf16.msra.mxu0 %v6970_v36  ;;  %4813 = vmatpush1.bf16.msra.mxu1 %v6979_v41 }
 0x168   :  { %4751 = vmatprep.subr.bf16.mxu0 %v6993_v49  ;;  %4815 = vmatprep.subr.bf16.mxu1 %v7004_v54 }
 0x16b   :  { %4753 = vmatpush1.bf16.msra.mxu0 %v7006_v55  ;;  %4817 = vmatpush1.bf16.msra.mxu1 %v7015_v61 }
 0x16c   :  { %4755 = vmatprep.subr.bf16.mxu0 %v7029_v2  ;;  %4819 = vmatprep.subr.bf16.mxu1 %v7040_v10 }
 0x16f   :  { %4757 = vmatpush1.bf16.msra.mxu0 %v7042_v11  ;;  %4821 = vmatpush1.bf16.msra.mxu1 %v7051_v15 }
 0x170   :  { %4759 = vmatprep.subr.bf16.mxu0 %v7065_v22  ;;  %4823 = vmatprep.subr.bf16.mxu1 %v7076_v33  ;;  %v9479_v22 = vld [vmem:[#allocation51_spill] sm:$0xff]  ;;  %v9480_v33 = vld [vmem:[#allocation52_spill] sm:$0xff] }
 0x173   :  { %4761 = vmatpush1.bf16.msra.mxu0 %v9470_v30  ;;  %4825 = vmatpush1.bf16.msra.mxu1 %v9471_v16  ;;  %v9481_v30 = vld [vmem:[#allocation53_spill] sm:$0xff]  ;;  %v9482_v16 = vld [vmem:[#allocation54_spill] sm:$0xff] }
 0x174   :  { %4763 = vmatprep.subr.bf16.mxu0 %v9472_v50  ;;  %4827 = vmatprep.subr.bf16.mxu1 %v9473_v24  ;;  %v9483_v50 = vld [vmem:[#allocation55_spill] sm:$0xff]  ;;  %v9484_v24 = vld [vmem:[#allocation56_spill] sm:$0xff] }
 0x177   :  { %4765 = vmatpush1.bf16.msra.mxu0 %v9474_v38  ;;  %4829 = vmatpush1.bf16.msra.mxu1 %v9475_v53  ;;  %v9485_v38 = vld [vmem:[#allocation57_spill] sm:$0xff]  ;;  %v9486_v53 = vld [vmem:[#allocation58_spill] sm:$0xff] }
 0x178   :  { %4767 = vmatprep.subr.bf16.mxu0 %v9476_v7  ;;  %4831 = vmatprep.subr.bf16.mxu1 %v9477_v62  ;;  %v9487_v7 = vld [vmem:[#allocation59_spill] sm:$0xff]  ;;  %v9488_v62 = vld [vmem:[#allocation60_spill] sm:$0xff] }
 0x17b   :  { %4769 = vmatpush1.bf16.msra.mxu0 %v9478_v4  ;;  %4833 = vmatpush1.bf16.msra.mxu1 %v9479_v22  ;;  %v9489_v4 = vld [vmem:[#allocation61_spill] sm:$0xff]  ;;  %v9490_v22 = vld [vmem:[#allocation62_spill] sm:$0xff] }
 0x17c   :  { %4771 = vmatprep.subr.bf16.mxu0 %v9480_v33  ;;  %4835 = vmatprep.subr.bf16.mxu1 %v9481_v30  ;;  %v9491_v33 = vld [vmem:[#allocation63_spill] sm:$0xff]  ;;  %v9492_v30 = vld [vmem:[#allocation64_spill] sm:$0xff] }
 0x17f   :  { %4773 = vmatpush1.bf16.msra.mxu0 %v9482_v16  ;;  %4837 = vmatpush1.bf16.msra.mxu1 %v9483_v50  ;;  %v9493_v16 = vld [vmem:[#allocation65_spill] sm:$0xff]  ;;  %v9494_v50 = vld [vmem:[#allocation66_spill] sm:$0xff] }
 0x180   :  { %4775 = vmatprep.subr.bf16.mxu0 %v9484_v24  ;;  %4839 = vmatprep.subr.bf16.mxu1 %v9485_v38  ;;  %v9495_v24 = vld [vmem:[#allocation67_spill] sm:$0xff]  ;;  %v9496_v38 = vld [vmem:[#allocation68_spill] sm:$0xff] }
 0x183   :  { %4777 = vmatpush1.bf16.msra.mxu0 %v9486_v53  ;;  %4841 = vmatpush1.bf16.msra.mxu1 %v9487_v7  ;;  %v9497_v53 = vld [vmem:[#allocation69_spill] sm:$0xff] }
 0x184   :  { %4779 = vmatprep.subr.bf16.mxu0 %v9488_v62  ;;  %4843 = vmatprep.subr.bf16.mxu1 %v9489_v4  ;;  %v1677_v4 = vld [vmem:[%s9037_s4] sm:$0xf]  ;;  %v9498_v62 = vld [vmem:[#allocation70_spill] sm:$0xff] }
 0x185   :  { %v9503_v2 = vsub.s32 2, %v9498_v62 }
 0x187   :  { %4781 = vmatpush1.bf16.msra.mxu0 %v9490_v22  ;;  %4845 = vmatpush1.bf16.msra.mxu1 %v9491_v33  ;;  %v9499_v22 = vsub.s32 0, %v9498_v62  ;;  %v8098_v61 = vrot.slane %v1677_v4, %v9503_v2 }
 0x188   :  { %4783 = vmatprep.subr.bf16.mxu0 %v9492_v30  ;;  %4847 = vmatprep.subr.bf16.mxu1 %v9493_v16  ;;  %v9501_v30 = vsub.s32 1, %v9498_v62 }
 0x189   :  { %v8088_v7 = vrot.slane %v1677_v4, %v9499_v22  ;;  %9504 = vst [vmem:[#allocation142_spill] sm:$0xff] %v8098_v61  ;;  %v9505_v22 = vsub.s32 3, %v9498_v62 }
 0x18a   :  { %v8092_v33 = vrot.slane %v1677_v4, %v9501_v30 }
 0x18b   :  { %4785 = vmatpush1.bf16.msra.mxu0 %v9494_v50  ;;  %4849 = vmatpush1.bf16.msra.mxu1 %v9495_v24  ;;  %9500 = vst [vmem:[#allocation70_spill] sm:$0xff] %v8088_v7  ;;  %v8102_v30 = vrot.slane %v1677_v4, %v9505_v22 }
 0x18c   :  { %4851 = vmatprep.subr.bf16.mxu0 %v9496_v38  ;;  %4915 = vmatprep.subr.bf16.mxu1 %v9497_v53  ;;  %9502 = vst [vmem:[#allocation141_spill] sm:$0xff] %v8092_v33 }
 0x18d   :  { %9506 = vst [vmem:[#allocation143_spill] sm:$0xff] %v8102_v30 }
 0x1e1   :  { %v1787_v16 = vpop.f32.mrb[16].mxu0  ;;  %v1858_v50 = vpop.f32.mrb[16].mxu1 }
 0x1e2   :  { %v2005_v24 = vadd.f32 %v1787_v16, %v8088_v7  ;;  %v1789_v15 = vpop.f32.mrb[17].mxu0  ;;  %v1860_v38 = vpop.f32.mrb[17].mxu1  ;;  %v2007_v55 = vadd.f32 %v1858_v50, %v8098_v61 }
 0x1e3   :  { %v2006_v53 = vadd.f32 %v1789_v15, %v8092_v33  ;;  %v2008_v16 = vadd.f32 %v1860_v38, %v8102_v30 }
 0x1e4   :  { %v4433_v11 = vmul.f32 -1.442695, %v2005_v24  ;;  %v4435_v7 = vmul.f32 -1.442695, %v2007_v55 }
 0x1e5   :  { %v4434_v10 = vmul.f32 -1.442695, %v2006_v53 }
 0x1e6   :  { %6396 = vpow2.f32 %v4433_v11 }
 0x1e7   :  { %6398 = vpow2.f32 %v4434_v10 }
 0x1e8   :  { %6400 = vtanh.f32 %v2008_v16 }
 0x1e9   :  { %6402 = vpow2.f32 %v4435_v7 }
 0x1f0   :  { %v6397_v54 = vpop.eup %6396 }
 0x1f1   :  { %v2018_v49 = vadd.f32 1.0, %v6397_v54  ;;  %v6399_v15 = vpop.eup %6398 }
 0x1f2   :  { %v2019_v11 = vadd.f32 1.0, %v6399_v15  ;;  %v6401_v2 = vpop.eup %6400 }
 0x1f3   :  { %6404 = vrcp.f32 %v2018_v49  ;;  %v6403_v24 = vpop.eup %6402 }
 0x1f4   :  { %6406 = vrcp.f32 %v2019_v11  ;;  %v2020_v4 = vadd.f32 1.0, %v6403_v24 }
 0x1f6   :  { %6408 = vrcp.f32 %v2020_v4 }
 0x1fd   :  { %v6405_v10 = vpop.eup %6404 }
 0x1fe   :  { %v2029_v53 = vmul.f32 %v6405_v10, %v6401_v2  ;;  %v6407_v62 = vpop.eup %6406 }
 0x1ff   :  { %v2028_v22 = vmul.f32 0.0, %v6407_v62  ;;  %v9509_v62 = vld [vmem:[#allocation72_spill] sm:$0xff] }
 0x200   :  { %v6409_v55 = vpop.eup %6408 }
 0x201   :  { %v8106_v33 = vadd.f32 %v2029_v53, %v2028_v22  ;;  %v9508_v53 = vld [vmem:[#allocation71_spill] sm:$0xff] }
 0x202   :  { %v9510_v4 = vcombine.low %v9508_v53, %v9509_v62  ;;  %v9519_v53 = vld [vmem:[#allocation93_spill] sm:$0xff]  ;;  %v9520_v62 = vld [vmem:[#allocation94_spill] sm:$0xff] }
 0x203   :  { %9507 = vst [vmem:[#allocation144_spill] sm:$0xff] %v8106_v33  ;;  %6410 = vtanh.f32 %v8106_v33 }
 0x20d   :  { %v6411_v54 = vpop.eup %6410 }
 0x20e   :  { %v2032_v50 = vmul.f32 %v6411_v54, %v6409_v55 }
 0x210   :  { %2141 = vmatprep.mubr.f32.mxu0 %v2032_v50  ;;  %2212 = vmatprep.mubr.f32.mxu1 %v2032_v50 }
 0x221   :  { %v1929_v49 = vpop.f32.mrb[18].mxu0  ;;  %v2000_v38 = vpop.f32.mrb[18].mxu1 }
 0x222   :  { %v1931_v7 = vpop.f32.mrb[19].mxu0  ;;  %v2002_v16 = vpop.f32.mrb[19].mxu1 }
 0x223   :  { %v2038_v15 = vcombine.low %v1929_v49, %v1931_v7  ;;  %v2039_v11 = vcombine.low %v2000_v38, %v2002_v16 }
 0x225   :  { %v2046_v2 = vrot.slane %v2038_v15, %v7354_v20  ;;  %v2053_v24 = vrot.slane %v2039_v11, %v7354_v20 }
 0x227   :  { %v2054_v10 = vcombine.low %v2046_v2, %v2053_v24  ;;  %v9516_v24 = vld [vmem:[#allocation90_spill] sm:$0xff] }
 0x229   :  { %v2056_v22 = vadd.f32 %v2054_v10, %v9510_v4  ;;  %v9518_v10 = vld [vmem:[#allocation92_spill] sm:$0xff]  ;;  %v9521_v4 = vld [vmem:[#allocation95_spill] sm:$0xff] }
 0x22b   :  { %v4436_v33 = vmul.f32 -1.442695, %v2056_v22  ;;  %v2064_v30 = vrot.slane %v2056_v22, 6  ;;  %v9522_v22 = vld [vmem:[#allocation96_spill] sm:$0xff] }
 0x22d   :  { %6412 = vpow2.f32 %v4436_v33  ;;  %v9513_v33 = vld [vmem:[#allocation87_spill] sm:$0xff] }
 0x237   :  { %v6413_v55 = vpop.eup %6412 }
 0x238   :  { %v2060_v54 = vadd.f32 1.0, %v6413_v55  ;;  %v9523_v55 = vld [vmem:[#allocation97_spill] sm:$0xff] }
 0x23a   :  { %6414 = vrcp.f32 %v2060_v54  ;;  %v9524_v54 = vld [vmem:[#allocation98_spill] sm:$0xff] }
 0x23b   :  { %6416 = vtanh.f32 %v2064_v30  ;;  %v9515_v30 = vld [vmem:[#allocation89_spill] sm:$0xff] }
 0x244   :  { %v6415_v61 = vpop.eup %6414 }
 0x245   :  { %v2068_v41 = vrot.slane %v6415_v61, 2  ;;  %v6417_v49 = vpop.eup %6416  ;;  %v2074_v15 = vrot.slane %v6415_v61, 4 }
 0x246   :  { %v2071_v38 = vmul.f32 %v6417_v49, %v6415_v61  ;;  %v9512_v61 = vld [vmem:[#allocation86_spill] sm:$0xff]  ;;  %v9525_v49 = vld [vmem:[#allocation99_spill] sm:$0xff] }
 0x247   :  { %v2070_v7 = vmul.f32 %v2068_v41, %v7448_v1  ;;  %v9511_v41 = vld [vmem:[#allocation85_spill] sm:$0xff]  ;;  %v9514_v1 = vld [vmem:[#allocation88_spill] sm:$0xff] }
 0x249   :  { %v8115_v16 = vadd.f32 %v2071_v38, %v2070_v7  ;;  %v9526_v38 = vld [vmem:[#allocation100_spill] sm:$0xff]  ;;  %v9527_v7 = vld [vmem:[#allocation101_spill] sm:$0xff] }
 0x24b   :  { %6418 = vtanh.f32 %v8115_v16 }
 0x255   :  { %v6419_v11 = vpop.eup %6418 }
 0x256   :  { %v8118_v2 = vmul.f32 %v6419_v11, %v2074_v15  ;;  %v9528_v15 = vld [vmem:[#allocation102_spill] sm:$0xff]  ;;  %v9529_v11 = vld [vmem:[#allocation103_spill] sm:$0xff] }
 0x258   :  { %2142 = vmatmul.mubr.f32.vlgmr.msra.gmra.mrb[20].mxu0 %v8118_v2  ;;  %2213 = vmatmul.mubr.f32.vlgmr.msra.gmra.mrb[20].mxu1 %v8118_v2 }
 0x259   :  { %4853 = vmatpush1.bf16.msra.mxu0 %v7475_v23  ;;  %4917 = vmatpush1.bf16.msra.mxu1 %v7477_v8 }
 0x25a   :  { %2283 = vmatprep.mubr.f32.mxu0 %v2032_v50  ;;  %2354 = vmatprep.mubr.f32.mxu1 %v2032_v50  ;;  %v9517_v50 = vld [vmem:[#allocation91_spill] sm:$0xff] }
 0x25b   :  { %4855 = vmatprep.subr.bf16.mxu0 %v7487_v12  ;;  %4919 = vmatprep.subr.bf16.mxu1 %v7489_v58 }
 0x25d   :  { %4857 = vmatpush1.bf16.msra.mxu0 %v7513_v37  ;;  %4921 = vmatpush1.bf16.msra.mxu1 %v7515_v59 }
 0x25e   :  { %4859 = vmatprep.subr.bf16.mxu0 %v9511_v41  ;;  %4923 = vmatprep.subr.bf16.mxu1 %v9512_v61 }
 0x261   :  { %4861 = vmatpush1.bf16.msra.mxu0 %v9513_v33  ;;  %4925 = vmatpush1.bf16.msra.mxu1 %v9514_v1 }
 0x262   :  { %4863 = vmatprep.subr.bf16.mxu0 %v9515_v30  ;;  %4927 = vmatprep.subr.bf16.mxu1 %v9516_v24 }
 0x265   :  { %4865 = vmatpush1.bf16.msra.mxu0 %v9517_v50  ;;  %4929 = vmatpush1.bf16.msra.mxu1 %v9518_v10 }
 0x266   :  { %4867 = vmatprep.subr.bf16.mxu0 %v9519_v53  ;;  %4931 = vmatprep.subr.bf16.mxu1 %v9520_v62  ;;  %v9530_v53 = vld [vmem:[#allocation104_spill] sm:$0xff]  ;;  %v9531_v62 = vld [vmem:[#allocation105_spill] sm:$0xff] }
 0x269   :  { %4869 = vmatpush1.bf16.msra.mxu0 %v9521_v4  ;;  %4933 = vmatpush1.bf16.msra.mxu1 %v9522_v22  ;;  %v9532_v4 = vld [vmem:[#allocation106_spill] sm:$0xff]  ;;  %v9533_v22 = vld [vmem:[#allocation107_spill] sm:$0xff] }
 0x26a   :  { %4871 = vmatprep.subr.bf16.mxu0 %v9523_v55  ;;  %4935 = vmatprep.subr.bf16.mxu1 %v9524_v54  ;;  %v9534_v55 = vld [vmem:[#allocation108_spill] sm:$0xff]  ;;  %v9535_v54 = vld [vmem:[#allocation109_spill] sm:$0xff] }
 0x26d   :  { %4873 = vmatpush1.bf16.msra.mxu0 %v9525_v49  ;;  %4937 = vmatpush1.bf16.msra.mxu1 %v9526_v38  ;;  %v9536_v49 = vld [vmem:[#allocation110_spill] sm:$0xff]  ;;  %v9537_v38 = vld [vmem:[#allocation111_spill] sm:$0xff] }
 0x26e   :  { %4875 = vmatprep.subr.bf16.mxu0 %v9527_v7  ;;  %4939 = vmatprep.subr.bf16.mxu1 %v9528_v15  ;;  %v9538_v7 = vld [vmem:[#allocation112_spill] sm:$0xff]  ;;  %v9539_v15 = vld [vmem:[#allocation113_spill] sm:$0xff] }
 0x271   :  { %4877 = vmatpush1.bf16.msra.mxu0 %v9529_v11  ;;  %4941 = vmatpush1.bf16.msra.mxu1 %v9530_v53  ;;  %v9540_v11 = vld [vmem:[#allocation114_spill] sm:$0xff]  ;;  %v9541_v53 = vld [vmem:[#allocation115_spill] sm:$0xff] }
 0x272   :  { %4879 = vmatprep.subr.bf16.mxu0 %v9531_v62  ;;  %4943 = vmatprep.subr.bf16.mxu1 %v9532_v4  ;;  %v9542_v62 = vld [vmem:[#allocation116_spill] sm:$0xff]  ;;  %v9543_v4 = vld [vmem:[#allocation117_spill] sm:$0xff] }
 0x275   :  { %4881 = vmatpush1.bf16.msra.mxu0 %v9533_v22  ;;  %4945 = vmatpush1.bf16.msra.mxu1 %v9534_v55  ;;  %v9544_v22 = vld [vmem:[#allocation118_spill] sm:$0xff]  ;;  %v9545_v55 = vld [vmem:[#allocation119_spill] sm:$0xff] }
 0x276   :  { %4883 = vmatprep.subr.bf16.mxu0 %v9535_v54  ;;  %4947 = vmatprep.subr.bf16.mxu1 %v9536_v49  ;;  %v9546_v54 = vld [vmem:[#allocation120_spill] sm:$0xff]  ;;  %v9547_v49 = vld [vmem:[#allocation121_spill] sm:$0xff] }
 0x279   :  { %4885 = vmatpush1.bf16.msra.mxu0 %v9537_v38  ;;  %4949 = vmatpush1.bf16.msra.mxu1 %v9538_v7  ;;  %v9548_v38 = vld [vmem:[#allocation122_spill] sm:$0xff]  ;;  %v9549_v7 = vld [vmem:[#allocation123_spill] sm:$0xff] }
 0x27a   :  { %4887 = vmatprep.subr.bf16.mxu0 %v9539_v15  ;;  %4951 = vmatprep.subr.bf16.mxu1 %v9540_v11  ;;  %v9550_v15 = vld [vmem:[#allocation124_spill] sm:$0xff]  ;;  %v9551_v11 = vld [vmem:[#allocation125_spill] sm:$0xff] }
 0x27d   :  { %4889 = vmatpush1.bf16.msra.mxu0 %v9541_v53  ;;  %4953 = vmatpush1.bf16.msra.mxu1 %v9542_v62  ;;  %v9552_v53 = vld [vmem:[#allocation126_spill] sm:$0xff]  ;;  %v9553_v62 = vld [vmem:[#allocation127_spill] sm:$0xff] }
 0x27e   :  { %4891 = vmatprep.subr.bf16.mxu0 %v9543_v4  ;;  %4955 = vmatprep.subr.bf16.mxu1 %v9544_v22  ;;  %v9554_v4 = vld [vmem:[#allocation128_spill] sm:$0xff]  ;;  %v9555_v22 = vld [vmem:[#allocation129_spill] sm:$0xff] }
 0x281   :  { %4893 = vmatpush1.bf16.msra.mxu0 %v9545_v55  ;;  %4957 = vmatpush1.bf16.msra.mxu1 %v9546_v54  ;;  %v9556_v55 = vld [vmem:[#allocation130_spill] sm:$0xff] }
 0x282   :  { %4895 = vmatprep.subr.bf16.mxu0 %v9547_v49  ;;  %4959 = vmatprep.subr.bf16.mxu1 %v9548_v38  ;;  %v9557_v49 = vld [vmem:[#allocation132_spill] sm:$0xff] }
 0x285   :  { %4897 = vmatpush1.bf16.msra.mxu0 %v9549_v7  ;;  %4961 = vmatpush1.bf16.msra.mxu1 %v9550_v15 }
 0x286   :  { %4899 = vmatprep.subr.bf16.mxu0 %v9551_v11  ;;  %4963 = vmatprep.subr.bf16.mxu1 %v9552_v53 }
 0x289   :  { %4901 = vmatpush1.bf16.msra.mxu0 %v9553_v62  ;;  %4965 = vmatpush1.bf16.msra.mxu1 %v9554_v4 }
 0x28a   :  { %4903 = vmatprep.subr.bf16.mxu0 %v9555_v22  ;;  %4967 = vmatprep.subr.bf16.mxu1 %v9556_v55 }
 0x28d   :  { %4905 = vmatpush1.bf16.msra.mxu0 %v7947_v44  ;;  %4969 = vmatpush1.bf16.msra.mxu1 %v9557_v49 }
 0x28e   :  { %4907 = vmatprep.subr.bf16.mxu0 %v7959_v63  ;;  %4971 = vmatprep.subr.bf16.mxu1 %v7961_v46 }
 0x291   :  { %4909 = vmatpush1.bf16.msra.mxu0 %v7983_v19  ;;  %4973 = vmatpush1.bf16.msra.mxu1 %v7985_v14 }
 0x292   :  { %4911 = vmatprep.subr.bf16.mxu0 %v7992_v34  ;;  %4975 = vmatprep.subr.bf16.mxu1 %v7994_v51 }
 0x295   :  { %4913 = vmatpush1.bf16.msra.mxu0 %v8007_v45  ;;  %4977 = vmatpush1.bf16.msra.mxu1 %v8009_v3 }
 0x296   :  { %4979 = vmatprep.subr.bf16.mxu0 %v6760_v25  ;;  %5043 = vmatprep.subr.bf16.mxu1 %v6762_v26 }
 0x298   :  { %2284 = vmatmul.mubr.f32.vlgmr.msra.gmra.mrb[22].mxu0 %v8118_v2  ;;  %2355 = vmatmul.mubr.f32.vlgmr.msra.gmra.mrb[22].mxu1 %v8118_v2  ;;  %v9558_v2 = vld [vmem:[#allocation31_spill] sm:$0xff] }
 0x299   :  { %4981 = vmatpush1.bf16.msra.mxu0 %v6766_v27  ;;  %5045 = vmatpush1.bf16.msra.mxu1 %v6768_v28 }
 0x29a   :  { %4983 = vmatprep.subr.bf16.mxu0 %v6778_v31  ;;  %5047 = vmatprep.subr.bf16.mxu1 %v6780_v32 }
 0x29d   :  { %4985 = vmatpush1.bf16.msra.mxu0 %v6806_v39  ;;  %5049 = vmatpush1.bf16.msra.mxu1 %v6808_v40 }
 0x29e   :  { %4987 = vmatprep.subr.bf16.mxu0 %v6815_v42  ;;  %5051 = vmatprep.subr.bf16.mxu1 %v6817_v43 }
 0x2a1   :  { %4989 = vmatpush1.bf16.msra.mxu0 %v6832_v47  ;;  %5053 = vmatpush1.bf16.msra.mxu1 %v6834_v48 }
 0x2a2   :  { %4991 = vmatprep.subr.bf16.mxu0 %v6849_v52  ;;  %5055 = vmatprep.subr.bf16.mxu1 %v6860_v56  ;;  %v9600_v52 = vld [vmem:[#allocation143_spill] sm:$0xff] }
 0x2a5   :  { %4993 = vmatpush1.bf16.msra.mxu0 %v6862_v57  ;;  %5057 = vmatpush1.bf16.msra.mxu1 %v6871_v60  ;;  %v9598_v57 = vld [vmem:[#allocation141_spill] sm:$0xff] }
 0x2a6   :  { %4995 = vmatprep.subr.bf16.mxu0 %v6885_v0  ;;  %5059 = vmatprep.subr.bf16.mxu1 %v6896_v5  ;;  %v9559_v5 = vld [vmem:[#allocation32_spill] sm:$0xff]  ;;  %v9597_v0 = vld [vmem:[#allocation70_spill] sm:$0xff] }
 0x2a9   :  { %4997 = vmatpush1.bf16.msra.mxu0 %v6898_v6  ;;  %5061 = vmatpush1.bf16.msra.mxu1 %v6907_v9  ;;  %v9560_v6 = vld [vmem:[#allocation33_spill] sm:$0xff]  ;;  %v9561_v9 = vld [vmem:[#allocation34_spill] sm:$0xff] }
 0x2aa   :  { %4999 = vmatprep.subr.bf16.mxu0 %v6921_v13  ;;  %5063 = vmatprep.subr.bf16.mxu1 %v6932_v17  ;;  %v9562_v13 = vld [vmem:[#allocation35_spill] sm:$0xff]  ;;  %v9563_v17 = vld [vmem:[#allocation36_spill] sm:$0xff] }
 0x2ad   :  { %5001 = vmatpush1.bf16.msra.mxu0 %v6934_v18  ;;  %5065 = vmatpush1.bf16.msra.mxu1 %v6943_v21  ;;  %v9564_v18 = vld [vmem:[#allocation37_spill] sm:$0xff]  ;;  %v9565_v21 = vld [vmem:[#allocation38_spill] sm:$0xff] }
 0x2ae   :  { %5003 = vmatprep.subr.bf16.mxu0 %v6957_v29  ;;  %5067 = vmatprep.subr.bf16.mxu1 %v6968_v35  ;;  %v9566_v29 = vld [vmem:[#allocation39_spill] sm:$0xff]  ;;  %v9567_v35 = vld [vmem:[#allocation40_spill] sm:$0xff] }
 0x2b1   :  { %5005 = vmatpush1.bf16.msra.mxu0 %v6970_v36  ;;  %5069 = vmatpush1.bf16.msra.mxu1 %v9558_v2  ;;  %v9568_v36 = vld [vmem:[#allocation41_spill] sm:$0xff]  ;;  %v9569_v2 = vld [vmem:[#allocation42_spill] sm:$0xff] }
 0x2b2   :  { %5007 = vmatprep.subr.bf16.mxu0 %v9559_v5  ;;  %5071 = vmatprep.subr.bf16.mxu1 %v9560_v6  ;;  %v9570_v5 = vld [vmem:[#allocation43_spill] sm:$0xff]  ;;  %v9571_v6 = vld [vmem:[#allocation44_spill] sm:$0xff] }
 0x2b5   :  { %5009 = vmatpush1.bf16.msra.mxu0 %v9561_v9  ;;  %5073 = vmatpush1.bf16.msra.mxu1 %v9562_v13  ;;  %v9572_v9 = vld [vmem:[#allocation45_spill] sm:$0xff]  ;;  %v9573_v13 = vld [vmem:[#allocation46_spill] sm:$0xff] }
 0x2b6   :  { %5011 = vmatprep.subr.bf16.mxu0 %v9563_v17  ;;  %5075 = vmatprep.subr.bf16.mxu1 %v9564_v18  ;;  %v9574_v17 = vld [vmem:[#allocation47_spill] sm:$0xff]  ;;  %v9575_v18 = vld [vmem:[#allocation48_spill] sm:$0xff] }
 0x2b9   :  { %5013 = vmatpush1.bf16.msra.mxu0 %v9565_v21  ;;  %5077 = vmatpush1.bf16.msra.mxu1 %v9566_v29  ;;  %v9576_v21 = vld [vmem:[#allocation49_spill] sm:$0xff]  ;;  %v9577_v29 = vld [vmem:[#allocation50_spill] sm:$0xff] }
 0x2ba   :  { %5015 = vmatprep.subr.bf16.mxu0 %v9567_v35  ;;  %5079 = vmatprep.subr.bf16.mxu1 %v9568_v36  ;;  %v9578_v35 = vld [vmem:[#allocation51_spill] sm:$0xff]  ;;  %v9579_v36 = vld [vmem:[#allocation52_spill] sm:$0xff] }
 0x2bd   :  { %5017 = vmatpush1.bf16.msra.mxu0 %v9569_v2  ;;  %5081 = vmatpush1.bf16.msra.mxu1 %v9570_v5  ;;  %v9580_v2 = vld [vmem:[#allocation53_spill] sm:$0xff]  ;;  %v9581_v5 = vld [vmem:[#allocation54_spill] sm:$0xff] }
 0x2be   :  { %5019 = vmatprep.subr.bf16.mxu0 %v9571_v6  ;;  %5083 = vmatprep.subr.bf16.mxu1 %v9572_v9  ;;  %v9582_v6 = vld [vmem:[#allocation55_spill] sm:$0xff]  ;;  %v9583_v9 = vld [vmem:[#allocation56_spill] sm:$0xff] }
 0x2c1   :  { %5021 = vmatpush1.bf16.msra.mxu0 %v9573_v13  ;;  %5085 = vmatpush1.bf16.msra.mxu1 %v9574_v17  ;;  %v9584_v13 = vld [vmem:[#allocation57_spill] sm:$0xff]  ;;  %v9585_v17 = vld [vmem:[#allocation58_spill] sm:$0xff] }
 0x2c2   :  { %5023 = vmatprep.subr.bf16.mxu0 %v9575_v18  ;;  %5087 = vmatprep.subr.bf16.mxu1 %v9576_v21  ;;  %v9586_v18 = vld [vmem:[#allocation59_spill] sm:$0xff]  ;;  %v9587_v21 = vld [vmem:[#allocation60_spill] sm:$0xff] }
 0x2c5   :  { %5025 = vmatpush1.bf16.msra.mxu0 %v9577_v29  ;;  %5089 = vmatpush1.bf16.msra.mxu1 %v9578_v35  ;;  %v9588_v29 = vld [vmem:[#allocation61_spill] sm:$0xff]  ;;  %v9589_v35 = vld [vmem:[#allocation62_spill] sm:$0xff] }
 0x2c6   :  { %5027 = vmatprep.subr.bf16.mxu0 %v9579_v36  ;;  %5091 = vmatprep.subr.bf16.mxu1 %v9580_v2  ;;  %v9590_v36 = vld [vmem:[#allocation63_spill] sm:$0xff]  ;;  %v9591_v2 = vld [vmem:[#allocation64_spill] sm:$0xff] }
 0x2c9   :  { %5029 = vmatpush1.bf16.msra.mxu0 %v9581_v5  ;;  %5093 = vmatpush1.bf16.msra.mxu1 %v9582_v6  ;;  %v9592_v5 = vld [vmem:[#allocation65_spill] sm:$0xff]  ;;  %v9593_v6 = vld [vmem:[#allocation66_spill] sm:$0xff] }
 0x2ca   :  { %5031 = vmatprep.subr.bf16.mxu0 %v9583_v9  ;;  %5095 = vmatprep.subr.bf16.mxu1 %v9584_v13  ;;  %v9594_v9 = vld [vmem:[#allocation67_spill] sm:$0xff]  ;;  %v9595_v13 = vld [vmem:[#allocation68_spill] sm:$0xff] }
 0x2cd   :  { %5033 = vmatpush1.bf16.msra.mxu0 %v9585_v17  ;;  %5097 = vmatpush1.bf16.msra.mxu1 %v9586_v18  ;;  %v9596_v17 = vld [vmem:[#allocation69_spill] sm:$0xff] }
 0x2ce   :  { %5035 = vmatprep.subr.bf16.mxu0 %v9587_v21  ;;  %5099 = vmatprep.subr.bf16.mxu1 %v9588_v29 }
 0x2d1   :  { %5037 = vmatpush1.bf16.msra.mxu0 %v9589_v35  ;;  %5101 = vmatpush1.bf16.msra.mxu1 %v9590_v36 }
 0x2d2   :  { %5039 = vmatprep.subr.bf16.mxu0 %v9591_v2  ;;  %5103 = vmatprep.subr.bf16.mxu1 %v9592_v5  ;;  %v9599_v5 = vld [vmem:[#allocation142_spill] sm:$0xff] }
 0x2d5   :  { %5041 = vmatpush1.bf16.msra.mxu0 %v9593_v6  ;;  %5105 = vmatpush1.bf16.msra.mxu1 %v9594_v9 }
 0x2d6   :  { %5107 = vmatprep.subr.bf16.mxu0 %v9595_v13  ;;  %5171 = vmatprep.subr.bf16.mxu1 %v9596_v17 }
 0x32b   :  { %v2143_v18 = vpop.f32.mrb[20].mxu0  ;;  %v2214_v21 = vpop.f32.mrb[20].mxu1 }
 0x32c   :  { %v2361_v29 = vadd.f32 %v2143_v18, %v9597_v0  ;;  %v2145_v60 = vpop.f32.mrb[21].mxu0  ;;  %v2216_v35 = vpop.f32.mrb[21].mxu1  ;;  %v2363_v6 = vadd.f32 %v2214_v21, %v9599_v5 }
 0x32d   :  { %v2362_v36 = vadd.f32 %v2145_v60, %v9598_v57  ;;  %v2364_v9 = vadd.f32 %v2216_v35, %v9600_v52 }
 0x32e   :  { %v4437_v56 = vmul.f32 -1.442695, %v2361_v29  ;;  %v4439_v48 = vmul.f32 -1.442695, %v2363_v6 }
 0x32f   :  { %v4438_v2 = vmul.f32 -1.442695, %v2362_v36 }
 0x330   :  { %6420 = vpow2.f32 %v4437_v56 }
 0x331   :  { %6422 = vpow2.f32 %v4438_v2  ;;  %v9601_v2 = vld [vmem:[#allocation144_spill] sm:$0xff] }
 0x332   :  { %6424 = vtanh.f32 %v2364_v9 }
 0x333   :  { %6426 = vpow2.f32 %v4439_v48 }
 0x33a   :  { %v6421_v13 = vpop.eup %6420 }
 0x33b   :  { %v2374_v47 = vadd.f32 1.0, %v6421_v13  ;;  %v6423_v17 = vpop.eup %6422 }
 0x33c   :  { %v2375_v18 = vadd.f32 1.0, %v6423_v17  ;;  %v6425_v0 = vpop.eup %6424 }
 0x33d   :  { %6428 = vrcp.f32 %v2374_v47  ;;  %v6427_v43 = vpop.eup %6426 }
 0x33e   :  { %6430 = vrcp.f32 %v2375_v18  ;;  %v2376_v56 = vadd.f32 1.0, %v6427_v43 }
 0x340   :  { %6432 = vrcp.f32 %v2376_v56 }
 0x347   :  { %v6429_v60 = vpop.eup %6428 }
 0x348   :  { %v2385_v29 = vmul.f32 %v6429_v60, %v6425_v0  ;;  %v6431_v36 = vpop.eup %6430 }
 0x349   :  { %v2384_v57 = vmul.f32 %v6431_v36, %v9601_v2  ;;  %v9604_v36 = vld [vmem:[#allocation74_spill] sm:$0xff] }
 0x34a   :  { %v6433_v6 = vpop.eup %6432 }
 0x34b   :  { %v8257_v21 = vadd.f32 %v2385_v29, %v2384_v57  ;;  %v9603_v29 = vld [vmem:[#allocation73_spill] sm:$0xff] }
 0x34c   :  { %v9605_v56 = vcombine.low %v9603_v29, %v9604_v36  ;;  %v9614_v29 = vld [vmem:[#allocation101_spill] sm:$0xff]  ;;  %v9615_v36 = vld [vmem:[#allocation102_spill] sm:$0xff] }
 0x34d   :  { %9602 = vst [vmem:[#allocation71_spill] sm:$0xff] %v8257_v21  ;;  %6434 = vtanh.f32 %v8257_v21 }
 0x357   :  { %v6435_v9 = vpop.eup %6434 }
 0x358   :  { %v2388_v13 = vmul.f32 %v6435_v9, %v6433_v6 }
 0x35a   :  { %2497 = vmatprep.mubr.f32.mxu0 %v2388_v13  ;;  %2568 = vmatprep.mubr.f32.mxu1 %v2388_v13 }
 0x36b   :  { %v2285_v47 = vpop.f32.mrb[22].mxu0  ;;  %v2356_v48 = vpop.f32.mrb[22].mxu1 }
 0x36c   :  { %v2287_v17 = vpop.f32.mrb[23].mxu0  ;;  %v2358_v35 = vpop.f32.mrb[23].mxu1 }
 0x36d   :  { %v2394_v18 = vcombine.low %v2285_v47, %v2287_v17  ;;  %v2395_v0 = vcombine.low %v2356_v48, %v2358_v35 }
 0x36f   :  { %v2402_v43 = vrot.slane %v2394_v18, %v7354_v20  ;;  %v2409_v60 = vrot.slane %v2395_v0, %v7354_v20 }
 0x371   :  { %v2410_v57 = vcombine.low %v2402_v43, %v2409_v60  ;;  %v9612_v60 = vld [vmem:[#allocation99_spill] sm:$0xff] }
 0x373   :  { %v2412_v2 = vadd.f32 %v2410_v57, %v9605_v56  ;;  %v9613_v57 = vld [vmem:[#allocation100_spill] sm:$0xff]  ;;  %v9616_v56 = vld [vmem:[#allocation103_spill] sm:$0xff] }
 0x375   :  { %v4440_v21 = vmul.f32 -1.442695, %v2412_v2  ;;  %v2420_v52 = vrot.slane %v2412_v2, 6  ;;  %v9617_v2 = vld [vmem:[#allocation104_spill] sm:$0xff] }
 0x377   :  { %6436 = vpow2.f32 %v4440_v21  ;;  %v9610_v21 = vld [vmem:[#allocation97_spill] sm:$0xff] }
 0x381   :  { %v6437_v6 = vpop.eup %6436 }
 0x382   :  { %v2416_v9 = vadd.f32 1.0, %v6437_v6  ;;  %v9618_v6 = vld [vmem:[#allocation105_spill] sm:$0xff] }
 0x384   :  { %6438 = vrcp.f32 %v2416_v9  ;;  %v9619_v9 = vld [vmem:[#allocation106_spill] sm:$0xff] }
 0x385   :  { %6440 = vtanh.f32 %v2420_v52  ;;  %v9607_v52 = vld [vmem:[#allocation94_spill] sm:$0xff] }
 0x38e   :  { %v6439_v5 = vpop.eup %6438 }
 0x38f   :  { %v2424_v42 = vrot.slane %v6439_v5, 2  ;;  %v6441_v47 = vpop.eup %6440  ;;  %v2430_v18 = vrot.slane %v6439_v5, 4 }
 0x390   :  { %v2427_v48 = vmul.f32 %v6441_v47, %v6439_v5  ;;  %v9608_v5 = vld [vmem:[#allocation95_spill] sm:$0xff] }
 0x391   :  { %v2426_v17 = vmul.f32 %v2424_v42, %v8115_v16  ;;  %v9606_v42 = vld [vmem:[#allocation93_spill] sm:$0xff]  ;;  %v9609_v16 = vld [vmem:[#allocation96_spill] sm:$0xff]  ;;  %v9620_v47 = vld [vmem:[#allocation107_spill] sm:$0xff] }
 0x393   :  { %v8266_v35 = vadd.f32 %v2427_v48, %v2426_v17  ;;  %v9621_v48 = vld [vmem:[#allocation108_spill] sm:$0xff]  ;;  %v9622_v17 = vld [vmem:[#allocation109_spill] sm:$0xff] }
 0x395   :  { %6442 = vtanh.f32 %v8266_v35 }
 0x39f   :  { %v6443_v0 = vpop.eup %6442 }
 0x3a0   :  { %v8269_v43 = vmul.f32 %v6443_v0, %v2430_v18  ;;  %v9623_v18 = vld [vmem:[#allocation110_spill] sm:$0xff]  ;;  %v9624_v0 = vld [vmem:[#allocation111_spill] sm:$0xff] }
 0x3a2   :  { %2498 = vmatmul.mubr.f32.vlgmr.msra.gmra.mrb[24].mxu0 %v8269_v43  ;;  %2569 = vmatmul.mubr.f32.vlgmr.msra.gmra.mrb[24].mxu1 %v8269_v43 }
 0x3a3   :  { %5109 = vmatpush1.bf16.msra.mxu0 %v7475_v23  ;;  %5173 = vmatpush1.bf16.msra.mxu1 %v7477_v8 }
 0x3a4   :  { %2639 = vmatprep.mubr.f32.mxu0 %v2388_v13  ;;  %2710 = vmatprep.mubr.f32.mxu1 %v2388_v13  ;;  %v9611_v13 = vld [vmem:[#allocation98_spill] sm:$0xff] }
 0x3a5   :  { %5111 = vmatprep.subr.bf16.mxu0 %v7487_v12  ;;  %5175 = vmatprep.subr.bf16.mxu1 %v7489_v58 }
 0x3a7   :  { %5113 = vmatpush1.bf16.msra.mxu0 %v7513_v37  ;;  %5177 = vmatpush1.bf16.msra.mxu1 %v7515_v59 }
 0x3a8   :  { %5115 = vmatprep.subr.bf16.mxu0 %v9511_v41  ;;  %5179 = vmatprep.subr.bf16.mxu1 %v9512_v61 }
 0x3ab   :  { %5117 = vmatpush1.bf16.msra.mxu0 %v9513_v33  ;;  %5181 = vmatpush1.bf16.msra.mxu1 %v9514_v1 }
 0x3ac   :  { %5119 = vmatprep.subr.bf16.mxu0 %v9515_v30  ;;  %5183 = vmatprep.subr.bf16.mxu1 %v9516_v24 }
 0x3af   :  { %5121 = vmatpush1.bf16.msra.mxu0 %v9517_v50  ;;  %5185 = vmatpush1.bf16.msra.mxu1 %v9518_v10 }
 0x3b0   :  { %5123 = vmatprep.subr.bf16.mxu0 %v9606_v42  ;;  %5187 = vmatprep.subr.bf16.mxu1 %v9607_v52 }
 0x3b3   :  { %5125 = vmatpush1.bf16.msra.mxu0 %v9608_v5  ;;  %5189 = vmatpush1.bf16.msra.mxu1 %v9609_v16 }
 0x3b4   :  { %5127 = vmatprep.subr.bf16.mxu0 %v9610_v21  ;;  %5191 = vmatprep.subr.bf16.mxu1 %v9611_v13 }
 0x3b7   :  { %5129 = vmatpush1.bf16.msra.mxu0 %v9612_v60  ;;  %5193 = vmatpush1.bf16.msra.mxu1 %v9613_v57 }
 0x3b8   :  { %5131 = vmatprep.subr.bf16.mxu0 %v9614_v29  ;;  %5195 = vmatprep.subr.bf16.mxu1 %v9615_v36  ;;  %v9625_v29 = vld [vmem:[#allocation112_spill] sm:$0xff]  ;;  %v9626_v36 = vld [vmem:[#allocation113_spill] sm:$0xff] }
 0x3bb   :  { %5133 = vmatpush1.bf16.msra.mxu0 %v9616_v56  ;;  %5197 = vmatpush1.bf16.msra.mxu1 %v9617_v2  ;;  %v9627_v56 = vld [vmem:[#allocation114_spill] sm:$0xff]  ;;  %v9628_v2 = vld [vmem:[#allocation115_spill] sm:$0xff] }
 0x3bc   :  { %5135 = vmatprep.subr.bf16.mxu0 %v9618_v6  ;;  %5199 = vmatprep.subr.bf16.mxu1 %v9619_v9  ;;  %v9629_v6 = vld [vmem:[#allocation116_spill] sm:$0xff]  ;;  %v9630_v9 = vld [vmem:[#allocation117_spill] sm:$0xff] }
 0x3bf   :  { %5137 = vmatpush1.bf16.msra.mxu0 %v9620_v47  ;;  %5201 = vmatpush1.bf16.msra.mxu1 %v9621_v48  ;;  %v9631_v47 = vld [vmem:[#allocation118_spill] sm:$0xff]  ;;  %v9632_v48 = vld [vmem:[#allocation119_spill] sm:$0xff] }
 0x3c0   :  { %5139 = vmatprep.subr.bf16.mxu0 %v9622_v17  ;;  %5203 = vmatprep.subr.bf16.mxu1 %v9623_v18  ;;  %v9633_v18 = vld [vmem:[#allocation121_spill] sm:$0xff] }
 0x3c3   :  { %5141 = vmatpush1.bf16.msra.mxu0 %v9624_v0  ;;  %5205 = vmatpush1.bf16.msra.mxu1 %v9625_v29 }
 0x3c4   :  { %5143 = vmatprep.subr.bf16.mxu0 %v9626_v36  ;;  %5207 = vmatprep.subr.bf16.mxu1 %v9627_v56 }
 0x3c7   :  { %5145 = vmatpush1.bf16.msra.mxu0 %v9628_v2  ;;  %5209 = vmatpush1.bf16.msra.mxu1 %v9629_v6 }
 0x3c8   :  { %5147 = vmatprep.subr.bf16.mxu0 %v9630_v9  ;;  %5211 = vmatprep.subr.bf16.mxu1 %v9631_v47 }
 0x3cb   :  { %5149 = vmatpush1.bf16.msra.mxu0 %v9632_v48  ;;  %5213 = vmatpush1.bf16.msra.mxu1 %v9546_v54 }
 0x3cc   :  { %5151 = vmatprep.subr.bf16.mxu0 %v9633_v18  ;;  %5215 = vmatprep.subr.bf16.mxu1 %v9548_v38 }
 0x3cf   :  { %5153 = vmatpush1.bf16.msra.mxu0 %v9549_v7  ;;  %5217 = vmatpush1.bf16.msra.mxu1 %v9550_v15 }
 0x3d0   :  { %5155 = vmatprep.subr.bf16.mxu0 %v9551_v11  ;;  %5219 = vmatprep.subr.bf16.mxu1 %v9552_v53 }
 0x3d3   :  { %5157 = vmatpush1.bf16.msra.mxu0 %v9553_v62  ;;  %5221 = vmatpush1.bf16.msra.mxu1 %v9554_v4 }
 0x3d4   :  { %5159 = vmatprep.subr.bf16.mxu0 %v9555_v22  ;;  %5223 = vmatprep.subr.bf16.mxu1 %v9556_v55 }
 0x3d7   :  { %5161 = vmatpush1.bf16.msra.mxu0 %v7947_v44  ;;  %5225 = vmatpush1.bf16.msra.mxu1 %v9557_v49 }
 0x3d8   :  { %5163 = vmatprep.subr.bf16.mxu0 %v7959_v63  ;;  %5227 = vmatprep.subr.bf16.mxu1 %v7961_v46  ;;  %v9695_v46 = vld [vmem:[#allocation143_spill] sm:$0xff] }
 0x3db   :  { %5165 = vmatpush1.bf16.msra.mxu0 %v7983_v19  ;;  %5229 = vmatpush1.bf16.msra.mxu1 %v7985_v14  ;;  %v9693_v14 = vld [vmem:[#allocation141_spill] sm:$0xff] }
 0x3dc   :  { %5167 = vmatprep.subr.bf16.mxu0 %v7992_v34  ;;  %5231 = vmatprep.subr.bf16.mxu1 %v7994_v51  ;;  %v9692_v51 = vld [vmem:[#allocation70_spill] sm:$0xff] }
 0x3df   :  { %5169 = vmatpush1.bf16.msra.mxu0 %v8007_v45  ;;  %5233 = vmatpush1.bf16.msra.mxu1 %v8009_v3  ;;  %v9634_v3 = vld [vmem:[#allocation12_spill] sm:$0xff]  ;;  %v9637_v45 = vld [vmem:[#allocation15_spill] sm:$0xff] }
 0x3e0   :  { %5235 = vmatprep.subr.bf16.mxu0 %v6760_v25  ;;  %5299 = vmatprep.subr.bf16.mxu1 %v6762_v26  ;;  %v9635_v25 = vld [vmem:[#allocation13_spill] sm:$0xff]  ;;  %v9636_v26 = vld [vmem:[#allocation14_spill] sm:$0xff] }
 0x3e2   :  { %2640 = vmatmul.mubr.f32.vlgmr.msra.gmra.mrb[26].mxu0 %v8269_v43  ;;  %2711 = vmatmul.mubr.f32.vlgmr.msra.gmra.mrb[26].mxu1 %v8269_v43  ;;  %v9638_v43 = vld [vmem:[#allocation16_spill] sm:$0xff] }
 0x3e3   :  { %5237 = vmatpush1.bf16.msra.mxu0 %v6766_v27  ;;  %5301 = vmatpush1.bf16.msra.mxu1 %v6768_v28  ;;  %v9639_v27 = vld [vmem:[#allocation17_spill] sm:$0xff]  ;;  %v9640_v28 = vld [vmem:[#allocation18_spill] sm:$0xff] }
 0x3e4   :  { %5239 = vmatprep.subr.bf16.mxu0 %v6778_v31  ;;  %5303 = vmatprep.subr.bf16.mxu1 %v6780_v32  ;;  %v9641_v31 = vld [vmem:[#allocation19_spill] sm:$0xff]  ;;  %v9642_v32 = vld [vmem:[#allocation20_spill] sm:$0xff] }
 0x3e7   :  { %5241 = vmatpush1.bf16.msra.mxu0 %v6806_v39  ;;  %5305 = vmatpush1.bf16.msra.mxu1 %v6808_v40  ;;  %v9643_v39 = vld [vmem:[#allocation21_spill] sm:$0xff]  ;;  %v9644_v40 = vld [vmem:[#allocation22_spill] sm:$0xff] }
 0x3e8   :  { %5243 = vmatprep.subr.bf16.mxu0 %v9634_v3  ;;  %5307 = vmatprep.subr.bf16.mxu1 %v9635_v25  ;;  %v9645_v3 = vld [vmem:[#allocation23_spill] sm:$0xff]  ;;  %v9646_v25 = vld [vmem:[#allocation24_spill] sm:$0xff] }
 0x3eb   :  { %5245 = vmatpush1.bf16.msra.mxu0 %v9636_v26  ;;  %5309 = vmatpush1.bf16.msra.mxu1 %v9637_v45  ;;  %v9647_v26 = vld [vmem:[#allocation25_spill] sm:$0xff]  ;;  %v9648_v45 = vld [vmem:[#allocation26_spill] sm:$0xff] }
 0x3ec   :  { %5247 = vmatprep.subr.bf16.mxu0 %v9638_v43  ;;  %5311 = vmatprep.subr.bf16.mxu1 %v9639_v27  ;;  %v9649_v43 = vld [vmem:[#allocation27_spill] sm:$0xff]  ;;  %v9650_v27 = vld [vmem:[#allocation28_spill] sm:$0xff] }
 0x3ef   :  { %5249 = vmatpush1.bf16.msra.mxu0 %v9640_v28  ;;  %5313 = vmatpush1.bf16.msra.mxu1 %v9641_v31  ;;  %v9651_v28 = vld [vmem:[#allocation29_spill] sm:$0xff]  ;;  %v9652_v31 = vld [vmem:[#allocation30_spill] sm:$0xff] }
 0x3f0   :  { %5251 = vmatprep.subr.bf16.mxu0 %v9642_v32  ;;  %5315 = vmatprep.subr.bf16.mxu1 %v9643_v39  ;;  %v9653_v32 = vld [vmem:[#allocation31_spill] sm:$0xff]  ;;  %v9654_v39 = vld [vmem:[#allocation32_spill] sm:$0xff] }
 0x3f3   :  { %5253 = vmatpush1.bf16.msra.mxu0 %v9644_v40  ;;  %5317 = vmatpush1.bf16.msra.mxu1 %v9645_v3  ;;  %v9655_v40 = vld [vmem:[#allocation33_spill] sm:$0xff]  ;;  %v9656_v3 = vld [vmem:[#allocation34_spill] sm:$0xff] }
 0x3f4   :  { %5255 = vmatprep.subr.bf16.mxu0 %v9646_v25  ;;  %5319 = vmatprep.subr.bf16.mxu1 %v9647_v26  ;;  %v9657_v25 = vld [vmem:[#allocation35_spill] sm:$0xff]  ;;  %v9658_v26 = vld [vmem:[#allocation36_spill] sm:$0xff] }
 0x3f7   :  { %5257 = vmatpush1.bf16.msra.mxu0 %v9648_v45  ;;  %5321 = vmatpush1.bf16.msra.mxu1 %v9649_v43  ;;  %v9659_v45 = vld [vmem:[#allocation37_spill] sm:$0xff]  ;;  %v9660_v43 = vld [vmem:[#allocation38_spill] sm:$0xff] }
 0x3f8   :  { %5259 = vmatprep.subr.bf16.mxu0 %v9650_v27  ;;  %5323 = vmatprep.subr.bf16.mxu1 %v9651_v28  ;;  %v9661_v27 = vld [vmem:[#allocation39_spill] sm:$0xff]  ;;  %v9662_v28 = vld [vmem:[#allocation40_spill] sm:$0xff] }
 0x3fb   :  { %5261 = vmatpush1.bf16.msra.mxu0 %v9652_v31  ;;  %5325 = vmatpush1.bf16.msra.mxu1 %v9653_v32  ;;  %v9663_v31 = vld [vmem:[#allocation41_spill] sm:$0xff]  ;;  %v9664_v32 = vld [vmem:[#allocation42_spill] sm:$0xff] }
 0x3fc   :  { %5263 = vmatprep.subr.bf16.mxu0 %v9654_v39  ;;  %5327 = vmatprep.subr.bf16.mxu1 %v9655_v40  ;;  %v9665_v39 = vld [vmem:[#allocation43_spill] sm:$0xff]  ;;  %v9666_v40 = vld [vmem:[#allocation44_spill] sm:$0xff] }
 0x3ff   :  { %5265 = vmatpush1.bf16.msra.mxu0 %v9656_v3  ;;  %5329 = vmatpush1.bf16.msra.mxu1 %v9657_v25  ;;  %v9667_v3 = vld [vmem:[#allocation45_spill] sm:$0xff]  ;;  %v9668_v25 = vld [vmem:[#allocation46_spill] sm:$0xff] }
 0x400   :  { %5267 = vmatprep.subr.bf16.mxu0 %v9658_v26  ;;  %5331 = vmatprep.subr.bf16.mxu1 %v9659_v45  ;;  %v9669_v26 = vld [vmem:[#allocation47_spill] sm:$0xff]  ;;  %v9670_v45 = vld [vmem:[#allocation48_spill] sm:$0xff] }
 0x403   :  { %5269 = vmatpush1.bf16.msra.mxu0 %v9660_v43  ;;  %5333 = vmatpush1.bf16.msra.mxu1 %v9661_v27  ;;  %v9671_v43 = vld [vmem:[#allocation49_spill] sm:$0xff]  ;;  %v9672_v27 = vld [vmem:[#allocation50_spill] sm:$0xff] }
 0x404   :  { %5271 = vmatprep.subr.bf16.mxu0 %v9662_v28  ;;  %5335 = vmatprep.subr.bf16.mxu1 %v9663_v31  ;;  %v9673_v28 = vld [vmem:[#allocation51_spill] sm:$0xff]  ;;  %v9674_v31 = vld [vmem:[#allocation52_spill] sm:$0xff] }
 0x407   :  { %5273 = vmatpush1.bf16.msra.mxu0 %v9664_v32  ;;  %5337 = vmatpush1.bf16.msra.mxu1 %v9665_v39  ;;  %v9675_v32 = vld [vmem:[#allocation53_spill] sm:$0xff]  ;;  %v9676_v39 = vld [vmem:[#allocation54_spill] sm:$0xff] }
 0x408   :  { %5275 = vmatprep.subr.bf16.mxu0 %v9666_v40  ;;  %5339 = vmatprep.subr.bf16.mxu1 %v9667_v3  ;;  %v9677_v40 = vld [vmem:[#allocation55_spill] sm:$0xff]  ;;  %v9678_v3 = vld [vmem:[#allocation56_spill] sm:$0xff] }
 0x40b   :  { %5277 = vmatpush1.bf16.msra.mxu0 %v9668_v25  ;;  %5341 = vmatpush1.bf16.msra.mxu1 %v9669_v26  ;;  %v9679_v25 = vld [vmem:[#allocation57_spill] sm:$0xff]  ;;  %v9680_v26 = vld [vmem:[#allocation58_spill] sm:$0xff] }
 0x40c   :  { %5279 = vmatprep.subr.bf16.mxu0 %v9670_v45  ;;  %5343 = vmatprep.subr.bf16.mxu1 %v9671_v43  ;;  %v9681_v45 = vld [vmem:[#allocation59_spill] sm:$0xff]  ;;  %v9682_v43 = vld [vmem:[#allocation60_spill] sm:$0xff] }
 0x40f   :  { %5281 = vmatpush1.bf16.msra.mxu0 %v9672_v27  ;;  %5345 = vmatpush1.bf16.msra.mxu1 %v9673_v28  ;;  %v9683_v27 = vld [vmem:[#allocation61_spill] sm:$0xff]  ;;  %v9684_v28 = vld [vmem:[#allocation62_spill] sm:$0xff] }
 0x410   :  { %5283 = vmatprep.subr.bf16.mxu0 %v9674_v31  ;;  %5347 = vmatprep.subr.bf16.mxu1 %v9675_v32  ;;  %v9685_v31 = vld [vmem:[#allocation63_spill] sm:$0xff]  ;;  %v9686_v32 = vld [vmem:[#allocation64_spill] sm:$0xff] }
 0x413   :  { %5285 = vmatpush1.bf16.msra.mxu0 %v9676_v39  ;;  %5349 = vmatpush1.bf16.msra.mxu1 %v9677_v40  ;;  %v9687_v39 = vld [vmem:[#allocation65_spill] sm:$0xff]  ;;  %v9688_v40 = vld [vmem:[#allocation66_spill] sm:$0xff] }
 0x414   :  { %5287 = vmatprep.subr.bf16.mxu0 %v9678_v3  ;;  %5351 = vmatprep.subr.bf16.mxu1 %v9679_v25  ;;  %v9689_v3 = vld [vmem:[#allocation67_spill] sm:$0xff]  ;;  %v9690_v25 = vld [vmem:[#allocation68_spill] sm:$0xff] }
 0x417   :  { %5289 = vmatpush1.bf16.msra.mxu0 %v9680_v26  ;;  %5353 = vmatpush1.bf16.msra.mxu1 %v9681_v45  ;;  %v9691_v26 = vld [vmem:[#allocation69_spill] sm:$0xff] }
 0x418   :  { %5291 = vmatprep.subr.bf16.mxu0 %v9682_v43  ;;  %5355 = vmatprep.subr.bf16.mxu1 %v9683_v27 }
 0x41b   :  { %5293 = vmatpush1.bf16.msra.mxu0 %v9684_v28  ;;  %5357 = vmatpush1.bf16.msra.mxu1 %v9685_v31 }
 0x41c   :  { %5295 = vmatprep.subr.bf16.mxu0 %v9686_v32  ;;  %5359 = vmatprep.subr.bf16.mxu1 %v9687_v39  ;;  %v9694_v39 = vld [vmem:[#allocation142_spill] sm:$0xff] }
 0x41f   :  { %5297 = vmatpush1.bf16.msra.mxu0 %v9688_v40  ;;  %5361 = vmatpush1.bf16.msra.mxu1 %v9689_v3 }
 0x420   :  { %5363 = vmatprep.subr.bf16.mxu0 %v9690_v25  ;;  %5427 = vmatprep.subr.bf16.mxu1 %v9691_v26 }
 0x475   :  { %v2499_v45 = vpop.f32.mrb[24].mxu0  ;;  %v2570_v43 = vpop.f32.mrb[24].mxu1 }
 0x476   :  { %v2717_v27 = vadd.f32 %v2499_v45, %v9692_v51  ;;  %v2501_v34 = vpop.f32.mrb[25].mxu0  ;;  %v2572_v28 = vpop.f32.mrb[25].mxu1  ;;  %v2719_v40 = vadd.f32 %v2570_v43, %v9694_v39 }
 0x477   :  { %v2718_v31 = vadd.f32 %v2501_v34, %v9693_v14  ;;  %v2720_v3 = vadd.f32 %v2572_v28, %v9695_v46 }
 0x478   :  { %v4441_v19 = vmul.f32 -1.442695, %v2717_v27  ;;  %v4443_v63 = vmul.f32 -1.442695, %v2719_v40 }
 0x479   :  { %v4442_v32 = vmul.f32 -1.442695, %v2718_v31 }
 0x47a   :  { %6444 = vpow2.f32 %v4441_v19 }
 0x47b   :  { %6446 = vpow2.f32 %v4442_v32  ;;  %v9696_v32 = vld [vmem:[#allocation71_spill] sm:$0xff] }
 0x47c   :  { %6448 = vtanh.f32 %v2720_v3 }
 0x47d   :  { %6450 = vpow2.f32 %v4443_v63 }
 0x484   :  { %v6445_v25 = vpop.eup %6444 }
 0x485   :  { %v2730_v49 = vadd.f32 1.0, %v6445_v25  ;;  %v6447_v26 = vpop.eup %6446 }
 0x486   :  { %v2731_v45 = vadd.f32 1.0, %v6447_v26  ;;  %v6449_v51 = vpop.eup %6448 }
 0x487   :  { %6452 = vrcp.f32 %v2730_v49  ;;  %v6451_v44 = vpop.eup %6450 }
 0x488   :  { %6454 = vrcp.f32 %v2731_v45  ;;  %v2732_v19 = vadd.f32 1.0, %v6451_v44 }
 0x48a   :  { %6456 = vrcp.f32 %v2732_v19 }
 0x491   :  { %v6453_v34 = vpop.eup %6452 }
 0x492   :  { %v2741_v27 = vmul.f32 %v6453_v34, %v6449_v51  ;;  %v6455_v31 = vpop.eup %6454 }
 0x493   :  { %v2740_v14 = vmul.f32 %v6455_v31, %v9696_v32  ;;  %v9699_v31 = vld [vmem:[#allocation76_spill] sm:$0xff] }
 0x494   :  { %v6457_v25 = vpop.eup %6456 }
 0x495   :  { %v8408_v43 = vadd.f32 %v2741_v27, %v2740_v14  ;;  %v9698_v27 = vld [vmem:[#allocation75_spill] sm:$0xff] }
 0x496   :  { %v9700_v19 = vcombine.low %v9698_v27, %v9699_v31  ;;  %v9709_v27 = vld [vmem:[#allocation110_spill] sm:$0xff] }
 0x497   :  { %9697 = vst [vmem:[#allocation72_spill] sm:$0xff] %v8408_v43  ;;  %6458 = vtanh.f32 %v8408_v43  ;;  %v9710_v31 = vld [vmem:[#allocation130_spill] sm:$0xff] }
 0x4a1   :  { %v6459_v28 = vpop.eup %6458 }
 0x4a2   :  { %v2744_v40 = vmul.f32 %v6459_v28, %v6457_v25 }
 0x4a4   :  { %2853 = vmatprep.mubr.f32.mxu0 %v2744_v40  ;;  %2924 = vmatprep.mubr.f32.mxu1 %v2744_v40 }
 0x4b5   :  { %v2641_v26 = vpop.f32.mrb[26].mxu0  ;;  %v2712_v63 = vpop.f32.mrb[26].mxu1 }
 0x4b6   :  { %v2643_v3 = vpop.f32.mrb[27].mxu0  ;;  %v2714_v49 = vpop.f32.mrb[27].mxu1 }
 0x4b7   :  { %v2750_v45 = vcombine.low %v2641_v26, %v2643_v3  ;;  %v2751_v51 = vcombine.low %v2712_v63, %v2714_v49 }
 0x4b9   :  { %v2758_v44 = vrot.slane %v2750_v45, %v7354_v20  ;;  %v2765_v34 = vrot.slane %v2751_v51, %v7354_v20 }
 0x4bb   :  { %v2766_v14 = vcombine.low %v2758_v44, %v2765_v34  ;;  %v9707_v34 = vld [vmem:[#allocation107_spill] sm:$0xff] }
 0x4bd   :  { %v2768_v32 = vadd.f32 %v2766_v14, %v9700_v19  ;;  %v9708_v14 = vld [vmem:[#allocation108_spill] sm:$0xff]  ;;  %v9711_v19 = vld [vmem:[#allocation131_spill] sm:$0xff] }
 0x4bf   :  { %v4444_v43 = vmul.f32 -1.442695, %v2768_v32  ;;  %v2776_v46 = vrot.slane %v2768_v32, 6  ;;  %v9712_v32 = vld [vmem:[#allocation132_spill] sm:$0xff] }
 0x4c1   :  { %6460 = vpow2.f32 %v4444_v43  ;;  %v9705_v43 = vld [vmem:[#allocation105_spill] sm:$0xff] }
 0x4cb   :  { %v6461_v25 = vpop.eup %6460 }
 0x4cc   :  { %v2772_v28 = vadd.f32 1.0, %v6461_v25  ;;  %v9713_v25 = vld [vmem:[#allocation133_spill] sm:$0xff] }
 0x4ce   :  { %6462 = vrcp.f32 %v2772_v28  ;;  %v9714_v28 = vld [vmem:[#allocation134_spill] sm:$0xff] }
 0x4cf   :  { %6464 = vtanh.f32 %v2776_v46  ;;  %v9702_v46 = vld [vmem:[#allocation102_spill] sm:$0xff] }
 0x4d8   :  { %v6463_v39 = vpop.eup %6462 }
 0x4d9   :  { %v2780_v55 = vrot.slane %v6463_v39, 2  ;;  %v6465_v26 = vpop.eup %6464  ;;  %v2786_v45 = vrot.slane %v6463_v39, 4 }
 0x4da   :  { %v2783_v63 = vmul.f32 %v6465_v26, %v6463_v39  ;;  %v9701_v39 = vld [vmem:[#allocation101_spill] sm:$0xff]  ;;  %v9715_v26 = vld [vmem:[#allocation135_spill] sm:$0xff] }
 0x4db   :  { %v2782_v3 = vmul.f32 %v2780_v55, %v8266_v35  ;;  %v9703_v55 = vld [vmem:[#allocation103_spill] sm:$0xff]  ;;  %v9704_v35 = vld [vmem:[#allocation104_spill] sm:$0xff] }
 0x4dd   :  { %v8417_v49 = vadd.f32 %v2783_v63, %v2782_v3  ;;  %v9716_v63 = vld [vmem:[#allocation136_spill] sm:$0xff]  ;;  %v9717_v3 = vld [vmem:[#allocation137_spill] sm:$0xff] }
 0x4df   :  { %6466 = vtanh.f32 %v8417_v49 }
 0x4e9   :  { %v6467_v51 = vpop.eup %6466 }
 0x4ea   :  { %v8420_v44 = vmul.f32 %v6467_v51, %v2786_v45  ;;  %v9718_v45 = vld [vmem:[#allocation138_spill] sm:$0xff]  ;;  %v9719_v51 = vld [vmem:[#allocation139_spill] sm:$0xff] }
 0x4ec   :  { %2854 = vmatmul.mubr.f32.vlgmr.msra.gmra.mrb[28].mxu0 %v8420_v44  ;;  %2925 = vmatmul.mubr.f32.vlgmr.msra.gmra.mrb[28].mxu1 %v8420_v44 }
 0x4ed   :  { %5365 = vmatpush1.bf16.msra.mxu0 %v7475_v23  ;;  %5429 = vmatpush1.bf16.msra.mxu1 %v7477_v8 }
 0x4ee   :  { %2995 = vmatprep.mubr.f32.mxu0 %v2744_v40  ;;  %3066 = vmatprep.mubr.f32.mxu1 %v2744_v40  ;;  %v9706_v40 = vld [vmem:[#allocation106_spill] sm:$0xff] }
 0x4ef   :  { %5367 = vmatprep.subr.bf16.mxu0 %v7487_v12  ;;  %5431 = vmatprep.subr.bf16.mxu1 %v7489_v58 }
 0x4f1   :  { %5369 = vmatpush1.bf16.msra.mxu0 %v7513_v37  ;;  %5433 = vmatpush1.bf16.msra.mxu1 %v7515_v59 }
 0x4f2   :  { %5371 = vmatprep.subr.bf16.mxu0 %v9511_v41  ;;  %5435 = vmatprep.subr.bf16.mxu1 %v9512_v61 }
 0x4f5   :  { %5373 = vmatpush1.bf16.msra.mxu0 %v9513_v33  ;;  %5437 = vmatpush1.bf16.msra.mxu1 %v9514_v1 }
 0x4f6   :  { %5375 = vmatprep.subr.bf16.mxu0 %v9515_v30  ;;  %5439 = vmatprep.subr.bf16.mxu1 %v9516_v24 }
 0x4f9   :  { %5377 = vmatpush1.bf16.msra.mxu0 %v9517_v50  ;;  %5441 = vmatpush1.bf16.msra.mxu1 %v9518_v10 }
 0x4fa   :  { %5379 = vmatprep.subr.bf16.mxu0 %v9606_v42  ;;  %5443 = vmatprep.subr.bf16.mxu1 %v9607_v52 }
 0x4fd   :  { %5381 = vmatpush1.bf16.msra.mxu0 %v9608_v5  ;;  %5445 = vmatpush1.bf16.msra.mxu1 %v9609_v16 }
 0x4fe   :  { %5383 = vmatprep.subr.bf16.mxu0 %v9610_v21  ;;  %5447 = vmatprep.subr.bf16.mxu1 %v9611_v13 }
 0x501   :  { %5385 = vmatpush1.bf16.msra.mxu0 %v9612_v60  ;;  %5449 = vmatpush1.bf16.msra.mxu1 %v9613_v57 }
 0x502   :  { %5387 = vmatprep.subr.bf16.mxu0 %v9701_v39  ;;  %5451 = vmatprep.subr.bf16.mxu1 %v9702_v46 }
 0x505   :  { %5389 = vmatpush1.bf16.msra.mxu0 %v9703_v55  ;;  %5453 = vmatpush1.bf16.msra.mxu1 %v9704_v35 }
 0x506   :  { %5391 = vmatprep.subr.bf16.mxu0 %v9705_v43  ;;  %5455 = vmatprep.subr.bf16.mxu1 %v9706_v40 }
 0x509   :  { %5393 = vmatpush1.bf16.msra.mxu0 %v9707_v34  ;;  %5457 = vmatpush1.bf16.msra.mxu1 %v9708_v14 }
 0x50a   :  { %5395 = vmatprep.subr.bf16.mxu0 %v9622_v17  ;;  %5459 = vmatprep.subr.bf16.mxu1 %v9709_v27 }
 0x50d   :  { %5397 = vmatpush1.bf16.msra.mxu0 %v9624_v0  ;;  %5461 = vmatpush1.bf16.msra.mxu1 %v9625_v29 }
 0x50e   :  { %5399 = vmatprep.subr.bf16.mxu0 %v9626_v36  ;;  %5463 = vmatprep.subr.bf16.mxu1 %v9627_v56 }
 0x511   :  { %5401 = vmatpush1.bf16.msra.mxu0 %v9628_v2  ;;  %5465 = vmatpush1.bf16.msra.mxu1 %v9629_v6 }
 0x512   :  { %5403 = vmatprep.subr.bf16.mxu0 %v9630_v9  ;;  %5467 = vmatprep.subr.bf16.mxu1 %v9631_v47 }
 0x515   :  { %5405 = vmatpush1.bf16.msra.mxu0 %v9632_v48  ;;  %5469 = vmatpush1.bf16.msra.mxu1 %v9546_v54 }
 0x516   :  { %5407 = vmatprep.subr.bf16.mxu0 %v9633_v18  ;;  %5471 = vmatprep.subr.bf16.mxu1 %v9548_v38 }
 0x519   :  { %5409 = vmatpush1.bf16.msra.mxu0 %v9549_v7  ;;  %5473 = vmatpush1.bf16.msra.mxu1 %v9550_v15 }
 0x51a   :  { %5411 = vmatprep.subr.bf16.mxu0 %v9551_v11  ;;  %5475 = vmatprep.subr.bf16.mxu1 %v9552_v53  ;;  %v9790_v11 = vld [vmem:[#allocation143_spill] sm:$0xff] }
 0x51d   :  { %5413 = vmatpush1.bf16.msra.mxu0 %v9553_v62  ;;  %5477 = vmatpush1.bf16.msra.mxu1 %v9554_v4  ;;  %v9788_v62 = vld [vmem:[#allocation141_spill] sm:$0xff] }
 0x51e   :  { %5415 = vmatprep.subr.bf16.mxu0 %v9555_v22  ;;  %5479 = vmatprep.subr.bf16.mxu1 %v9710_v31  ;;  %v9720_v22 = vld [vmem:[#allocation140_spill] sm:$0xff] }
 0x51f   :  { %v9721_v31 = vld [vmem:[#allocation4_spill] sm:$0xff] }
 0x521   :  { %5417 = vmatpush1.bf16.msra.mxu0 %v9711_v19  ;;  %5481 = vmatpush1.bf16.msra.mxu1 %v9712_v32  ;;  %v9722_v19 = vld [vmem:[#allocation5_spill] sm:$0xff]  ;;  %v9787_v32 = vld [vmem:[#allocation70_spill] sm:$0xff] }
 0x522   :  { %5419 = vmatprep.subr.bf16.mxu0 %v9713_v25  ;;  %5483 = vmatprep.subr.bf16.mxu1 %v9714_v28  ;;  %v9723_v28 = vld [vmem:[#allocation6_spill] sm:$0xff]  ;;  %v9732_v25 = vld [vmem:[#allocation15_spill] sm:$0xff] }
 0x525   :  { %5421 = vmatpush1.bf16.msra.mxu0 %v9715_v26  ;;  %5485 = vmatpush1.bf16.msra.mxu1 %v9716_v63  ;;  %v9724_v26 = vld [vmem:[#allocation7_spill] sm:$0xff]  ;;  %v9725_v63 = vld [vmem:[#allocation8_spill] sm:$0xff] }
 0x526   :  { %5423 = vmatprep.subr.bf16.mxu0 %v9717_v3  ;;  %5487 = vmatprep.subr.bf16.mxu1 %v9718_v45  ;;  %v9726_v3 = vld [vmem:[#allocation9_spill] sm:$0xff]  ;;  %v9727_v45 = vld [vmem:[#allocation10_spill] sm:$0xff] }
 0x529   :  { %5425 = vmatpush1.bf16.msra.mxu0 %v9719_v51  ;;  %5489 = vmatpush1.bf16.msra.mxu1 %v9720_v22  ;;  %v9728_v51 = vld [vmem:[#allocation11_spill] sm:$0xff]  ;;  %v9729_v22 = vld [vmem:[#allocation12_spill] sm:$0xff] }
 0x52a   :  { %5491 = vmatprep.subr.bf16.mxu0 %v9721_v31  ;;  %5555 = vmatprep.subr.bf16.mxu1 %v9722_v19  ;;  %v9730_v31 = vld [vmem:[#allocation13_spill] sm:$0xff]  ;;  %v9731_v19 = vld [vmem:[#allocation14_spill] sm:$0xff] }
 0x52c   :  { %2996 = vmatmul.mubr.f32.vlgmr.msra.gmra.mrb[30].mxu0 %v8420_v44  ;;  %3067 = vmatmul.mubr.f32.vlgmr.msra.gmra.mrb[30].mxu1 %v8420_v44  ;;  %v9733_v44 = vld [vmem:[#allocation16_spill] sm:$0xff] }
 0x52d   :  { %5493 = vmatpush1.bf16.msra.mxu0 %v9723_v28  ;;  %5557 = vmatpush1.bf16.msra.mxu1 %v9724_v26  ;;  %v9734_v28 = vld [vmem:[#allocation17_spill] sm:$0xff]  ;;  %v9735_v26 = vld [vmem:[#allocation18_spill] sm:$0xff] }
 0x52e   :  { %5495 = vmatprep.subr.bf16.mxu0 %v9725_v63  ;;  %5559 = vmatprep.subr.bf16.mxu1 %v9726_v3  ;;  %v9736_v63 = vld [vmem:[#allocation19_spill] sm:$0xff]  ;;  %v9737_v3 = vld [vmem:[#allocation20_spill] sm:$0xff] }
 0x531   :  { %5497 = vmatpush1.bf16.msra.mxu0 %v9727_v45  ;;  %5561 = vmatpush1.bf16.msra.mxu1 %v9728_v51  ;;  %v9738_v45 = vld [vmem:[#allocation21_spill] sm:$0xff]  ;;  %v9739_v51 = vld [vmem:[#allocation22_spill] sm:$0xff] }
 0x532   :  { %5499 = vmatprep.subr.bf16.mxu0 %v9729_v22  ;;  %5563 = vmatprep.subr.bf16.mxu1 %v9730_v31  ;;  %v9740_v22 = vld [vmem:[#allocation23_spill] sm:$0xff]  ;;  %v9741_v31 = vld [vmem:[#allocation24_spill] sm:$0xff] }
 0x535   :  { %5501 = vmatpush1.bf16.msra.mxu0 %v9731_v19  ;;  %5565 = vmatpush1.bf16.msra.mxu1 %v9732_v25  ;;  %v9742_v19 = vld [vmem:[#allocation25_spill] sm:$0xff]  ;;  %v9743_v25 = vld [vmem:[#allocation26_spill] sm:$0xff] }
 0x536   :  { %5503 = vmatprep.subr.bf16.mxu0 %v9733_v44  ;;  %5567 = vmatprep.subr.bf16.mxu1 %v9734_v28  ;;  %v9744_v44 = vld [vmem:[#allocation27_spill] sm:$0xff]  ;;  %v9745_v28 = vld [vmem:[#allocation28_spill] sm:$0xff] }
 0x539   :  { %5505 = vmatpush1.bf16.msra.mxu0 %v9735_v26  ;;  %5569 = vmatpush1.bf16.msra.mxu1 %v9736_v63  ;;  %v9746_v26 = vld [vmem:[#allocation29_spill] sm:$0xff]  ;;  %v9747_v63 = vld [vmem:[#allocation30_spill] sm:$0xff] }
 0x53a   :  { %5507 = vmatprep.subr.bf16.mxu0 %v9737_v3  ;;  %5571 = vmatprep.subr.bf16.mxu1 %v9738_v45  ;;  %v9748_v3 = vld [vmem:[#allocation31_spill] sm:$0xff]  ;;  %v9749_v45 = vld [vmem:[#allocation32_spill] sm:$0xff] }
 0x53d   :  { %5509 = vmatpush1.bf16.msra.mxu0 %v9739_v51  ;;  %5573 = vmatpush1.bf16.msra.mxu1 %v9740_v22  ;;  %v9750_v51 = vld [vmem:[#allocation33_spill] sm:$0xff]  ;;  %v9751_v22 = vld [vmem:[#allocation34_spill] sm:$0xff] }
 0x53e   :  { %5511 = vmatprep.subr.bf16.mxu0 %v9741_v31  ;;  %5575 = vmatprep.subr.bf16.mxu1 %v9742_v19  ;;  %v9752_v31 = vld [vmem:[#allocation35_spill] sm:$0xff]  ;;  %v9753_v19 = vld [vmem:[#allocation36_spill] sm:$0xff] }
 0x541   :  { %5513 = vmatpush1.bf16.msra.mxu0 %v9743_v25  ;;  %5577 = vmatpush1.bf16.msra.mxu1 %v9744_v44  ;;  %v9754_v25 = vld [vmem:[#allocation37_spill] sm:$0xff]  ;;  %v9755_v44 = vld [vmem:[#allocation38_spill] sm:$0xff] }
 0x542   :  { %5515 = vmatprep.subr.bf16.mxu0 %v9745_v28  ;;  %5579 = vmatprep.subr.bf16.mxu1 %v9746_v26  ;;  %v9756_v28 = vld [vmem:[#allocation39_spill] sm:$0xff]  ;;  %v9757_v26 = vld [vmem:[#allocation40_spill] sm:$0xff] }
 0x545   :  { %5517 = vmatpush1.bf16.msra.mxu0 %v9747_v63  ;;  %5581 = vmatpush1.bf16.msra.mxu1 %v9748_v3  ;;  %v9758_v63 = vld [vmem:[#allocation41_spill] sm:$0xff]  ;;  %v9759_v3 = vld [vmem:[#allocation42_spill] sm:$0xff] }
 0x546   :  { %5519 = vmatprep.subr.bf16.mxu0 %v9749_v45  ;;  %5583 = vmatprep.subr.bf16.mxu1 %v9750_v51  ;;  %v9760_v45 = vld [vmem:[#allocation43_spill] sm:$0xff]  ;;  %v9761_v51 = vld [vmem:[#allocation44_spill] sm:$0xff] }
 0x549   :  { %5521 = vmatpush1.bf16.msra.mxu0 %v9751_v22  ;;  %5585 = vmatpush1.bf16.msra.mxu1 %v9752_v31  ;;  %v9762_v22 = vld [vmem:[#allocation45_spill] sm:$0xff]  ;;  %v9763_v31 = vld [vmem:[#allocation46_spill] sm:$0xff] }
 0x54a   :  { %5523 = vmatprep.subr.bf16.mxu0 %v9753_v19  ;;  %5587 = vmatprep.subr.bf16.mxu1 %v9754_v25  ;;  %v9764_v19 = vld [vmem:[#allocation47_spill] sm:$0xff]  ;;  %v9765_v25 = vld [vmem:[#allocation48_spill] sm:$0xff] }
 0x54d   :  { %5525 = vmatpush1.bf16.msra.mxu0 %v9755_v44  ;;  %5589 = vmatpush1.bf16.msra.mxu1 %v9756_v28  ;;  %v9766_v44 = vld [vmem:[#allocation49_spill] sm:$0xff]  ;;  %v9767_v28 = vld [vmem:[#allocation50_spill] sm:$0xff] }
 0x54e   :  { %5527 = vmatprep.subr.bf16.mxu0 %v9757_v26  ;;  %5591 = vmatprep.subr.bf16.mxu1 %v9758_v63  ;;  %v9768_v26 = vld [vmem:[#allocation51_spill] sm:$0xff]  ;;  %v9769_v63 = vld [vmem:[#allocation52_spill] sm:$0xff] }
 0x551   :  { %5529 = vmatpush1.bf16.msra.mxu0 %v9759_v3  ;;  %5593 = vmatpush1.bf16.msra.mxu1 %v9760_v45  ;;  %v9770_v3 = vld [vmem:[#allocation53_spill] sm:$0xff]  ;;  %v9771_v45 = vld [vmem:[#allocation54_spill] sm:$0xff] }
 0x552   :  { %5531 = vmatprep.subr.bf16.mxu0 %v9761_v51  ;;  %5595 = vmatprep.subr.bf16.mxu1 %v9762_v22  ;;  %v9772_v51 = vld [vmem:[#allocation55_spill] sm:$0xff]  ;;  %v9773_v22 = vld [vmem:[#allocation56_spill] sm:$0xff] }
 0x555   :  { %5533 = vmatpush1.bf16.msra.mxu0 %v9763_v31  ;;  %5597 = vmatpush1.bf16.msra.mxu1 %v9764_v19  ;;  %v9774_v31 = vld [vmem:[#allocation57_spill] sm:$0xff]  ;;  %v9775_v19 = vld [vmem:[#allocation58_spill] sm:$0xff] }
 0x556   :  { %5535 = vmatprep.subr.bf16.mxu0 %v9765_v25  ;;  %5599 = vmatprep.subr.bf16.mxu1 %v9766_v44  ;;  %v9776_v25 = vld [vmem:[#allocation59_spill] sm:$0xff]  ;;  %v9777_v44 = vld [vmem:[#allocation60_spill] sm:$0xff] }
 0x559   :  { %5537 = vmatpush1.bf16.msra.mxu0 %v9767_v28  ;;  %5601 = vmatpush1.bf16.msra.mxu1 %v9768_v26  ;;  %v9778_v28 = vld [vmem:[#allocation61_spill] sm:$0xff]  ;;  %v9779_v26 = vld [vmem:[#allocation62_spill] sm:$0xff] }
 0x55a   :  { %5539 = vmatprep.subr.bf16.mxu0 %v9769_v63  ;;  %5603 = vmatprep.subr.bf16.mxu1 %v9770_v3  ;;  %v9780_v63 = vld [vmem:[#allocation63_spill] sm:$0xff]  ;;  %v9781_v3 = vld [vmem:[#allocation64_spill] sm:$0xff] }
 0x55d   :  { %5541 = vmatpush1.bf16.msra.mxu0 %v9771_v45  ;;  %5605 = vmatpush1.bf16.msra.mxu1 %v9772_v51  ;;  %v9782_v45 = vld [vmem:[#allocation65_spill] sm:$0xff]  ;;  %v9783_v51 = vld [vmem:[#allocation66_spill] sm:$0xff] }
 0x55e   :  { %5543 = vmatprep.subr.bf16.mxu0 %v9773_v22  ;;  %5607 = vmatprep.subr.bf16.mxu1 %v9774_v31  ;;  %v9784_v22 = vld [vmem:[#allocation67_spill] sm:$0xff]  ;;  %v9785_v31 = vld [vmem:[#allocation68_spill] sm:$0xff] }
 0x561   :  { %5545 = vmatpush1.bf16.msra.mxu0 %v9775_v19  ;;  %5609 = vmatpush1.bf16.msra.mxu1 %v9776_v25  ;;  %v9786_v19 = vld [vmem:[#allocation69_spill] sm:$0xff] }
 0x562   :  { %5547 = vmatprep.subr.bf16.mxu0 %v9777_v44  ;;  %5611 = vmatprep.subr.bf16.mxu1 %v9778_v28 }
 0x565   :  { %5549 = vmatpush1.bf16.msra.mxu0 %v9779_v26  ;;  %5613 = vmatpush1.bf16.msra.mxu1 %v9780_v63 }
 0x566   :  { %5551 = vmatprep.subr.bf16.mxu0 %v9781_v3  ;;  %5615 = vmatprep.subr.bf16.mxu1 %v9782_v45  ;;  %v9789_v45 = vld [vmem:[#allocation142_spill] sm:$0xff] }
 0x569   :  { %5553 = vmatpush1.bf16.msra.mxu0 %v9783_v51  ;;  %5617 = vmatpush1.bf16.msra.mxu1 %v9784_v22 }
 0x56a   :  { %5619 = vmatprep.subr.bf16.mxu0 %v9785_v31  ;;  %5683 = vmatprep.subr.bf16.mxu1 %v9786_v19 }
 0x5bf   :  { %v2855_v25 = vpop.f32.mrb[28].mxu0  ;;  %v2926_v44 = vpop.f32.mrb[28].mxu1 }
 0x5c0   :  { %v3073_v28 = vadd.f32 %v2855_v25, %v9787_v32  ;;  %v2857_v4 = vpop.f32.mrb[29].mxu0  ;;  %v2928_v26 = vpop.f32.mrb[29].mxu1  ;;  %v3075_v51 = vadd.f32 %v2926_v44, %v9789_v45 }
 0x5c1   :  { %v3074_v63 = vadd.f32 %v2857_v4, %v9788_v62  ;;  %v3076_v22 = vadd.f32 %v2928_v26, %v9790_v11 }
 0x5c2   :  { %v4445_v53 = vmul.f32 -1.442695, %v3073_v28  ;;  %v4447_v15 = vmul.f32 -1.442695, %v3075_v51 }
 0x5c3   :  { %v4446_v3 = vmul.f32 -1.442695, %v3074_v63 }
 0x5c4   :  { %6468 = vpow2.f32 %v4445_v53 }
 0x5c5   :  { %6470 = vpow2.f32 %v4446_v3  ;;  %v9791_v3 = vld [vmem:[#allocation72_spill] sm:$0xff] }
 0x5c6   :  { %6472 = vtanh.f32 %v3076_v22 }
 0x5c7   :  { %6474 = vpow2.f32 %v4447_v15 }
 0x5ce   :  { %v6469_v31 = vpop.eup %6468 }
 0x5cf   :  { %v3086_v7 = vadd.f32 1.0, %v6469_v31  ;;  %v6471_v19 = vpop.eup %6470 }
 0x5d0   :  { %v3087_v25 = vadd.f32 1.0, %v6471_v19  ;;  %v6473_v32 = vpop.eup %6472 }
 0x5d1   :  { %6476 = vrcp.f32 %v3086_v7  ;;  %v6475_v38 = vpop.eup %6474 }
 0x5d2   :  { %6478 = vrcp.f32 %v3087_v25  ;;  %v3088_v53 = vadd.f32 1.0, %v6475_v38 }
 0x5d4   :  { %6480 = vrcp.f32 %v3088_v53 }
 0x5db   :  { %v6477_v4 = vpop.eup %6476 }
 0x5dc   :  { %v3097_v28 = vmul.f32 %v6477_v4, %v6473_v32  ;;  %v6479_v63 = vpop.eup %6478 }
 0x5dd   :  { %v3096_v62 = vmul.f32 %v6479_v63, %v9791_v3  ;;  %v9794_v63 = vld [vmem:[#allocation78_spill] sm:$0xff] }
 0x5de   :  { %v6481_v31 = vpop.eup %6480 }
 0x5df   :  { %v8559_v44 = vadd.f32 %v3097_v28, %v3096_v62  ;;  %v9793_v28 = vld [vmem:[#allocation77_spill] sm:$0xff] }
 0x5e0   :  { %v9795_v53 = vcombine.low %v9793_v28, %v9794_v63  ;;  %v9804_v28 = vld [vmem:[#allocation129_spill] sm:$0xff]  ;;  %v9805_v63 = vld [vmem:[#allocation130_spill] sm:$0xff] }
 0x5e1   :  { %9792 = vst [vmem:[#allocation85_spill] sm:$0xff] %v8559_v44  ;;  %6482 = vtanh.f32 %v8559_v44 }
 0x5eb   :  { %v6483_v22 = vpop.eup %6482 }
 0x5ec   :  { %v3100_v26 = vmul.f32 %v6483_v22, %v6481_v31 }
 0x5ee   :  { %3209 = vmatprep.mubr.f32.mxu0 %v3100_v26  ;;  %3280 = vmatprep.mubr.f32.mxu1 %v3100_v26 }
 0x5ff   :  { %v2997_v7 = vpop.f32.mrb[30].mxu0  ;;  %v3068_v15 = vpop.f32.mrb[30].mxu1 }
 0x600   :  { %v2999_v19 = vpop.f32.mrb[31].mxu0  ;;  %v3070_v51 = vpop.f32.mrb[31].mxu1 }
 0x601   :  { %v3106_v25 = vcombine.low %v2997_v7, %v2999_v19  ;;  %v3107_v32 = vcombine.low %v3068_v15, %v3070_v51 }
 0x603   :  { %v3114_v38 = vrot.slane %v3106_v25, %v7354_v20  ;;  %v3121_v4 = vrot.slane %v3107_v32, %v7354_v20 }
 0x605   :  { %v3122_v62 = vcombine.low %v3114_v38, %v3121_v4  ;;  %v9802_v4 = vld [vmem:[#allocation127_spill] sm:$0xff] }
 0x607   :  { %v3124_v3 = vadd.f32 %v3122_v62, %v9795_v53  ;;  %v9803_v62 = vld [vmem:[#allocation128_spill] sm:$0xff]  ;;  %v9806_v53 = vld [vmem:[#allocation131_spill] sm:$0xff] }
 0x609   :  { %v4448_v44 = vmul.f32 -1.442695, %v3124_v3  ;;  %v3132_v11 = vrot.slane %v3124_v3, 6  ;;  %v9807_v3 = vld [vmem:[#allocation132_spill] sm:$0xff] }
 0x60b   :  { %6484 = vpow2.f32 %v4448_v44  ;;  %v9800_v44 = vld [vmem:[#allocation125_spill] sm:$0xff] }
 0x615   :  { %v6485_v31 = vpop.eup %6484 }
 0x616   :  { %v3128_v22 = vadd.f32 1.0, %v6485_v31  ;;  %v9808_v31 = vld [vmem:[#allocation133_spill] sm:$0xff] }
 0x618   :  { %6486 = vrcp.f32 %v3128_v22  ;;  %v9809_v22 = vld [vmem:[#allocation134_spill] sm:$0xff] }
 0x619   :  { %6488 = vtanh.f32 %v3132_v11  ;;  %v9796_v11 = vld [vmem:[#allocation121_spill] sm:$0xff] }
 0x622   :  { %v6487_v45 = vpop.eup %6486 }
 0x623   :  { %v3136_v18 = vrot.slane %v6487_v45, 2  ;;  %v6489_v7 = vpop.eup %6488  ;;  %v3142_v25 = vrot.slane %v6487_v45, 4 }
 0x624   :  { %v3139_v15 = vmul.f32 %v6489_v7, %v6487_v45  ;;  %v9799_v45 = vld [vmem:[#allocation124_spill] sm:$0xff]  ;;  %v9810_v7 = vld [vmem:[#allocation135_spill] sm:$0xff] }
 0x625   :  { %v3138_v19 = vmul.f32 %v3136_v18, %v8417_v49  ;;  %v9797_v18 = vld [vmem:[#allocation122_spill] sm:$0xff]  ;;  %v9798_v49 = vld [vmem:[#allocation123_spill] sm:$0xff] }
 0x627   :  { %v8568_v51 = vadd.f32 %v3139_v15, %v3138_v19  ;;  %v9811_v15 = vld [vmem:[#allocation136_spill] sm:$0xff]  ;;  %v9812_v19 = vld [vmem:[#allocation137_spill] sm:$0xff] }
 0x629   :  { %6490 = vtanh.f32 %v8568_v51 }
 0x633   :  { %v6491_v32 = vpop.eup %6490 }
 0x634   :  { %v8571_v38 = vmul.f32 %v6491_v32, %v3142_v25  ;;  %v9813_v25 = vld [vmem:[#allocation138_spill] sm:$0xff]  ;;  %v9814_v32 = vld [vmem:[#allocation139_spill] sm:$0xff] }
 0x636   :  { %3210 = vmatmul.mubr.f32.vlgmr.msra.gmra.mrb[32].mxu0 %v8571_v38  ;;  %3281 = vmatmul.mubr.f32.vlgmr.msra.gmra.mrb[32].mxu1 %v8571_v38 }
 0x637   :  { %5621 = vmatpush1.bf16.msra.mxu0 %v7475_v23  ;;  %5685 = vmatpush1.bf16.msra.mxu1 %v7477_v8 }
 0x638   :  { %3351 = vmatprep.mubr.f32.mxu0 %v3100_v26  ;;  %3422 = vmatprep.mubr.f32.mxu1 %v3100_v26  ;;  %v9801_v26 = vld [vmem:[#allocation126_spill] sm:$0xff] }
 0x639   :  { %5623 = vmatprep.subr.bf16.mxu0 %v7487_v12  ;;  %5687 = vmatprep.subr.bf16.mxu1 %v7489_v58 }
 0x63b   :  { %5625 = vmatpush1.bf16.msra.mxu0 %v7513_v37  ;;  %5689 = vmatpush1.bf16.msra.mxu1 %v7515_v59 }
 0x63c   :  { %5627 = vmatprep.subr.bf16.mxu0 %v9511_v41  ;;  %5691 = vmatprep.subr.bf16.mxu1 %v9512_v61 }
 0x63f   :  { %5629 = vmatpush1.bf16.msra.mxu0 %v9513_v33  ;;  %5693 = vmatpush1.bf16.msra.mxu1 %v9514_v1 }
 0x640   :  { %5631 = vmatprep.subr.bf16.mxu0 %v9515_v30  ;;  %5695 = vmatprep.subr.bf16.mxu1 %v9516_v24 }
 0x643   :  { %5633 = vmatpush1.bf16.msra.mxu0 %v9517_v50  ;;  %5697 = vmatpush1.bf16.msra.mxu1 %v9518_v10 }
 0x644   :  { %5635 = vmatprep.subr.bf16.mxu0 %v9606_v42  ;;  %5699 = vmatprep.subr.bf16.mxu1 %v9607_v52 }
 0x647   :  { %5637 = vmatpush1.bf16.msra.mxu0 %v9608_v5  ;;  %5701 = vmatpush1.bf16.msra.mxu1 %v9609_v16 }
 0x648   :  { %5639 = vmatprep.subr.bf16.mxu0 %v9610_v21  ;;  %5703 = vmatprep.subr.bf16.mxu1 %v9611_v13 }
 0x64b   :  { %5641 = vmatpush1.bf16.msra.mxu0 %v9612_v60  ;;  %5705 = vmatpush1.bf16.msra.mxu1 %v9613_v57 }
 0x64c   :  { %5643 = vmatprep.subr.bf16.mxu0 %v9701_v39  ;;  %5707 = vmatprep.subr.bf16.mxu1 %v9702_v46 }
 0x64f   :  { %5645 = vmatpush1.bf16.msra.mxu0 %v9703_v55  ;;  %5709 = vmatpush1.bf16.msra.mxu1 %v9704_v35 }
 0x650   :  { %5647 = vmatprep.subr.bf16.mxu0 %v9705_v43  ;;  %5711 = vmatprep.subr.bf16.mxu1 %v9706_v40 }
 0x653   :  { %5649 = vmatpush1.bf16.msra.mxu0 %v9707_v34  ;;  %5713 = vmatpush1.bf16.msra.mxu1 %v9708_v14 }
 0x654   :  { %5651 = vmatprep.subr.bf16.mxu0 %v9622_v17  ;;  %5715 = vmatprep.subr.bf16.mxu1 %v9709_v27 }
 0x657   :  { %5653 = vmatpush1.bf16.msra.mxu0 %v9624_v0  ;;  %5717 = vmatpush1.bf16.msra.mxu1 %v9625_v29 }
 0x658   :  { %5655 = vmatprep.subr.bf16.mxu0 %v9626_v36  ;;  %5719 = vmatprep.subr.bf16.mxu1 %v9627_v56 }
 0x65b   :  { %5657 = vmatpush1.bf16.msra.mxu0 %v9628_v2  ;;  %5721 = vmatpush1.bf16.msra.mxu1 %v9629_v6 }
 0x65c   :  { %5659 = vmatprep.subr.bf16.mxu0 %v9630_v9  ;;  %5723 = vmatprep.subr.bf16.mxu1 %v9631_v47 }
 0x65f   :  { %5661 = vmatpush1.bf16.msra.mxu0 %v9632_v48  ;;  %5725 = vmatpush1.bf16.msra.mxu1 %v9546_v54 }
 0x660   :  { %5663 = vmatprep.subr.bf16.mxu0 %v9796_v11  ;;  %5727 = vmatprep.subr.bf16.mxu1 %v9797_v18 }
 0x663   :  { %5665 = vmatpush1.bf16.msra.mxu0 %v9798_v49  ;;  %5729 = vmatpush1.bf16.msra.mxu1 %v9799_v45 }
 0x664   :  { %5667 = vmatprep.subr.bf16.mxu0 %v9800_v44  ;;  %5731 = vmatprep.subr.bf16.mxu1 %v9801_v26  ;;  %v9885_v44 = vld [vmem:[#allocation143_spill] sm:$0xff] }
 0x667   :  { %5669 = vmatpush1.bf16.msra.mxu0 %v9802_v4  ;;  %5733 = vmatpush1.bf16.msra.mxu1 %v9803_v62  ;;  %v9883_v4 = vld [vmem:[#allocation141_spill] sm:$0xff] }
 0x668   :  { %5671 = vmatprep.subr.bf16.mxu0 %v9804_v28  ;;  %5735 = vmatprep.subr.bf16.mxu1 %v9805_v63  ;;  %v9815_v28 = vld [vmem:[#allocation140_spill] sm:$0xff] }
 0x669   :  { %v9816_v63 = vld [vmem:[#allocation4_spill] sm:$0xff] }
 0x66b   :  { %5673 = vmatpush1.bf16.msra.mxu0 %v9806_v53  ;;  %5737 = vmatpush1.bf16.msra.mxu1 %v9807_v3  ;;  %v9817_v53 = vld [vmem:[#allocation5_spill] sm:$0xff]  ;;  %v9882_v3 = vld [vmem:[#allocation70_spill] sm:$0xff] }
 0x66c   :  { %5675 = vmatprep.subr.bf16.mxu0 %v9808_v31  ;;  %5739 = vmatprep.subr.bf16.mxu1 %v9809_v22  ;;  %v9818_v22 = vld [vmem:[#allocation6_spill] sm:$0xff]  ;;  %v9827_v31 = vld [vmem:[#allocation15_spill] sm:$0xff] }
 0x66f   :  { %5677 = vmatpush1.bf16.msra.mxu0 %v9810_v7  ;;  %5741 = vmatpush1.bf16.msra.mxu1 %v9811_v15  ;;  %v9819_v7 = vld [vmem:[#allocation7_spill] sm:$0xff]  ;;  %v9820_v15 = vld [vmem:[#allocation8_spill] sm:$0xff] }
 0x670   :  { %5679 = vmatprep.subr.bf16.mxu0 %v9812_v19  ;;  %5743 = vmatprep.subr.bf16.mxu1 %v9813_v25  ;;  %v9821_v19 = vld [vmem:[#allocation9_spill] sm:$0xff]  ;;  %v9822_v25 = vld [vmem:[#allocation10_spill] sm:$0xff] }
 0x673   :  { %5681 = vmatpush1.bf16.msra.mxu0 %v9814_v32  ;;  %5745 = vmatpush1.bf16.msra.mxu1 %v9815_v28  ;;  %v9823_v32 = vld [vmem:[#allocation11_spill] sm:$0xff]  ;;  %v9824_v28 = vld [vmem:[#allocation12_spill] sm:$0xff] }
 0x674   :  { %5747 = vmatprep.subr.bf16.mxu0 %v9816_v63  ;;  %5811 = vmatprep.subr.bf16.mxu1 %v9817_v53  ;;  %v9825_v63 = vld [vmem:[#allocation13_spill] sm:$0xff]  ;;  %v9826_v53 = vld [vmem:[#allocation14_spill] sm:$0xff] }
 0x676   :  { %3352 = vmatmul.mubr.f32.vlgmr.msra.gmra.mrb[34].mxu0 %v8571_v38  ;;  %3423 = vmatmul.mubr.f32.vlgmr.msra.gmra.mrb[34].mxu1 %v8571_v38  ;;  %v9828_v38 = vld [vmem:[#allocation16_spill] sm:$0xff] }
 0x677   :  { %5749 = vmatpush1.bf16.msra.mxu0 %v9818_v22  ;;  %5813 = vmatpush1.bf16.msra.mxu1 %v9819_v7  ;;  %v9829_v22 = vld [vmem:[#allocation17_spill] sm:$0xff]  ;;  %v9830_v7 = vld [vmem:[#allocation18_spill] sm:$0xff] }
 0x678   :  { %5751 = vmatprep.subr.bf16.mxu0 %v9820_v15  ;;  %5815 = vmatprep.subr.bf16.mxu1 %v9821_v19  ;;  %v9831_v15 = vld [vmem:[#allocation19_spill] sm:$0xff]  ;;  %v9832_v19 = vld [vmem:[#allocation20_spill] sm:$0xff] }
 0x67b   :  { %5753 = vmatpush1.bf16.msra.mxu0 %v9822_v25  ;;  %5817 = vmatpush1.bf16.msra.mxu1 %v9823_v32  ;;  %v9833_v25 = vld [vmem:[#allocation21_spill] sm:$0xff]  ;;  %v9834_v32 = vld [vmem:[#allocation22_spill] sm:$0xff] }
 0x67c   :  { %5755 = vmatprep.subr.bf16.mxu0 %v9824_v28  ;;  %5819 = vmatprep.subr.bf16.mxu1 %v9825_v63  ;;  %v9835_v28 = vld [vmem:[#allocation23_spill] sm:$0xff]  ;;  %v9836_v63 = vld [vmem:[#allocation24_spill] sm:$0xff] }
 0x67f   :  { %5757 = vmatpush1.bf16.msra.mxu0 %v9826_v53  ;;  %5821 = vmatpush1.bf16.msra.mxu1 %v9827_v31  ;;  %v9837_v53 = vld [vmem:[#allocation25_spill] sm:$0xff]  ;;  %v9838_v31 = vld [vmem:[#allocation26_spill] sm:$0xff] }
 0x680   :  { %5759 = vmatprep.subr.bf16.mxu0 %v9828_v38  ;;  %5823 = vmatprep.subr.bf16.mxu1 %v9829_v22  ;;  %v9839_v38 = vld [vmem:[#allocation27_spill] sm:$0xff]  ;;  %v9840_v22 = vld [vmem:[#allocation28_spill] sm:$0xff] }
 0x683   :  { %5761 = vmatpush1.bf16.msra.mxu0 %v9830_v7  ;;  %5825 = vmatpush1.bf16.msra.mxu1 %v9831_v15  ;;  %v9841_v7 = vld [vmem:[#allocation29_spill] sm:$0xff]  ;;  %v9842_v15 = vld [vmem:[#allocation30_spill] sm:$0xff] }
 0x684   :  { %5763 = vmatprep.subr.bf16.mxu0 %v9832_v19  ;;  %5827 = vmatprep.subr.bf16.mxu1 %v9833_v25  ;;  %v9843_v19 = vld [vmem:[#allocation31_spill] sm:$0xff]  ;;  %v9844_v25 = vld [vmem:[#allocation32_spill] sm:$0xff] }
 0x687   :  { %5765 = vmatpush1.bf16.msra.mxu0 %v9834_v32  ;;  %5829 = vmatpush1.bf16.msra.mxu1 %v9835_v28  ;;  %v9845_v32 = vld [vmem:[#allocation33_spill] sm:$0xff]  ;;  %v9846_v28 = vld [vmem:[#allocation34_spill] sm:$0xff] }
 0x688   :  { %5767 = vmatprep.subr.bf16.mxu0 %v9836_v63  ;;  %5831 = vmatprep.subr.bf16.mxu1 %v9837_v53  ;;  %v9847_v63 = vld [vmem:[#allocation35_spill] sm:$0xff]  ;;  %v9848_v53 = vld [vmem:[#allocation36_spill] sm:$0xff] }
 0x68b   :  { %5769 = vmatpush1.bf16.msra.mxu0 %v9838_v31  ;;  %5833 = vmatpush1.bf16.msra.mxu1 %v9839_v38  ;;  %v9849_v31 = vld [vmem:[#allocation37_spill] sm:$0xff]  ;;  %v9850_v38 = vld [vmem:[#allocation38_spill] sm:$0xff] }
 0x68c   :  { %5771 = vmatprep.subr.bf16.mxu0 %v9840_v22  ;;  %5835 = vmatprep.subr.bf16.mxu1 %v9841_v7  ;;  %v9851_v22 = vld [vmem:[#allocation39_spill] sm:$0xff]  ;;  %v9852_v7 = vld [vmem:[#allocation40_spill] sm:$0xff] }
 0x68f   :  { %5773 = vmatpush1.bf16.msra.mxu0 %v9842_v15  ;;  %5837 = vmatpush1.bf16.msra.mxu1 %v9843_v19  ;;  %v9853_v15 = vld [vmem:[#allocation41_spill] sm:$0xff]  ;;  %v9854_v19 = vld [vmem:[#allocation42_spill] sm:$0xff] }
 0x690   :  { %5775 = vmatprep.subr.bf16.mxu0 %v9844_v25  ;;  %5839 = vmatprep.subr.bf16.mxu1 %v9845_v32  ;;  %v9855_v25 = vld [vmem:[#allocation43_spill] sm:$0xff]  ;;  %v9856_v32 = vld [vmem:[#allocation44_spill] sm:$0xff] }
 0x693   :  { %5777 = vmatpush1.bf16.msra.mxu0 %v9846_v28  ;;  %5841 = vmatpush1.bf16.msra.mxu1 %v9847_v63  ;;  %v9857_v28 = vld [vmem:[#allocation45_spill] sm:$0xff]  ;;  %v9858_v63 = vld [vmem:[#allocation46_spill] sm:$0xff] }
 0x694   :  { %5779 = vmatprep.subr.bf16.mxu0 %v9848_v53  ;;  %5843 = vmatprep.subr.bf16.mxu1 %v9849_v31  ;;  %v9859_v53 = vld [vmem:[#allocation47_spill] sm:$0xff]  ;;  %v9860_v31 = vld [vmem:[#allocation48_spill] sm:$0xff] }
 0x697   :  { %5781 = vmatpush1.bf16.msra.mxu0 %v9850_v38  ;;  %5845 = vmatpush1.bf16.msra.mxu1 %v9851_v22  ;;  %v9861_v38 = vld [vmem:[#allocation49_spill] sm:$0xff]  ;;  %v9862_v22 = vld [vmem:[#allocation50_spill] sm:$0xff] }
 0x698   :  { %5783 = vmatprep.subr.bf16.mxu0 %v9852_v7  ;;  %5847 = vmatprep.subr.bf16.mxu1 %v9853_v15  ;;  %v9863_v7 = vld [vmem:[#allocation51_spill] sm:$0xff]  ;;  %v9864_v15 = vld [vmem:[#allocation52_spill] sm:$0xff] }
 0x69b   :  { %5785 = vmatpush1.bf16.msra.mxu0 %v9854_v19  ;;  %5849 = vmatpush1.bf16.msra.mxu1 %v9855_v25  ;;  %v9865_v19 = vld [vmem:[#allocation53_spill] sm:$0xff]  ;;  %v9866_v25 = vld [vmem:[#allocation54_spill] sm:$0xff] }
 0x69c   :  { %5787 = vmatprep.subr.bf16.mxu0 %v9856_v32  ;;  %5851 = vmatprep.subr.bf16.mxu1 %v9857_v28  ;;  %v9867_v32 = vld [vmem:[#allocation55_spill] sm:$0xff]  ;;  %v9868_v28 = vld [vmem:[#allocation56_spill] sm:$0xff] }
 0x69f   :  { %5789 = vmatpush1.bf16.msra.mxu0 %v9858_v63  ;;  %5853 = vmatpush1.bf16.msra.mxu1 %v9859_v53  ;;  %v9869_v63 = vld [vmem:[#allocation57_spill] sm:$0xff]  ;;  %v9870_v53 = vld [vmem:[#allocation58_spill] sm:$0xff] }
 0x6a0   :  { %5791 = vmatprep.subr.bf16.mxu0 %v9860_v31  ;;  %5855 = vmatprep.subr.bf16.mxu1 %v9861_v38  ;;  %v9871_v31 = vld [vmem:[#allocation59_spill] sm:$0xff]  ;;  %v9872_v38 = vld [vmem:[#allocation60_spill] sm:$0xff] }
 0x6a3   :  { %5793 = vmatpush1.bf16.msra.mxu0 %v9862_v22  ;;  %5857 = vmatpush1.bf16.msra.mxu1 %v9863_v7  ;;  %v9873_v22 = vld [vmem:[#allocation61_spill] sm:$0xff]  ;;  %v9874_v7 = vld [vmem:[#allocation62_spill] sm:$0xff] }
 0x6a4   :  { %5795 = vmatprep.subr.bf16.mxu0 %v9864_v15  ;;  %5859 = vmatprep.subr.bf16.mxu1 %v9865_v19  ;;  %v9875_v15 = vld [vmem:[#allocation63_spill] sm:$0xff]  ;;  %v9876_v19 = vld [vmem:[#allocation64_spill] sm:$0xff] }
 0x6a7   :  { %5797 = vmatpush1.bf16.msra.mxu0 %v9866_v25  ;;  %5861 = vmatpush1.bf16.msra.mxu1 %v9867_v32  ;;  %v9877_v25 = vld [vmem:[#allocation65_spill] sm:$0xff]  ;;  %v9878_v32 = vld [vmem:[#allocation66_spill] sm:$0xff] }
 0x6a8   :  { %5799 = vmatprep.subr.bf16.mxu0 %v9868_v28  ;;  %5863 = vmatprep.subr.bf16.mxu1 %v9869_v63  ;;  %v9879_v28 = vld [vmem:[#allocation67_spill] sm:$0xff]  ;;  %v9880_v63 = vld [vmem:[#allocation68_spill] sm:$0xff] }
 0x6ab   :  { %5801 = vmatpush1.bf16.msra.mxu0 %v9870_v53  ;;  %5865 = vmatpush1.bf16.msra.mxu1 %v9871_v31  ;;  %v9881_v53 = vld [vmem:[#allocation69_spill] sm:$0xff] }
 0x6ac   :  { %5803 = vmatprep.subr.bf16.mxu0 %v9872_v38  ;;  %5867 = vmatprep.subr.bf16.mxu1 %v9873_v22 }
 0x6af   :  { %5805 = vmatpush1.bf16.msra.mxu0 %v9874_v7  ;;  %5869 = vmatpush1.bf16.msra.mxu1 %v9875_v15 }
 0x6b0   :  { %5807 = vmatprep.subr.bf16.mxu0 %v9876_v19  ;;  %5871 = vmatprep.subr.bf16.mxu1 %v9877_v25  ;;  %v9884_v25 = vld [vmem:[#allocation142_spill] sm:$0xff] }
 0x6b3   :  { %5809 = vmatpush1.bf16.msra.mxu0 %v9878_v32  ;;  %5873 = vmatpush1.bf16.msra.mxu1 %v9879_v28 }
 0x6b4   :  { %5875 = vmatprep.subr.bf16.mxu0 %v9880_v63  ;;  %5939 = vmatprep.subr.bf16.mxu1 %v9881_v53 }
 0x709   :  { %v3211_v31 = vpop.f32.mrb[32].mxu0  ;;  %v3282_v38 = vpop.f32.mrb[32].mxu1 }
 0x70a   :  { %v3429_v22 = vadd.f32 %v3211_v31, %v9882_v3  ;;  %v3213_v62 = vpop.f32.mrb[33].mxu0  ;;  %v3284_v7 = vpop.f32.mrb[33].mxu1  ;;  %v3431_v32 = vadd.f32 %v3282_v38, %v9884_v25 }
 0x70b   :  { %v3430_v15 = vadd.f32 %v3213_v62, %v9883_v4  ;;  %v3432_v28 = vadd.f32 %v3284_v7, %v9885_v44 }
 0x70c   :  { %v4449_v26 = vmul.f32 -1.442695, %v3429_v22  ;;  %v4451_v45 = vmul.f32 -1.442695, %v3431_v32 }
 0x70d   :  { %v4450_v19 = vmul.f32 -1.442695, %v3430_v15 }
 0x70e   :  { %6492 = vpow2.f32 %v4449_v26 }
 0x70f   :  { %6494 = vpow2.f32 %v4450_v19  ;;  %v9886_v19 = vld [vmem:[#allocation85_spill] sm:$0xff] }
 0x710   :  { %6496 = vtanh.f32 %v3432_v28 }
 0x711   :  { %6498 = vpow2.f32 %v4451_v45 }
 0x718   :  { %v6493_v63 = vpop.eup %6492 }
 0x719   :  { %v3442_v49 = vadd.f32 1.0, %v6493_v63  ;;  %v6495_v53 = vpop.eup %6494 }
 0x71a   :  { %v3443_v31 = vadd.f32 1.0, %v6495_v53  ;;  %v6497_v3 = vpop.eup %6496 }
 0x71b   :  { %6500 = vrcp.f32 %v3442_v49  ;;  %v6499_v18 = vpop.eup %6498 }
 0x71c   :  { %6502 = vrcp.f32 %v3443_v31  ;;  %v3444_v26 = vadd.f32 1.0, %v6499_v18 }
 0x71e   :  { %6504 = vrcp.f32 %v3444_v26 }
 0x725   :  { %v6501_v62 = vpop.eup %6500 }
 0x726   :  { %v3453_v22 = vmul.f32 %v6501_v62, %v6497_v3  ;;  %v6503_v15 = vpop.eup %6502 }
 0x727   :  { %v3452_v4 = vmul.f32 %v6503_v15, %v9886_v19  ;;  %v9889_v15 = vld [vmem:[#allocation80_spill] sm:$0xff] }
 0x728   :  { %v6505_v63 = vpop.eup %6504 }
 0x729   :  { %v8710_v38 = vadd.f32 %v3453_v22, %v3452_v4  ;;  %v9888_v22 = vld [vmem:[#allocation79_spill] sm:$0xff] }
 0x72a   :  { %v9890_v26 = vcombine.low %v9888_v22, %v9889_v15  ;;  %v9899_v22 = vld [vmem:[#allocation129_spill] sm:$0xff]  ;;  %v9900_v15 = vld [vmem:[#allocation130_spill] sm:$0xff] }
 0x72b   :  { %9887 = vst [vmem:[#allocation86_spill] sm:$0xff] %v8710_v38  ;;  %6506 = vtanh.f32 %v8710_v38 }
 0x735   :  { %v6507_v28 = vpop.eup %6506 }
 0x736   :  { %v3456_v7 = vmul.f32 %v6507_v28, %v6505_v63 }
 0x738   :  { %3565 = vmatprep.mubr.f32.mxu0 %v3456_v7  ;;  %3636 = vmatprep.mubr.f32.mxu1 %v3456_v7 }
 0x749   :  { %v3353_v49 = vpop.f32.mrb[34].mxu0  ;;  %v3424_v45 = vpop.f32.mrb[34].mxu1 }
 0x74a   :  { %v3355_v53 = vpop.f32.mrb[35].mxu0  ;;  %v3426_v32 = vpop.f32.mrb[35].mxu1 }
 0x74b   :  { %v3462_v31 = vcombine.low %v3353_v49, %v3355_v53  ;;  %v3463_v3 = vcombine.low %v3424_v45, %v3426_v32 }
 0x74d   :  { %v3470_v18 = vrot.slane %v3462_v31, %v7354_v20  ;;  %v3477_v62 = vrot.slane %v3463_v3, %v7354_v20 }
 0x74f   :  { %v3478_v4 = vcombine.low %v3470_v18, %v3477_v62  ;;  %v9897_v62 = vld [vmem:[#allocation127_spill] sm:$0xff] }
 0x751   :  { %v3480_v19 = vadd.f32 %v3478_v4, %v9890_v26  ;;  %v9898_v4 = vld [vmem:[#allocation128_spill] sm:$0xff]  ;;  %v9901_v26 = vld [vmem:[#allocation131_spill] sm:$0xff] }
 0x753   :  { %v4452_v38 = vmul.f32 -1.442695, %v3480_v19  ;;  %v3488_v44 = vrot.slane %v3480_v19, 6  ;;  %v9902_v19 = vld [vmem:[#allocation132_spill] sm:$0xff] }
 0x755   :  { %6508 = vpow2.f32 %v4452_v38  ;;  %v9895_v38 = vld [vmem:[#allocation125_spill] sm:$0xff] }
 0x75f   :  { %v6509_v63 = vpop.eup %6508 }
 0x760   :  { %v3484_v28 = vadd.f32 1.0, %v6509_v63  ;;  %v9903_v63 = vld [vmem:[#allocation133_spill] sm:$0xff] }
 0x762   :  { %6510 = vrcp.f32 %v3484_v28  ;;  %v9904_v28 = vld [vmem:[#allocation134_spill] sm:$0xff] }
 0x763   :  { %6512 = vtanh.f32 %v3488_v44  ;;  %v9893_v44 = vld [vmem:[#allocation123_spill] sm:$0xff] }
 0x76c   :  { %v6511_v25 = vpop.eup %6510 }
 0x76d   :  { %v3492_v11 = vrot.slane %v6511_v25, 2  ;;  %v6513_v49 = vpop.eup %6512  ;;  %v3498_v31 = vrot.slane %v6511_v25, 4 }
 0x76e   :  { %v3495_v45 = vmul.f32 %v6513_v49, %v6511_v25  ;;  %v9894_v25 = vld [vmem:[#allocation124_spill] sm:$0xff]  ;;  %v9905_v49 = vld [vmem:[#allocation135_spill] sm:$0xff] }
 0x76f   :  { %v3494_v53 = vmul.f32 %v3492_v11, %v8568_v51  ;;  %v9891_v51 = vld [vmem:[#allocation121_spill] sm:$0xff]  ;;  %v9892_v11 = vld [vmem:[#allocation122_spill] sm:$0xff] }
 0x771   :  { %v8719_v32 = vadd.f32 %v3495_v45, %v3494_v53  ;;  %v9906_v45 = vld [vmem:[#allocation136_spill] sm:$0xff]  ;;  %v9907_v53 = vld [vmem:[#allocation137_spill] sm:$0xff] }
 0x773   :  { %6514 = vtanh.f32 %v8719_v32 }
 0x77d   :  { %v6515_v3 = vpop.eup %6514 }
 0x77e   :  { %v8722_v18 = vmul.f32 %v6515_v3, %v3498_v31  ;;  %v9908_v31 = vld [vmem:[#allocation138_spill] sm:$0xff]  ;;  %v9909_v3 = vld [vmem:[#allocation139_spill] sm:$0xff] }
 0x780   :  { %3566 = vmatmul.mubr.f32.vlgmr.msra.gmra.mrb[36].mxu0 %v8722_v18  ;;  %3637 = vmatmul.mubr.f32.vlgmr.msra.gmra.mrb[36].mxu1 %v8722_v18 }
 0x781   :  { %5877 = vmatpush1.bf16.msra.mxu0 %v7475_v23  ;;  %5941 = vmatpush1.bf16.msra.mxu1 %v7477_v8 }
 0x782   :  { %3707 = vmatprep.mubr.f32.mxu0 %v3456_v7  ;;  %3778 = vmatprep.mubr.f32.mxu1 %v3456_v7  ;;  %v9896_v7 = vld [vmem:[#allocation126_spill] sm:$0xff] }
 0x783   :  { %5879 = vmatprep.subr.bf16.mxu0 %v7487_v12  ;;  %5943 = vmatprep.subr.bf16.mxu1 %v7489_v58 }
 0x785   :  { %5881 = vmatpush1.bf16.msra.mxu0 %v7513_v37  ;;  %5945 = vmatpush1.bf16.msra.mxu1 %v7515_v59 }
 0x786   :  { %5883 = vmatprep.subr.bf16.mxu0 %v9511_v41  ;;  %5947 = vmatprep.subr.bf16.mxu1 %v9512_v61 }
 0x789   :  { %5885 = vmatpush1.bf16.msra.mxu0 %v9513_v33  ;;  %5949 = vmatpush1.bf16.msra.mxu1 %v9514_v1 }
 0x78a   :  { %5887 = vmatprep.subr.bf16.mxu0 %v9515_v30  ;;  %5951 = vmatprep.subr.bf16.mxu1 %v9516_v24 }
 0x78d   :  { %5889 = vmatpush1.bf16.msra.mxu0 %v9517_v50  ;;  %5953 = vmatpush1.bf16.msra.mxu1 %v9518_v10 }
 0x78e   :  { %5891 = vmatprep.subr.bf16.mxu0 %v9606_v42  ;;  %5955 = vmatprep.subr.bf16.mxu1 %v9607_v52 }
 0x791   :  { %5893 = vmatpush1.bf16.msra.mxu0 %v9608_v5  ;;  %5957 = vmatpush1.bf16.msra.mxu1 %v9609_v16 }
 0x792   :  { %5895 = vmatprep.subr.bf16.mxu0 %v9610_v21  ;;  %5959 = vmatprep.subr.bf16.mxu1 %v9611_v13 }
 0x795   :  { %5897 = vmatpush1.bf16.msra.mxu0 %v9612_v60  ;;  %5961 = vmatpush1.bf16.msra.mxu1 %v9613_v57 }
 0x796   :  { %5899 = vmatprep.subr.bf16.mxu0 %v9701_v39  ;;  %5963 = vmatprep.subr.bf16.mxu1 %v9702_v46 }
 0x799   :  { %5901 = vmatpush1.bf16.msra.mxu0 %v9703_v55  ;;  %5965 = vmatpush1.bf16.msra.mxu1 %v9704_v35 }
 0x79a   :  { %5903 = vmatprep.subr.bf16.mxu0 %v9705_v43  ;;  %5967 = vmatprep.subr.bf16.mxu1 %v9706_v40 }
 0x79d   :  { %5905 = vmatpush1.bf16.msra.mxu0 %v9707_v34  ;;  %5969 = vmatpush1.bf16.msra.mxu1 %v9708_v14 }
 0x79e   :  { %5907 = vmatprep.subr.bf16.mxu0 %v9622_v17  ;;  %5971 = vmatprep.subr.bf16.mxu1 %v9709_v27 }
 0x7a1   :  { %5909 = vmatpush1.bf16.msra.mxu0 %v9624_v0  ;;  %5973 = vmatpush1.bf16.msra.mxu1 %v9625_v29 }
 0x7a2   :  { %5911 = vmatprep.subr.bf16.mxu0 %v9626_v36  ;;  %5975 = vmatprep.subr.bf16.mxu1 %v9627_v56 }
 0x7a5   :  { %5913 = vmatpush1.bf16.msra.mxu0 %v9628_v2  ;;  %5977 = vmatpush1.bf16.msra.mxu1 %v9629_v6 }
 0x7a6   :  { %5915 = vmatprep.subr.bf16.mxu0 %v9630_v9  ;;  %5979 = vmatprep.subr.bf16.mxu1 %v9631_v47 }
 0x7a9   :  { %5917 = vmatpush1.bf16.msra.mxu0 %v9632_v48  ;;  %5981 = vmatpush1.bf16.msra.mxu1 %v9546_v54 }
 0x7aa   :  { %5919 = vmatprep.subr.bf16.mxu0 %v9891_v51  ;;  %5983 = vmatprep.subr.bf16.mxu1 %v9892_v11 }
 0x7ad   :  { %5921 = vmatpush1.bf16.msra.mxu0 %v9893_v44  ;;  %5985 = vmatpush1.bf16.msra.mxu1 %v9894_v25 }
 0x7ae   :  { %5923 = vmatprep.subr.bf16.mxu0 %v9895_v38  ;;  %5987 = vmatprep.subr.bf16.mxu1 %v9896_v7  ;;  %v9980_v38 = vld [vmem:[#allocation143_spill] sm:$0xff] }
 0x7b1   :  { %5925 = vmatpush1.bf16.msra.mxu0 %v9897_v62  ;;  %5989 = vmatpush1.bf16.msra.mxu1 %v9898_v4  ;;  %v9978_v62 = vld [vmem:[#allocation141_spill] sm:$0xff] }
 0x7b2   :  { %5927 = vmatprep.subr.bf16.mxu0 %v9899_v22  ;;  %5991 = vmatprep.subr.bf16.mxu1 %v9900_v15  ;;  %v9910_v22 = vld [vmem:[#allocation140_spill] sm:$0xff] }
 0x7b3   :  { %v9911_v15 = vld [vmem:[#allocation4_spill] sm:$0xff] }
 0x7b5   :  { %5929 = vmatpush1.bf16.msra.mxu0 %v9901_v26  ;;  %5993 = vmatpush1.bf16.msra.mxu1 %v9902_v19  ;;  %v9912_v26 = vld [vmem:[#allocation5_spill] sm:$0xff]  ;;  %v9977_v19 = vld [vmem:[#allocation70_spill] sm:$0xff] }
 0x7b6   :  { %5931 = vmatprep.subr.bf16.mxu0 %v9903_v63  ;;  %5995 = vmatprep.subr.bf16.mxu1 %v9904_v28  ;;  %v9913_v28 = vld [vmem:[#allocation6_spill] sm:$0xff]  ;;  %v9922_v63 = vld [vmem:[#allocation15_spill] sm:$0xff] }
 0x7b9   :  { %5933 = vmatpush1.bf16.msra.mxu0 %v9905_v49  ;;  %5997 = vmatpush1.bf16.msra.mxu1 %v9906_v45  ;;  %v9914_v49 = vld [vmem:[#allocation7_spill] sm:$0xff]  ;;  %v9915_v45 = vld [vmem:[#allocation8_spill] sm:$0xff] }
 0x7ba   :  { %5935 = vmatprep.subr.bf16.mxu0 %v9907_v53  ;;  %5999 = vmatprep.subr.bf16.mxu1 %v9908_v31  ;;  %v9916_v53 = vld [vmem:[#allocation9_spill] sm:$0xff]  ;;  %v9917_v31 = vld [vmem:[#allocation10_spill] sm:$0xff] }
 0x7bd   :  { %5937 = vmatpush1.bf16.msra.mxu0 %v9909_v3  ;;  %6001 = vmatpush1.bf16.msra.mxu1 %v9910_v22  ;;  %v9918_v3 = vld [vmem:[#allocation11_spill] sm:$0xff]  ;;  %v9919_v22 = vld [vmem:[#allocation12_spill] sm:$0xff] }
 0x7be   :  { %6003 = vmatprep.subr.bf16.mxu0 %v9911_v15  ;;  %6067 = vmatprep.subr.bf16.mxu1 %v9912_v26  ;;  %v9920_v15 = vld [vmem:[#allocation13_spill] sm:$0xff]  ;;  %v9921_v26 = vld [vmem:[#allocation14_spill] sm:$0xff] }
 0x7c0   :  { %3708 = vmatmul.mubr.f32.vlgmr.msra.gmra.mrb[38].mxu0 %v8722_v18  ;;  %3779 = vmatmul.mubr.f32.vlgmr.msra.gmra.mrb[38].mxu1 %v8722_v18  ;;  %v9923_v18 = vld [vmem:[#allocation16_spill] sm:$0xff] }
 0x7c1   :  { %6005 = vmatpush1.bf16.msra.mxu0 %v9913_v28  ;;  %6069 = vmatpush1.bf16.msra.mxu1 %v9914_v49  ;;  %v9924_v28 = vld [vmem:[#allocation17_spill] sm:$0xff]  ;;  %v9925_v49 = vld [vmem:[#allocation18_spill] sm:$0xff] }
 0x7c2   :  { %6007 = vmatprep.subr.bf16.mxu0 %v9915_v45  ;;  %6071 = vmatprep.subr.bf16.mxu1 %v9916_v53  ;;  %v9926_v45 = vld [vmem:[#allocation19_spill] sm:$0xff]  ;;  %v9927_v53 = vld [vmem:[#allocation20_spill] sm:$0xff] }
 0x7c5   :  { %6009 = vmatpush1.bf16.msra.mxu0 %v9917_v31  ;;  %6073 = vmatpush1.bf16.msra.mxu1 %v9918_v3  ;;  %v9928_v31 = vld [vmem:[#allocation21_spill] sm:$0xff]  ;;  %v9929_v3 = vld [vmem:[#allocation22_spill] sm:$0xff] }
 0x7c6   :  { %6011 = vmatprep.subr.bf16.mxu0 %v9919_v22  ;;  %6075 = vmatprep.subr.bf16.mxu1 %v9920_v15  ;;  %v9930_v22 = vld [vmem:[#allocation23_spill] sm:$0xff]  ;;  %v9931_v15 = vld [vmem:[#allocation24_spill] sm:$0xff] }
 0x7c9   :  { %6013 = vmatpush1.bf16.msra.mxu0 %v9921_v26  ;;  %6077 = vmatpush1.bf16.msra.mxu1 %v9922_v63  ;;  %v9932_v26 = vld [vmem:[#allocation25_spill] sm:$0xff]  ;;  %v9933_v63 = vld [vmem:[#allocation26_spill] sm:$0xff] }
 0x7ca   :  { %6015 = vmatprep.subr.bf16.mxu0 %v9923_v18  ;;  %6079 = vmatprep.subr.bf16.mxu1 %v9924_v28  ;;  %v9934_v18 = vld [vmem:[#allocation27_spill] sm:$0xff]  ;;  %v9935_v28 = vld [vmem:[#allocation28_spill] sm:$0xff] }
 0x7cd   :  { %6017 = vmatpush1.bf16.msra.mxu0 %v9925_v49  ;;  %6081 = vmatpush1.bf16.msra.mxu1 %v9926_v45  ;;  %v9936_v49 = vld [vmem:[#allocation29_spill] sm:$0xff]  ;;  %v9937_v45 = vld [vmem:[#allocation30_spill] sm:$0xff] }
 0x7ce   :  { %6019 = vmatprep.subr.bf16.mxu0 %v9927_v53  ;;  %6083 = vmatprep.subr.bf16.mxu1 %v9928_v31  ;;  %v9938_v53 = vld [vmem:[#allocation31_spill] sm:$0xff]  ;;  %v9939_v31 = vld [vmem:[#allocation32_spill] sm:$0xff] }
 0x7d1   :  { %6021 = vmatpush1.bf16.msra.mxu0 %v9929_v3  ;;  %6085 = vmatpush1.bf16.msra.mxu1 %v9930_v22  ;;  %v9940_v3 = vld [vmem:[#allocation33_spill] sm:$0xff]  ;;  %v9941_v22 = vld [vmem:[#allocation34_spill] sm:$0xff] }
 0x7d2   :  { %6023 = vmatprep.subr.bf16.mxu0 %v9931_v15  ;;  %6087 = vmatprep.subr.bf16.mxu1 %v9932_v26  ;;  %v9942_v15 = vld [vmem:[#allocation35_spill] sm:$0xff]  ;;  %v9943_v26 = vld [vmem:[#allocation36_spill] sm:$0xff] }
 0x7d5   :  { %6025 = vmatpush1.bf16.msra.mxu0 %v9933_v63  ;;  %6089 = vmatpush1.bf16.msra.mxu1 %v9934_v18  ;;  %v9944_v63 = vld [vmem:[#allocation37_spill] sm:$0xff]  ;;  %v9945_v18 = vld [vmem:[#allocation38_spill] sm:$0xff] }
 0x7d6   :  { %6027 = vmatprep.subr.bf16.mxu0 %v9935_v28  ;;  %6091 = vmatprep.subr.bf16.mxu1 %v9936_v49  ;;  %v9946_v28 = vld [vmem:[#allocation39_spill] sm:$0xff]  ;;  %v9947_v49 = vld [vmem:[#allocation40_spill] sm:$0xff] }
 0x7d9   :  { %6029 = vmatpush1.bf16.msra.mxu0 %v9937_v45  ;;  %6093 = vmatpush1.bf16.msra.mxu1 %v9938_v53  ;;  %v9948_v45 = vld [vmem:[#allocation41_spill] sm:$0xff]  ;;  %v9949_v53 = vld [vmem:[#allocation42_spill] sm:$0xff] }
 0x7da   :  { %6031 = vmatprep.subr.bf16.mxu0 %v9939_v31  ;;  %6095 = vmatprep.subr.bf16.mxu1 %v9940_v3  ;;  %v9950_v31 = vld [vmem:[#allocation43_spill] sm:$0xff]  ;;  %v9951_v3 = vld [vmem:[#allocation44_spill] sm:$0xff] }
 0x7dd   :  { %6033 = vmatpush1.bf16.msra.mxu0 %v9941_v22  ;;  %6097 = vmatpush1.bf16.msra.mxu1 %v9942_v15  ;;  %v9952_v22 = vld [vmem:[#allocation45_spill] sm:$0xff]  ;;  %v9953_v15 = vld [vmem:[#allocation46_spill] sm:$0xff] }
 0x7de   :  { %6035 = vmatprep.subr.bf16.mxu0 %v9943_v26  ;;  %6099 = vmatprep.subr.bf16.mxu1 %v9944_v63  ;;  %v9954_v26 = vld [vmem:[#allocation47_spill] sm:$0xff]  ;;  %v9955_v63 = vld [vmem:[#allocation48_spill] sm:$0xff] }
 0x7e1   :  { %6037 = vmatpush1.bf16.msra.mxu0 %v9945_v18  ;;  %6101 = vmatpush1.bf16.msra.mxu1 %v9946_v28  ;;  %v9956_v18 = vld [vmem:[#allocation49_spill] sm:$0xff]  ;;  %v9957_v28 = vld [vmem:[#allocation50_spill] sm:$0xff] }
 0x7e2   :  { %6039 = vmatprep.subr.bf16.mxu0 %v9947_v49  ;;  %6103 = vmatprep.subr.bf16.mxu1 %v9948_v45  ;;  %v9958_v49 = vld [vmem:[#allocation51_spill] sm:$0xff]  ;;  %v9959_v45 = vld [vmem:[#allocation52_spill] sm:$0xff] }
 0x7e5   :  { %6041 = vmatpush1.bf16.msra.mxu0 %v9949_v53  ;;  %6105 = vmatpush1.bf16.msra.mxu1 %v9950_v31  ;;  %v9960_v53 = vld [vmem:[#allocation53_spill] sm:$0xff]  ;;  %v9961_v31 = vld [vmem:[#allocation54_spill] sm:$0xff] }
 0x7e6   :  { %6043 = vmatprep.subr.bf16.mxu0 %v9951_v3  ;;  %6107 = vmatprep.subr.bf16.mxu1 %v9952_v22  ;;  %v9962_v3 = vld [vmem:[#allocation55_spill] sm:$0xff]  ;;  %v9963_v22 = vld [vmem:[#allocation56_spill] sm:$0xff] }
 0x7e9   :  { %6045 = vmatpush1.bf16.msra.mxu0 %v9953_v15  ;;  %6109 = vmatpush1.bf16.msra.mxu1 %v9954_v26  ;;  %v9964_v15 = vld [vmem:[#allocation57_spill] sm:$0xff]  ;;  %v9965_v26 = vld [vmem:[#allocation58_spill] sm:$0xff] }
 0x7ea   :  { %6047 = vmatprep.subr.bf16.mxu0 %v9955_v63  ;;  %6111 = vmatprep.subr.bf16.mxu1 %v9956_v18  ;;  %v9966_v63 = vld [vmem:[#allocation59_spill] sm:$0xff]  ;;  %v9967_v18 = vld [vmem:[#allocation60_spill] sm:$0xff] }
 0x7ed   :  { %6049 = vmatpush1.bf16.msra.mxu0 %v9957_v28  ;;  %6113 = vmatpush1.bf16.msra.mxu1 %v9958_v49  ;;  %v9968_v28 = vld [vmem:[#allocation61_spill] sm:$0xff]  ;;  %v9969_v49 = vld [vmem:[#allocation62_spill] sm:$0xff] }
 0x7ee   :  { %6051 = vmatprep.subr.bf16.mxu0 %v9959_v45  ;;  %6115 = vmatprep.subr.bf16.mxu1 %v9960_v53  ;;  %v9970_v45 = vld [vmem:[#allocation63_spill] sm:$0xff]  ;;  %v9971_v53 = vld [vmem:[#allocation64_spill] sm:$0xff] }
 0x7f1   :  { %6053 = vmatpush1.bf16.msra.mxu0 %v9961_v31  ;;  %6117 = vmatpush1.bf16.msra.mxu1 %v9962_v3  ;;  %v9972_v31 = vld [vmem:[#allocation65_spill] sm:$0xff]  ;;  %v9973_v3 = vld [vmem:[#allocation66_spill] sm:$0xff] }
 0x7f2   :  { %6055 = vmatprep.subr.bf16.mxu0 %v9963_v22  ;;  %6119 = vmatprep.subr.bf16.mxu1 %v9964_v15  ;;  %v9974_v22 = vld [vmem:[#allocation67_spill] sm:$0xff]  ;;  %v9975_v15 = vld [vmem:[#allocation68_spill] sm:$0xff] }
 0x7f5   :  { %6057 = vmatpush1.bf16.msra.mxu0 %v9965_v26  ;;  %6121 = vmatpush1.bf16.msra.mxu1 %v9966_v63  ;;  %v9976_v26 = vld [vmem:[#allocation69_spill] sm:$0xff] }
 0x7f6   :  { %6059 = vmatprep.subr.bf16.mxu0 %v9967_v18  ;;  %6123 = vmatprep.subr.bf16.mxu1 %v9968_v28 }
 0x7f9   :  { %6061 = vmatpush1.bf16.msra.mxu0 %v9969_v49  ;;  %6125 = vmatpush1.bf16.msra.mxu1 %v9970_v45 }
 0x7fa   :  { %6063 = vmatprep.subr.bf16.mxu0 %v9971_v53  ;;  %6127 = vmatprep.subr.bf16.mxu1 %v9972_v31  ;;  %v9979_v31 = vld [vmem:[#allocation142_spill] sm:$0xff] }
 0x7fd   :  { %6065 = vmatpush1.bf16.msra.mxu0 %v9973_v3  ;;  %6129 = vmatpush1.bf16.msra.mxu1 %v9974_v22 }
 0x7fe   :  { %6131 = vmatprep.subr.bf16.mxu0 %v9975_v15  ;;  %6195 = vmatprep.subr.bf16.mxu1 %v9976_v26 }
 0x853   :  { %v3567_v63 = vpop.f32.mrb[36].mxu0  ;;  %v3638_v18 = vpop.f32.mrb[36].mxu1 }
 0x854   :  { %v3785_v28 = vadd.f32 %v3567_v63, %v9977_v19  ;;  %v3569_v4 = vpop.f32.mrb[37].mxu0  ;;  %v3640_v49 = vpop.f32.mrb[37].mxu1  ;;  %v3787_v3 = vadd.f32 %v3638_v18, %v9979_v31 }
 0x855   :  { %v3786_v45 = vadd.f32 %v3569_v4, %v9978_v62  ;;  %v3788_v22 = vadd.f32 %v3640_v49, %v9980_v38 }
 0x856   :  { %v4453_v7 = vmul.f32 -1.442695, %v3785_v28  ;;  %v4455_v25 = vmul.f32 -1.442695, %v3787_v3 }
 0x857   :  { %v4454_v53 = vmul.f32 -1.442695, %v3786_v45 }
 0x858   :  { %6516 = vpow2.f32 %v4453_v7 }
 0x859   :  { %6518 = vpow2.f32 %v4454_v53  ;;  %v9981_v53 = vld [vmem:[#allocation86_spill] sm:$0xff] }
 0x85a   :  { %6520 = vtanh.f32 %v3788_v22 }
 0x85b   :  { %6522 = vpow2.f32 %v4455_v25 }
 0x862   :  { %v6517_v15 = vpop.eup %6516 }
 0x863   :  { %v3798_v44 = vadd.f32 1.0, %v6517_v15  ;;  %v6519_v26 = vpop.eup %6518 }
 0x864   :  { %v3799_v63 = vadd.f32 1.0, %v6519_v26  ;;  %v6521_v19 = vpop.eup %6520 }
 0x865   :  { %6524 = vrcp.f32 %v3798_v44  ;;  %v6523_v11 = vpop.eup %6522 }
 0x866   :  { %6526 = vrcp.f32 %v3799_v63  ;;  %v3800_v7 = vadd.f32 1.0, %v6523_v11 }
 0x868   :  { %6528 = vrcp.f32 %v3800_v7 }
 0x86f   :  { %v6525_v4 = vpop.eup %6524 }
 0x870   :  { %v3809_v28 = vmul.f32 %v6525_v4, %v6521_v19  ;;  %v6527_v45 = vpop.eup %6526 }
 0x871   :  { %v3808_v62 = vmul.f32 %v6527_v45, %v9981_v53  ;;  %v9984_v45 = vld [vmem:[#allocation82_spill] sm:$0xff] }
 0x872   :  { %v6529_v49 = vpop.eup %6528 }
 0x873   :  { %v8861_v18 = vadd.f32 %v3809_v28, %v3808_v62  ;;  %v9983_v28 = vld [vmem:[#allocation81_spill] sm:$0xff] }
 0x874   :  { %v9985_v7 = vcombine.low %v9983_v28, %v9984_v45  ;;  %v10036_v28 = vld [vmem:[#allocation34_spill] sm:$0xff]  ;;  %v10037_v45 = vld [vmem:[#allocation35_spill] sm:$0xff] }
 0x875   :  { %9982 = vst [vmem:[#allocation87_spill] sm:$0xff] %v8861_v18  ;;  %6530 = vtanh.f32 %v8861_v18 }
 0x87f   :  { %v6531_v22 = vpop.eup %6530 }
 0x880   :  { %v3812_v3 = vmul.f32 %v6531_v22, %v6529_v49 }
 0x882   :  { %3921 = vmatprep.mubr.f32.mxu0 %v3812_v3  ;;  %3992 = vmatprep.mubr.f32.mxu1 %v3812_v3 }
 0x893   :  { %v3709_v44 = vpop.f32.mrb[38].mxu0  ;;  %v3780_v25 = vpop.f32.mrb[38].mxu1 }
 0x894   :  { %v3711_v15 = vpop.f32.mrb[39].mxu0  ;;  %v3782_v26 = vpop.f32.mrb[39].mxu1 }
 0x895   :  { %v3818_v63 = vcombine.low %v3709_v44, %v3711_v15  ;;  %v3819_v19 = vcombine.low %v3780_v25, %v3782_v26 }
 0x897   :  { %v3826_v11 = vrot.slane %v3818_v63, %v7354_v20  ;;  %v3833_v4 = vrot.slane %v3819_v19, %v7354_v20 }
 0x899   :  { %v3834_v62 = vcombine.low %v3826_v11, %v3833_v4  ;;  %v10034_v4 = vld [vmem:[#allocation32_spill] sm:$0xff] }
 0x89b   :  { %v3836_v53 = vadd.f32 %v3834_v62, %v9985_v7  ;;  %v10035_v62 = vld [vmem:[#allocation33_spill] sm:$0xff]  ;;  %v10038_v7 = vld [vmem:[#allocation36_spill] sm:$0xff] }
 0x89d   :  { %v4456_v18 = vmul.f32 -1.442695, %v3836_v53  ;;  %v3844_v38 = vrot.slane %v3836_v53, 6  ;;  %v10039_v53 = vld [vmem:[#allocation37_spill] sm:$0xff] }
 0x89f   :  { %6532 = vpow2.f32 %v4456_v18  ;;  %v10032_v18 = vld [vmem:[#allocation30_spill] sm:$0xff] }
 0x8a9   :  { %v6533_v49 = vpop.eup %6532 }
 0x8aa   :  { %v3840_v22 = vadd.f32 1.0, %v6533_v49  ;;  %v10040_v49 = vld [vmem:[#allocation38_spill] sm:$0xff] }
 0x8ac   :  { %6534 = vrcp.f32 %v3840_v22  ;;  %v10041_v22 = vld [vmem:[#allocation39_spill] sm:$0xff] }
 0x8ad   :  { %6536 = vtanh.f32 %v3844_v38  ;;  %v10030_v38 = vld [vmem:[#allocation28_spill] sm:$0xff] }
 0x8b6   :  { %v6535_v31 = vpop.eup %6534 }
 0x8b7   :  { %v3848_v51 = vrot.slane %v6535_v31, 2  ;;  %v6537_v44 = vpop.eup %6536  ;;  %v3854_v63 = vrot.slane %v6535_v31, 4 }
 0x8b8   :  { %v3851_v25 = vmul.f32 %v6537_v44, %v6535_v31  ;;  %v10031_v31 = vld [vmem:[#allocation29_spill] sm:$0xff]  ;;  %v10042_v44 = vld [vmem:[#allocation40_spill] sm:$0xff] }
 0x8b9   :  { %v3850_v15 = vmul.f32 %v3848_v51, %v8719_v32  ;;  %v10028_v32 = vld [vmem:[#allocation26_spill] sm:$0xff]  ;;  %v10029_v51 = vld [vmem:[#allocation27_spill] sm:$0xff] }
 0x8bb   :  { %v8870_v26 = vadd.f32 %v3851_v25, %v3850_v15  ;;  %v10043_v25 = vld [vmem:[#allocation41_spill] sm:$0xff]  ;;  %v10044_v15 = vld [vmem:[#allocation42_spill] sm:$0xff] }
 0x8bd   :  { %6538 = vtanh.f32 %v8870_v26 }
 0x8c7   :  { %v6539_v19 = vpop.eup %6538 }
 0x8c8   :  { %v8873_v11 = vmul.f32 %v6539_v19, %v3854_v63  ;;  %v10045_v63 = vld [vmem:[#allocation43_spill] sm:$0xff]  ;;  %v10046_v19 = vld [vmem:[#allocation44_spill] sm:$0xff] }
 0x8ca   :  { %3922 = vmatmul.mubr.f32.vlgmr.msra.gmra.mrb[40].mxu0 %v8873_v11  ;;  %3993 = vmatmul.mubr.f32.vlgmr.msra.gmra.mrb[40].mxu1 %v8873_v11 }
 0x8cb   :  { %6133 = vmatpush1.bf16.msra.mxu0 %v7475_v23  ;;  %6197 = vmatpush1.bf16.msra.mxu1 %v7477_v8  ;;  %v9988_v23 = vld [vmem:[#allocation123_spill] sm:$0xff]  ;;  %v9989_v8 = vld [vmem:[#allocation124_spill] sm:$0xff] }
 0x8cc   :  { %4063 = vmatprep.mubr.f32.mxu0 %v3812_v3  ;;  %4134 = vmatprep.mubr.f32.mxu1 %v3812_v3  ;;  %v10033_v3 = vld [vmem:[#allocation31_spill] sm:$0xff] }
 0x8cd   :  { %6135 = vmatprep.subr.bf16.mxu0 %v7487_v12  ;;  %6199 = vmatprep.subr.bf16.mxu1 %v7489_v58  ;;  %v9986_v58 = vld [vmem:[#allocation121_spill] sm:$0xff]  ;;  %v9987_v12 = vld [vmem:[#allocation122_spill] sm:$0xff] }
 0x8cf   :  { %6137 = vmatpush1.bf16.msra.mxu0 %v7513_v37  ;;  %6201 = vmatpush1.bf16.msra.mxu1 %v7515_v59  ;;  %v9990_v37 = vld [vmem:[#allocation125_spill] sm:$0xff]  ;;  %v9991_v59 = vld [vmem:[#allocation126_spill] sm:$0xff] }
 0x8d0   :  { %6139 = vmatprep.subr.bf16.mxu0 %v9511_v41  ;;  %6203 = vmatprep.subr.bf16.mxu1 %v9512_v61  ;;  %v9992_v41 = vld [vmem:[#allocation127_spill] sm:$0xff]  ;;  %v9993_v61 = vld [vmem:[#allocation128_spill] sm:$0xff] }
 0x8d3   :  { %6141 = vmatpush1.bf16.msra.mxu0 %v9513_v33  ;;  %6205 = vmatpush1.bf16.msra.mxu1 %v9514_v1  ;;  %v9994_v33 = vld [vmem:[#allocation129_spill] sm:$0xff]  ;;  %v9995_v1 = vld [vmem:[#allocation130_spill] sm:$0xff] }
 0x8d4   :  { %6143 = vmatprep.subr.bf16.mxu0 %v9515_v30  ;;  %6207 = vmatprep.subr.bf16.mxu1 %v9516_v24  ;;  %v9996_v30 = vld [vmem:[#allocation131_spill] sm:$0xff]  ;;  %v9997_v24 = vld [vmem:[#allocation132_spill] sm:$0xff] }
 0x8d7   :  { %6145 = vmatpush1.bf16.msra.mxu0 %v9517_v50  ;;  %6209 = vmatpush1.bf16.msra.mxu1 %v9518_v10  ;;  %v9998_v50 = vld [vmem:[#allocation133_spill] sm:$0xff]  ;;  %v9999_v10 = vld [vmem:[#allocation134_spill] sm:$0xff] }
 0x8d8   :  { %6147 = vmatprep.subr.bf16.mxu0 %v9606_v42  ;;  %6211 = vmatprep.subr.bf16.mxu1 %v9607_v52  ;;  %v10001_v42 = vld [vmem:[#allocation136_spill] sm:$0xff]  ;;  %v10002_v52 = vld [vmem:[#allocation137_spill] sm:$0xff] }
 0x8db   :  { %6149 = vmatpush1.bf16.msra.mxu0 %v9608_v5  ;;  %6213 = vmatpush1.bf16.msra.mxu1 %v9609_v16  ;;  %v10003_v5 = vld [vmem:[#allocation138_spill] sm:$0xff]  ;;  %v10004_v16 = vld [vmem:[#allocation139_spill] sm:$0xff] }
 0x8dc   :  { %6151 = vmatprep.subr.bf16.mxu0 %v9610_v21  ;;  %6215 = vmatprep.subr.bf16.mxu1 %v9611_v13  ;;  %v10005_v21 = vld [vmem:[#allocation140_spill] sm:$0xff] }
 0x8dd   :  { %v10006_v13 = vld [vmem:[#allocation4_spill] sm:$0xff] }
 0x8df   :  { %6153 = vmatpush1.bf16.msra.mxu0 %v9612_v60  ;;  %6217 = vmatpush1.bf16.msra.mxu1 %v9613_v57  ;;  %v10007_v60 = vld [vmem:[#allocation5_spill] sm:$0xff]  ;;  %v10008_v57 = vld [vmem:[#allocation6_spill] sm:$0xff] }
 0x8e0   :  { %6155 = vmatprep.subr.bf16.mxu0 %v9701_v39  ;;  %6219 = vmatprep.subr.bf16.mxu1 %v9702_v46  ;;  %v10019_v39 = vld [vmem:[#allocation17_spill] sm:$0xff]  ;;  %v10020_v46 = vld [vmem:[#allocation18_spill] sm:$0xff] }
 0x8e3   :  { %6157 = vmatpush1.bf16.msra.mxu0 %v9703_v55  ;;  %6221 = vmatpush1.bf16.msra.mxu1 %v9704_v35  ;;  %v10021_v55 = vld [vmem:[#allocation19_spill] sm:$0xff]  ;;  %v10022_v35 = vld [vmem:[#allocation20_spill] sm:$0xff] }
 0x8e4   :  { %6159 = vmatprep.subr.bf16.mxu0 %v9705_v43  ;;  %6223 = vmatprep.subr.bf16.mxu1 %v9706_v40  ;;  %v10023_v43 = vld [vmem:[#allocation21_spill] sm:$0xff]  ;;  %v10024_v40 = vld [vmem:[#allocation22_spill] sm:$0xff] }
 0x8e7   :  { %6161 = vmatpush1.bf16.msra.mxu0 %v9707_v34  ;;  %6225 = vmatpush1.bf16.msra.mxu1 %v9708_v14  ;;  %v10025_v34 = vld [vmem:[#allocation23_spill] sm:$0xff]  ;;  %v10026_v14 = vld [vmem:[#allocation24_spill] sm:$0xff] }
 0x8e8   :  { %6163 = vmatprep.subr.bf16.mxu0 %v9622_v17  ;;  %6227 = vmatprep.subr.bf16.mxu1 %v9709_v27  ;;  %v10017_v17 = vld [vmem:[#allocation15_spill] sm:$0xff]  ;;  %v10027_v27 = vld [vmem:[#allocation25_spill] sm:$0xff] }
 0x8eb   :  { %6165 = vmatpush1.bf16.msra.mxu0 %v9624_v0  ;;  %6229 = vmatpush1.bf16.msra.mxu1 %v9625_v29  ;;  %v10009_v29 = vld [vmem:[#allocation7_spill] sm:$0xff]  ;;  %v10018_v0 = vld [vmem:[#allocation16_spill] sm:$0xff] }
 0x8ec   :  { %6167 = vmatprep.subr.bf16.mxu0 %v9626_v36  ;;  %6231 = vmatprep.subr.bf16.mxu1 %v9627_v56  ;;  %v10010_v36 = vld [vmem:[#allocation8_spill] sm:$0xff]  ;;  %v10011_v56 = vld [vmem:[#allocation9_spill] sm:$0xff] }
 0x8ef   :  { %6169 = vmatpush1.bf16.msra.mxu0 %v9628_v2  ;;  %6233 = vmatpush1.bf16.msra.mxu1 %v9629_v6  ;;  %v10012_v2 = vld [vmem:[#allocation10_spill] sm:$0xff]  ;;  %v10013_v6 = vld [vmem:[#allocation11_spill] sm:$0xff] }
 0x8f0   :  { %6171 = vmatprep.subr.bf16.mxu0 %v9630_v9  ;;  %6235 = vmatprep.subr.bf16.mxu1 %v9631_v47  ;;  %v10014_v9 = vld [vmem:[#allocation12_spill] sm:$0xff]  ;;  %v10015_v47 = vld [vmem:[#allocation13_spill] sm:$0xff] }
 0x8f3   :  { %6173 = vmatpush1.bf16.msra.mxu0 %v9632_v48  ;;  %6237 = vmatpush1.bf16.msra.mxu1 %v9546_v54  ;;  %v10000_v54 = vld [vmem:[#allocation135_spill] sm:$0xff]  ;;  %v10016_v48 = vld [vmem:[#allocation14_spill] sm:$0xff] }
 0x8f4   :  { %6175 = vmatprep.subr.bf16.mxu0 %v9986_v58  ;;  %6239 = vmatprep.subr.bf16.mxu1 %v9987_v12  ;;  %v10048_v58 = vld [vmem:[#allocation46_spill] sm:$0xff]  ;;  %v10049_v12 = vld [vmem:[#allocation47_spill] sm:$0xff] }
 0x8f7   :  { %6177 = vmatpush1.bf16.msra.mxu0 %v9988_v23  ;;  %6241 = vmatpush1.bf16.msra.mxu1 %v9989_v8  ;;  %v10050_v23 = vld [vmem:[#allocation48_spill] sm:$0xff]  ;;  %v10051_v8 = vld [vmem:[#allocation49_spill] sm:$0xff] }
 0x8f8   :  { %6179 = vmatprep.subr.bf16.mxu0 %v9990_v37  ;;  %6243 = vmatprep.subr.bf16.mxu1 %v9991_v59  ;;  %v10052_v37 = vld [vmem:[#allocation50_spill] sm:$0xff]  ;;  %v10053_v59 = vld [vmem:[#allocation51_spill] sm:$0xff] }
 0x8fb   :  { %6181 = vmatpush1.bf16.msra.mxu0 %v9992_v41  ;;  %6245 = vmatpush1.bf16.msra.mxu1 %v9993_v61  ;;  %v10054_v41 = vld [vmem:[#allocation52_spill] sm:$0xff]  ;;  %v10055_v61 = vld [vmem:[#allocation53_spill] sm:$0xff] }
 0x8fc   :  { %6183 = vmatprep.subr.bf16.mxu0 %v9994_v33  ;;  %6247 = vmatprep.subr.bf16.mxu1 %v9995_v1  ;;  %v10056_v33 = vld [vmem:[#allocation54_spill] sm:$0xff]  ;;  %v10057_v1 = vld [vmem:[#allocation55_spill] sm:$0xff] }
 0x8ff   :  { %6185 = vmatpush1.bf16.msra.mxu0 %v9996_v30  ;;  %6249 = vmatpush1.bf16.msra.mxu1 %v9997_v24  ;;  %v10058_v30 = vld [vmem:[#allocation56_spill] sm:$0xff]  ;;  %v10059_v24 = vld [vmem:[#allocation57_spill] sm:$0xff] }
 0x900   :  { %6187 = vmatprep.subr.bf16.mxu0 %v9998_v50  ;;  %6251 = vmatprep.subr.bf16.mxu1 %v9999_v10  ;;  %v10060_v50 = vld [vmem:[#allocation58_spill] sm:$0xff]  ;;  %v10061_v10 = vld [vmem:[#allocation59_spill] sm:$0xff] }
 0x903   :  { %6189 = vmatpush1.bf16.msra.mxu0 %v10000_v54  ;;  %6253 = vmatpush1.bf16.msra.mxu1 %v10001_v42  ;;  %v10062_v54 = vld [vmem:[#allocation60_spill] sm:$0xff]  ;;  %v10063_v42 = vld [vmem:[#allocation61_spill] sm:$0xff] }
 0x904   :  { %6191 = vmatprep.subr.bf16.mxu0 %v10002_v52  ;;  %6255 = vmatprep.subr.bf16.mxu1 %v10003_v5  ;;  %v10064_v52 = vld [vmem:[#allocation62_spill] sm:$0xff]  ;;  %v10065_v5 = vld [vmem:[#allocation63_spill] sm:$0xff] }
 0x907   :  { %6193 = vmatpush1.bf16.msra.mxu0 %v10004_v16  ;;  %6257 = vmatpush1.bf16.msra.mxu1 %v10005_v21  ;;  %v10066_v16 = vld [vmem:[#allocation64_spill] sm:$0xff]  ;;  %v10067_v21 = vld [vmem:[#allocation65_spill] sm:$0xff] }
 0x908   :  { %6259 = vmatprep.subr.bf16.mxu0 %v10006_v13  ;;  %6323 = vmatprep.subr.bf16.mxu1 %v10007_v60  ;;  %v10068_v13 = vld [vmem:[#allocation66_spill] sm:$0xff]  ;;  %v10069_v60 = vld [vmem:[#allocation67_spill] sm:$0xff] }
 0x90a   :  { %4064 = vmatmul.mubr.f32.vlgmr.msra.gmra.mrb[42].mxu0 %v8873_v11  ;;  %4135 = vmatmul.mubr.f32.vlgmr.msra.gmra.mrb[42].mxu1 %v8873_v11  ;;  %v10047_v11 = vld [vmem:[#allocation45_spill] sm:$0xff] }
 0x90b   :  { %6261 = vmatpush1.bf16.msra.mxu0 %v10008_v57  ;;  %6325 = vmatpush1.bf16.msra.mxu1 %v10009_v29 }
 0x90c   :  { %6263 = vmatprep.subr.bf16.mxu0 %v10010_v36  ;;  %6327 = vmatprep.subr.bf16.mxu1 %v10011_v56  ;;  %v10070_v36 = vld [vmem:[#allocation70_spill] sm:$0xff] }
 0x90f   :  { %6265 = vmatpush1.bf16.msra.mxu0 %v10012_v2  ;;  %6329 = vmatpush1.bf16.msra.mxu1 %v10013_v6 }
 0x910   :  { %6267 = vmatprep.subr.bf16.mxu0 %v10014_v9  ;;  %6331 = vmatprep.subr.bf16.mxu1 %v10015_v47  ;;  %v10071_v9 = vld [vmem:[#allocation141_spill] sm:$0xff] }
 0x913   :  { %6269 = vmatpush1.bf16.msra.mxu0 %v10016_v48  ;;  %6333 = vmatpush1.bf16.msra.mxu1 %v10017_v17 }
 0x914   :  { %6271 = vmatprep.subr.bf16.mxu0 %v10018_v0  ;;  %6335 = vmatprep.subr.bf16.mxu1 %v10019_v39  ;;  %v10072_v0 = vld [vmem:[#allocation142_spill] sm:$0xff] }
 0x917   :  { %6273 = vmatpush1.bf16.msra.mxu0 %v10020_v46  ;;  %6337 = vmatpush1.bf16.msra.mxu1 %v10021_v55  ;;  %v10073_v46 = vld [vmem:[#allocation143_spill] sm:$0xff] }
 0x918   :  { %6275 = vmatprep.subr.bf16.mxu0 %v10022_v35  ;;  %6339 = vmatprep.subr.bf16.mxu1 %v10023_v43 }
 0x91b   :  { %6277 = vmatpush1.bf16.msra.mxu0 %v10024_v40  ;;  %6341 = vmatpush1.bf16.msra.mxu1 %v10025_v34 }
 0x91c   :  { %6279 = vmatprep.subr.bf16.mxu0 %v10026_v14  ;;  %6343 = vmatprep.subr.bf16.mxu1 %v10027_v27 }
 0x91f   :  { %6281 = vmatpush1.bf16.msra.mxu0 %v10028_v32  ;;  %6345 = vmatpush1.bf16.msra.mxu1 %v10029_v51 }
 0x920   :  { %6283 = vmatprep.subr.bf16.mxu0 %v10030_v38  ;;  %6347 = vmatprep.subr.bf16.mxu1 %v10031_v31 }
 0x923   :  { %6285 = vmatpush1.bf16.msra.mxu0 %v10032_v18  ;;  %6349 = vmatpush1.bf16.msra.mxu1 %v10033_v3  ;;  %v10074_v3 = vld [vmem:[#allocation87_spill] sm:$0xff] }
 0x924   :  { %6287 = vmatprep.subr.bf16.mxu0 %v10034_v4  ;;  %6351 = vmatprep.subr.bf16.mxu1 %v10035_v62 }
 0x927   :  { %6289 = vmatpush1.bf16.msra.mxu0 %v10036_v28  ;;  %6353 = vmatpush1.bf16.msra.mxu1 %v10037_v45 }
 0x928   :  { %6291 = vmatprep.subr.bf16.mxu0 %v10038_v7  ;;  %6355 = vmatprep.subr.bf16.mxu1 %v10039_v53 }
 0x92b   :  { %6293 = vmatpush1.bf16.msra.mxu0 %v10040_v49  ;;  %6357 = vmatpush1.bf16.msra.mxu1 %v10041_v22 }
 0x92c   :  { %6295 = vmatprep.subr.bf16.mxu0 %v10042_v44  ;;  %6359 = vmatprep.subr.bf16.mxu1 %v10043_v25 }
 0x92f   :  { %6297 = vmatpush1.bf16.msra.mxu0 %v10044_v15  ;;  %6361 = vmatpush1.bf16.msra.mxu1 %v10045_v63 }
 0x930   :  { %6299 = vmatprep.subr.bf16.mxu0 %v10046_v19  ;;  %6363 = vmatprep.subr.bf16.mxu1 %v10047_v11 }
 0x933   :  { %6301 = vmatpush1.bf16.msra.mxu0 %v10048_v58  ;;  %6365 = vmatpush1.bf16.msra.mxu1 %v10049_v12  ;;  %v10075_v58 = vld [vmem:[#allocation83_spill] sm:$0xff]  ;;  %v10076_v12 = vld [vmem:[#allocation84_spill] sm:$0xff] }
 0x934   :  { %6303 = vmatprep.subr.bf16.mxu0 %v10050_v23  ;;  %6367 = vmatprep.subr.bf16.mxu1 %v10051_v8  ;;  %v10077_v23 = vcombine.low %v10075_v58, %v10076_v12 }
 0x937   :  { %6305 = vmatpush1.bf16.msra.mxu0 %v10052_v37  ;;  %6369 = vmatpush1.bf16.msra.mxu1 %v10053_v59 }
 0x938   :  { %6307 = vmatprep.subr.bf16.mxu0 %v10054_v41  ;;  %6371 = vmatprep.subr.bf16.mxu1 %v10055_v61 }
 0x93b   :  { %6309 = vmatpush1.bf16.msra.mxu0 %v10056_v33  ;;  %6373 = vmatpush1.bf16.msra.mxu1 %v10057_v1 }
 0x93c   :  { %6311 = vmatprep.subr.bf16.mxu0 %v10058_v30  ;;  %6375 = vmatprep.subr.bf16.mxu1 %v10059_v24 }
 0x93f   :  { %6313 = vmatpush1.bf16.msra.mxu0 %v10060_v50  ;;  %6377 = vmatpush1.bf16.msra.mxu1 %v10061_v10 }
 0x940   :  { %6315 = vmatprep.subr.bf16.mxu0 %v10062_v54  ;;  %6379 = vmatprep.subr.bf16.mxu1 %v10063_v42 }
 0x943   :  { %6317 = vmatpush1.bf16.msra.mxu0 %v10064_v52  ;;  %6381 = vmatpush1.bf16.msra.mxu1 %v10065_v5  ;;  %v12_v52 = vstv %s9038_s6 }
 0x944   :  { %6319 = vmatprep.subr.bf16.mxu0 %v10066_v16  ;;  %6383 = vmatprep.subr.bf16.mxu1 %v10067_v21  ;;  %13 = vst [vmem:[#allocation3] sm:$0x1] %v12_v52 }
 0x947   :  { %6321 = vmatpush1.bf16.msra.mxu0 %v10068_v13  ;;  %6385 = vmatpush1.bf16.msra.mxu1 %v10069_v60 }
 0x99d   :  { %v3923_v57 = vpop.f32.mrb[40].mxu0  ;;  %v3994_v29 = vpop.f32.mrb[40].mxu1 }
 0x99e   :  { %v4141_v56 = vadd.f32 %v3923_v57, %v10070_v36  ;;  %v3925_v2 = vpop.f32.mrb[41].mxu0  ;;  %v3996_v6 = vpop.f32.mrb[41].mxu1  ;;  %v4143_v39 = vadd.f32 %v3994_v29, %v10072_v0 }
 0x99f   :  { %v4142_v47 = vadd.f32 %v3925_v2, %v10071_v9  ;;  %v4144_v55 = vadd.f32 %v3996_v6, %v10073_v46 }
 0x9a0   :  { %v4457_v48 = vmul.f32 -1.442695, %v4141_v56  ;;  %v4459_v35 = vmul.f32 -1.442695, %v4143_v39 }
 0x9a1   :  { %v4458_v17 = vmul.f32 -1.442695, %v4142_v47 }
 0x9a2   :  { %6540 = vpow2.f32 %v4457_v48 }
 0x9a3   :  { %6542 = vpow2.f32 %v4458_v17 }
 0x9a4   :  { %6544 = vtanh.f32 %v4144_v55 }
 0x9a5   :  { %6546 = vpow2.f32 %v4459_v35 }
 0x9ac   :  { %v6541_v43 = vpop.eup %6540 }
 0x9ad   :  { %v4154_v40 = vadd.f32 1.0, %v6541_v43  ;;  %v6543_v34 = vpop.eup %6542 }
 0x9ae   :  { %v4155_v14 = vadd.f32 1.0, %v6543_v34  ;;  %v6545_v27 = vpop.eup %6544 }
 0x9af   :  { %6548 = vrcp.f32 %v4154_v40  ;;  %v6547_v32 = vpop.eup %6546 }
 0x9b0   :  { %6550 = vrcp.f32 %v4155_v14  ;;  %v4156_v18 = vadd.f32 1.0, %v6547_v32 }
 0x9b2   :  { %6552 = vrcp.f32 %v4156_v18 }
 0x9b9   :  { %v6549_v51 = vpop.eup %6548 }
 0x9ba   :  { %v4165_v38 = vmul.f32 %v6549_v51, %v6545_v27  ;;  %v6551_v31 = vpop.eup %6550  ;;  %v4464_v27 = vld [vmem:[%s9039_s5] ss:$0 sm:$0xff] }
 0x9bb   :  { %v4164_v4 = vmul.f32 %v6551_v31, %v10074_v3  ;;  %v4465_v31 = vld [vmem:[#allocation3] ss:$0 sm:$0xff] }
 0x9bc   :  { %v6553_v28 = vpop.eup %6552 }
 0x9bd   :  { %v9010_v62 = vadd.f32 %v4165_v38, %v4164_v4 }
 0x9bf   :  { %6554 = vtanh.f32 %v9010_v62 }
 0x9c9   :  { %v6555_v45 = vpop.eup %6554 }
 0x9ca   :  { %v4168_v7 = vmul.f32 %v6555_v45, %v6553_v28 }
 0x9cc   :  { %4277 = vmatprep.mubr.f32.mxu0 %v4168_v7  ;;  %4348 = vmatprep.mubr.f32.mxu1 %v4168_v7 }
 0x9dd   :  { %v4065_v53 = vpop.f32.mrb[42].mxu0  ;;  %v4136_v49 = vpop.f32.mrb[42].mxu1 }
 0x9de   :  { %v4067_v22 = vpop.f32.mrb[43].mxu0  ;;  %v4138_v44 = vpop.f32.mrb[43].mxu1 }
 0x9df   :  { %v4174_v25 = vcombine.low %v4065_v53, %v4067_v22  ;;  %v4175_v15 = vcombine.low %v4136_v49, %v4138_v44 }
 0x9e1   :  { %v4182_v63 = vrot.slane %v4174_v25, %v7354_v20  ;;  %v4189_v19 = vrot.slane %v4175_v15, %v7354_v20 }
 0x9e3   :  { %v4190_v11 = vcombine.low %v4182_v63, %v4189_v19 }
 0x9e5   :  { %v4192_v8 = vadd.f32 %v4190_v11, %v10077_v23 }
 0x9e7   :  { %v4460_v37 = vmul.f32 -1.442695, %v4192_v8  ;;  %v4200_v61 = vrot.slane %v4192_v8, 6 }
 0x9e9   :  { %6556 = vpow2.f32 %v4460_v37 }
 0x9f3   :  { %v6557_v59 = vpop.eup %6556 }
 0x9f4   :  { %v4196_v41 = vadd.f32 1.0, %v6557_v59 }
 0x9f6   :  { %6558 = vrcp.f32 %v4196_v41 }
 0x9f7   :  { %6560 = vtanh.f32 %v4200_v61 }
 0xa00   :  { %v6559_v33 = vpop.eup %6558 }
 0xa01   :  { %v4204_v1 = vrot.slane %v6559_v33, 2  ;;  %v6561_v30 = vpop.eup %6560  ;;  %v4210_v20 = vrot.slane %v6559_v33, 4 }
 0xa02   :  { %v4207_v24 = vmul.f32 %v6561_v30, %v6559_v33 }
 0xa03   :  { %v4206_v50 = vmul.f32 %v4204_v1, %v8870_v26 }
 0xa05   :  { %v4208_v10 = vadd.f32 %v4207_v24, %v4206_v50 }
 0xa07   :  { %6562 = vtanh.f32 %v4208_v10 }
 0xa11   :  { %v6563_v54 = vpop.eup %6562 }
 0xa12   :  { %v4212_v42 = vmul.f32 %v6563_v54, %v4210_v20 }
 0xa14   :  { %4278 = vmatmul.mubr.f32.vlgmr.msra.gmra.mrb[44].mxu0 %v4212_v42  ;;  %4349 = vmatmul.mubr.f32.vlgmr.msra.gmra.mrb[44].mxu1 %v4212_v42 }
 0xae7   :  { %v4279_v5 = vpop.f32.mrb[44].mxu0  ;;  %v4350_v16 = vpop.f32.mrb[44].mxu1 }
 0xae8   :  { %v4355_v21 = vadd.f32 %v4279_v5, %v10070_v36  ;;  %v4281_v13 = vpop.f32.mrb[45].mxu0  ;;  %v4352_v60 = vpop.f32.mrb[45].mxu1  ;;  %v4357_v56 = vadd.f32 %v4350_v16, %v10072_v0 }
 0xae9   :  { %v4356_v26 = vadd.f32 %v4281_v13, %v10071_v9  ;;  %v4358_v2 = vadd.f32 %v4352_v60, %v10073_v46 }
 0xaea   :  { %v4461_v57 = vmul.f32 -1.442695, %v4355_v21  ;;  %v4463_v6 = vmul.f32 -1.442695, %v4357_v56 }
 0xaeb   :  { %v4462_v29 = vmul.f32 -1.442695, %v4356_v26 }
 0xaec   :  { %6564 = vpow2.f32 %v4461_v57 }
 0xaed   :  { %6566 = vpow2.f32 %v4462_v29 }
 0xaee   :  { %6568 = vtanh.f32 %v4358_v2 }
 0xaef   :  { %6570 = vpow2.f32 %v4463_v6 }
 0xaf6   :  { %v6565_v47 = vpop.eup %6564 }
 0xaf7   :  { %v4368_v48 = vadd.f32 1.0, %v6565_v47  ;;  %v6567_v17 = vpop.eup %6566 }
 0xaf8   :  { %v4369_v36 = vadd.f32 1.0, %v6567_v17  ;;  %v6569_v39 = vpop.eup %6568 }
 0xaf9   :  { %6572 = vrcp.f32 %v4368_v48  ;;  %v6571_v55 = vpop.eup %6570 }
 0xafa   :  { %6574 = vrcp.f32 %v4369_v36  ;;  %v4370_v40 = vadd.f32 1.0, %v6571_v55 }
 0xafc   :  { %6576 = vrcp.f32 %v4370_v40 }
 0xb03   :  { %v6573_v9 = vpop.eup %6572 }
 0xb04   :  { %v4379_v35 = vmul.f32 %v6573_v9, %v6569_v39  ;;  %v6575_v43 = vpop.eup %6574 }
 0xb05   :  { %v4378_v34 = vmul.f32 %v6575_v43, %v9010_v62 }
 0xb06   :  { %v6577_v46 = vpop.eup %6576 }
 0xb07   :  { %v4380_v0 = vadd.f32 %v4379_v35, %v4378_v34 }
 0xb09   :  { %6578 = vtanh.f32 %v4380_v0 }
 0xb13   :  { %v6579_v14 = vpop.eup %6578 }
 0xb14   :  { %v4382_v32 = vmul.f32 %v6579_v14, %v6577_v46 }
 0xb16   :  { %v4390_v51 = vmul.f32 %v4464_v27, %v4382_v32 }
 0xb18   :  { %v4392_v38 = vsel %vm4391_vm1, %v4390_v51, 0.0 }
 0xb19   :  { %4393 = vadd.xlane.f32.xlu0 %v4392_v38 }
 0xba6   :  { %v4394_v18 = vpop.xlane.xlu0 %4393 }
 0xba7   :  { %v4402_v3 = vadd.f32 %v4465_v31, %v4394_v18 }
 0xba9   :  { %4404 = vst.msk [vmem:[%s9040_s7] sm:$0x3] %vm4403_vm2, %v4402_v3 }

</bundles_post_ra>
